<compile_context>
chip_gen: v7x
topology: tpu7x:2x2x1
jax: 0.10.0
libtpu: 0.0.40
codegen_flags: <defaults>
</compile_context>

<pallas_src>
import functools
import math

import numpy as np

import jax
import jax.numpy as jnp
from jax.experimental import pallas as pl
from jax.experimental.pallas import tpu as pltpu


# ----------------------------------------------------------------------------
# In-kernel helpers.
# ----------------------------------------------------------------------------
def _zero_border(pad_ref, *, H, W, Cin):
    """Zero only the 1-px border of the (H+2, (W+2)*Cin) padded scratch."""
    Lp = (W + 2) * Cin
    zrow = jnp.zeros((1, Lp), pad_ref.dtype)
    zcol = jnp.zeros((H + 2, Cin), pad_ref.dtype)
    pad_ref[0:1, :] = zrow
    pad_ref[H + 1:H + 2, :] = zrow
    pad_ref[:, 0:Cin] = zcol
    pad_ref[:, (W + 1) * Cin:(W + 2) * Cin] = zcol


def _conv_rows(pad_ref, wk0, wk1, wk2, blane, *, H):
    """3x3 'same' conv as 3 banded MXU matmuls (one per ky).

    pad_ref : (H+2, (W+2)*Cin) bf16 scratch with a zeroed 1-px border.
    wk*     : ((W+2)*Cin, W*Cout) bf16 block-banded weight for ky = 0,1,2.
    blane   : (1, W*Cout) f32 per-lane bias.
    Returns (H, W*Cout) f32.
    """
    acc = jnp.dot(pad_ref[0:H, :], wk0, preferred_element_type=jnp.float32)
    acc = acc + jnp.dot(pad_ref[1:H + 1, :], wk1,
                        preferred_element_type=jnp.float32)
    acc = acc + jnp.dot(pad_ref[2:H + 2, :], wk2,
                        preferred_element_type=jnp.float32)
    return acc + blane


# ----------------------------------------------------------------------------
# Kernel 1: MeanShift(sub) + head 3x3 conv (3 -> F), fused.  Grid = (N,).
# ----------------------------------------------------------------------------
def _head_kernel(x_ref, s_ref, t_ref, w_ref, b_ref, o_ref, pad_ref,
                 *, H, W, F):
    Cin = 3
    # MeanShift(sub): exact per-lane affine (diag(1/std) * x - range*mean/std).
    shifted = x_ref[...] * s_ref[...] + t_ref[...]
    _zero_border(pad_ref, H=H, W=W, Cin=Cin)
    pad_ref[1:1 + H, Cin:(W + 1) * Cin] = shifted.astype(jnp.bfloat16)
    out = _conv_rows(pad_ref, w_ref[0], w_ref[1], w_ref[2], b_ref[...], H=H)
    o_ref[...] = out


# ----------------------------------------------------------------------------
# Kernel 2: the whole EDSR body (all resblocks + body-tail conv + outer skip).
# Grid = (N, n_resblocks): batch axis "parallel", resblock axis "arbitrary".
# Residual stream lives in VMEM scratch (f32 accumulator + bf16 conv input).
# ----------------------------------------------------------------------------
def _body_kernel(feat_ref, w1_ref, b1_ref, w2_ref, b2_ref, wt_ref, bt_ref,
                 o_ref, res_pad, tmp_pad, res_f32, *, H, W, F, res_scale):
    i = pl.program_id(1)
    L = W * F

    @pl.when(i == 0)
    def _init():
        res_pad[...] = jnp.zeros_like(res_pad)
        tmp_pad[...] = jnp.zeros_like(tmp_pad)
        res_f32[...] = feat_ref[...]
        res_pad[1:1 + H, F:(W + 1) * F] = feat_ref[...].astype(jnp.bfloat16)

    # ResBlock i: conv + ReLU, conv, * res_scale, + skip — all in VMEM.
    t = _conv_rows(res_pad, w1_ref[0, 0], w1_ref[0, 1], w1_ref[0, 2],
                   b1_ref[0], H=H)
    t = jnp.maximum(t, 0.0)
    tmp_pad[1:1 + H, F:(W + 1) * F] = t.astype(jnp.bfloat16)
    r = _conv_rows(tmp_pad, w2_ref[0, 0], w2_ref[0, 1], w2_ref[0, 2],
                   b2_ref[0], H=H)
    res_f32[...] = res_f32[...] + r * res_scale                 # f32 accum
    res_pad[1:1 + H, F:(W + 1) * F] = res_f32[...].astype(jnp.bfloat16)

    # After the last resblock: body-tail conv + outer skip, single HBM store.
    @pl.when(i == pl.num_programs(1) - 1)
    def _fin():
        out = _conv_rows(res_pad, wt_ref[0], wt_ref[1], wt_ref[2],
                         bt_ref[...], H=H)
        o_ref[...] = out + feat_ref[...]


# ----------------------------------------------------------------------------
# Kernel 3/4: generic fused-pad 3x3 conv (upsampler convs, tail conv).
# Grid = (N,) "parallel".
# ----------------------------------------------------------------------------
def _conv_kernel(x_ref, w_ref, b_ref, o_ref, pad_ref, *, H, W, Cin):
    _zero_border(pad_ref, H=H, W=W, Cin=Cin)
    pad_ref[1:1 + H, Cin:(W + 1) * Cin] = x_ref[...].astype(jnp.bfloat16)
    out = _conv_rows(pad_ref, w_ref[0], w_ref[1], w_ref[2], b_ref[...], H=H)
    o_ref[...] = out


# ----------------------------------------------------------------------------
# pallas_call wrappers.
# ----------------------------------------------------------------------------
_VMEM_LIMIT = 32 * 1024 * 1024


def head_call(x2d, ms_scale, ms_bias, wb, blane, *, n_feats, H, W):
    N = x2d.shape[0] // H
    F = n_feats
    kernel = functools.partial(_head_kernel, H=H, W=W, F=F)
    return pl.pallas_call(
        kernel,
        out_shape=jax.ShapeDtypeStruct((N * H, W * F), jnp.float32),
        grid=(N,),
        in_specs=[
            pl.BlockSpec((H, W * 3), lambda n: (n, 0)),
            pl.BlockSpec((1, W * 3), lambda n: (0, 0)),
            pl.BlockSpec((1, W * 3), lambda n: (0, 0)),
            pl.BlockSpec((3, (W + 2) * 3, W * F), lambda n: (0, 0, 0)),
            pl.BlockSpec((1, W * F), lambda n: (0, 0)),
        ],
        out_specs=pl.BlockSpec((H, W * F), lambda n: (n, 0)),
        scratch_shapes=[pltpu.VMEM((H + 2, (W + 2) * 3), jnp.bfloat16)],
        compiler_params=pltpu.CompilerParams(
            dimension_semantics=("parallel",),
            vmem_limit_bytes=_VMEM_LIMIT),
    )(x2d, ms_scale, ms_bias, wb, blane)


def body_call(feat2d, w1, b1, w2, b2, wt, bt, *, n_feats, H, W, res_scale):
    N = feat2d.shape[0] // H
    F = n_feats
    nb = w1.shape[0]
    Lp, L = (W + 2) * F, W * F
    kernel = functools.partial(_body_kernel, H=H, W=W, F=F,
                               res_scale=float(res_scale))
    return pl.pallas_call(
        kernel,
        out_shape=jax.ShapeDtypeStruct((N * H, L), jnp.float32),
        grid=(N, nb),
        in_specs=[
            pl.BlockSpec((H, L), lambda n, i: (n, 0)),
            pl.BlockSpec((1, 3, Lp, L), lambda n, i: (i, 0, 0, 0)),
            pl.BlockSpec((1, 1, L), lambda n, i: (i, 0, 0)),
            pl.BlockSpec((1, 3, Lp, L), lambda n, i: (i, 0, 0, 0)),
            pl.BlockSpec((1, 1, L), lambda n, i: (i, 0, 0)),
            pl.BlockSpec((3, Lp, L), lambda n, i: (0, 0, 0)),
            pl.BlockSpec((1, L), lambda n, i: (0, 0)),
        ],
        out_specs=pl.BlockSpec((H, L), lambda n, i: (n, 0)),
        scratch_shapes=[
            pltpu.VMEM((H + 2, Lp), jnp.bfloat16),   # padded residual (conv in)
            pltpu.VMEM((H + 2, Lp), jnp.bfloat16),   # padded mid activation
            pltpu.VMEM((H, L), jnp.float32),         # f32 residual accumulator
        ],
        compiler_params=pltpu.CompilerParams(
            dimension_semantics=("parallel", "arbitrary"),
            vmem_limit_bytes=_VMEM_LIMIT),
    )(feat2d, w1, b1, w2, b2, wt, bt)


def conv3x3_call(x2d, wb, blane, *, H, W, c_in, c_out):
    N = x2d.shape[0] // H
    Lp, Lo = (W + 2) * c_in, W * c_out
    kernel = functools.partial(_conv_kernel, H=H, W=W, Cin=c_in)
    return pl.pallas_call(
        kernel,
        out_shape=jax.ShapeDtypeStruct((N * H, Lo), jnp.float32),
        grid=(N,),
        in_specs=[
            pl.BlockSpec((H, W * c_in), lambda n: (n, 0)),
            pl.BlockSpec((3, Lp, Lo), lambda n: (0, 0, 0)),
            pl.BlockSpec((1, Lo), lambda n: (0, 0)),
        ],
        out_specs=pl.BlockSpec((H, Lo), lambda n: (n, 0)),
        scratch_shapes=[pltpu.VMEM((H + 2, Lp), jnp.bfloat16)],
        compiler_params=pltpu.CompilerParams(
            dimension_semantics=("parallel",),
            vmem_limit_bytes=_VMEM_LIMIT),
    )(x2d, wb, blane)


# ----------------------------------------------------------------------------
# Host-side weight packing: block-banded weights + per-lane biases.
# ----------------------------------------------------------------------------
def banded_conv(w_hwio, bias, W, *, col_perm=None):
    """Pack a (3,3,Cin,Cout) HWIO conv into 3 block-banded bf16 matrices
    ((W+2)*Cin, W*Cout), one per ky, plus a (1, W*Cout) f32 per-lane bias.
    Optionally permute the output columns (used to fuse PixelShuffle)."""
    w = np.asarray(w_hwio, np.float32)
    b = np.asarray(bias, np.float32)
    _, _, cin, cout = w.shape
    wb = np.zeros((3, (W + 2) * cin, W * cout), np.float32)
    for ky in range(3):
        for kx in range(3):
            for x in range(W):
                wb[ky, (x + kx) * cin:(x + kx + 1) * cin,
                   x * cout:(x + 1) * cout] = w[ky, kx]
    blane = np.tile(b, W)
    if col_perm is not None:
        wb = wb[:, :, col_perm]
        blane = blane[col_perm]
    return (jnp.asarray(wb, jnp.bfloat16),
            jnp.asarray(blane.reshape(1, -1), jnp.float32))


def pixel_shuffle_perm(W, F):
    """Output-column permutation that realises PixelShuffle(2) as a free
    contiguous reshape of the conv's (rows, W*4F) output:
        new column (i, 2x+j, c)  <-  old column x*4F + (c*4 + i*2 + j)."""
    perm = np.empty((2, W, 2, F), np.int64)
    for i in range(2):
        for x in range(W):
            for j in range(2):
                for c in range(F):
                    perm[i, x, j, c] = x * 4 * F + (c * 4 + i * 2 + j)
    return perm.reshape(-1)


def make_raw_params(key, *, n_feats, n_resblocks, upscale, w_scale=0.05):
    F = n_feats
    n_ups = int(round(math.log2(upscale)))
    assert 2 ** n_ups == upscale, "power-of-two upscale only"
    n_convs = 1 + 2 * n_resblocks + 1 + n_ups + 1
    keys = jax.random.split(key, 2 * n_convs)
    it = iter(keys)

    def conv_p(cin, cout):
        w = jax.random.normal(next(it), (3, 3, cin, cout), jnp.float32) * w_scale
        b = jax.random.normal(next(it), (cout,), jnp.float32) * w_scale
        return w, b

    return {
        "head": conv_p(3, F),
        "body": [(conv_p(F, F), conv_p(F, F)) for _ in range(n_resblocks)],
        "body_tail": conv_p(F, F),
        "upsampler": [conv_p(F, 4 * F) for _ in range(n_ups)],
        "tail": conv_p(F, 3),
        "rgb_mean": jnp.array([0.4488, 0.4371, 0.404], jnp.float32),
        "rgb_std": jnp.array([1.0, 1.0, 1.0], jnp.float32),
        "img_range": 255.0,
    }


def pack_params(raw, *, W, upscale):
    mean = np.asarray(raw["rgb_mean"], np.float32)
    std = np.asarray(raw["rgb_std"], np.float32)
    rng = float(raw["img_range"])
    F = int(np.asarray(raw["head"][0]).shape[-1])

    kern = {}
    # MeanShift(sub): per-lane affine over the (W*3)-wide row slab (exact).
    kern["ms_scale"] = jnp.asarray(np.tile(1.0 / std, W).reshape(1, W * 3),
                                   jnp.float32)
    kern["ms_bias"] = jnp.asarray(
        np.tile(-rng * mean / std, W).reshape(1, W * 3), jnp.float32)

    kern["head_w"], kern["head_b"] = banded_conv(*raw["head"], W)

    w1s, b1s, w2s, b2s = [], [], [], []
    for (w1, b1), (w2, b2) in raw["body"]:
        wb, bl = banded_conv(w1, b1, W); w1s.append(wb); b1s.append(bl)
        wb, bl = banded_conv(w2, b2, W); w2s.append(wb); b2s.append(bl)
    kern["body_w1"] = jnp.stack(w1s); kern["body_b1"] = jnp.stack(b1s)
    kern["body_w2"] = jnp.stack(w2s); kern["body_b2"] = jnp.stack(b2s)

    kern["body_tail_w"], kern["body_tail_b"] = banded_conv(*raw["body_tail"], W)

    # Upsampler: fuse PixelShuffle(2) into the output-column order.
    ups, Wc = [], W
    for (w, b) in raw["upsampler"]:
        ups.append(banded_conv(w, b, Wc, col_perm=pixel_shuffle_perm(Wc, F)))
        Wc *= 2
    kern["upsampler"] = ups

    # Tail conv with MeanShift(add) folded analytically (exact).
    w_last, b_last = raw["tail"]
    w_fold = np.asarray(w_last, np.float32) / std.reshape(1, 1, 1, 3)
    b_fold = np.asarray(b_last, np.float32) / std + rng * mean / std
    kern["tail_w"], kern["tail_b"] = banded_conv(w_fold, b_fold, Wc)
    return kern


# ----------------------------------------------------------------------------
# EDSR forward (NCHW in / NCHW out, matching the PyTorch module).
# ----------------------------------------------------------------------------
def edsr_forward(x_nchw, kern, *, n_feats, res_scale):
    N, _, H, W = x_nchw.shape
    F = n_feats
    x2d = jnp.transpose(x_nchw, (0, 2, 3, 1)).reshape(N * H, W * 3)
    x2d = x2d.astype(jnp.float32)

    feat = head_call(x2d, kern["ms_scale"], kern["ms_bias"],
                     kern["head_w"], kern["head_b"], n_feats=F, H=H, W=W)
    res = body_call(feat, kern["body_w1"], kern["body_b1"],
                    kern["body_w2"], kern["body_b2"],
                    kern["body_tail_w"], kern["body_tail_b"],
                    n_feats=F, H=H, W=W, res_scale=res_scale)

    y, Hc, Wc = res, H, W
    for wb, bl in kern["upsampler"]:
        y = conv3x3_call(y, wb, bl, H=Hc, W=Wc, c_in=F, c_out=4 * F)
        Hc, Wc = 2 * Hc, 2 * Wc
        # PixelShuffle(2) already fused into the weight column order: this
        # contiguous reshape is free (no transpose / extra HBM pass).
        y = y.reshape(N * Hc, Wc * F)

    y = conv3x3_call(y, kern["tail_w"], kern["tail_b"],
                     H=Hc, W=Wc, c_in=F, c_out=3)      # add_mean folded in
    return jnp.transpose(y.reshape(N, Hc, Wc, 3), (0, 3, 1, 2))


# ----------------------------------------------------------------------------
# Pure-JAX reference (lax convs, f32 HIGHEST) for correctness checking.
# ----------------------------------------------------------------------------
def _ref_conv(x, w, b, relu=False):
    out = jax.lax.conv_general_dilated(
        x, w, window_strides=(1, 1), padding="SAME",
        dimension_numbers=("NHWC", "HWIO", "NHWC"),
        precision=jax.lax.Precision.HIGHEST,
    ) + b.reshape(1, 1, 1, -1)
    if relu:
        out = jnp.maximum(out, 0.0)
    return out


def pixel_shuffle_nhwc(x, r):
    N, H, W, Cr2 = x.shape
    C = Cr2 // (r * r)
    x = x.reshape(N, H, W, C, r, r)
    x = jnp.transpose(x, (0, 1, 4, 2, 5, 3))
    return x.reshape(N, H * r, W * r, C)


def edsr_forward_ref(x_nchw, raw, *, res_scale):
    mean, std, rng = raw["rgb_mean"], raw["rgb_std"], raw["img_range"]
    x = jnp.transpose(x_nchw, (0, 2, 3, 1)).astype(jnp.float32)

    eye = jnp.eye(3, dtype=jnp.float32) / std[:, None]
    ms_w = jnp.transpose(eye, (1, 0)).reshape(1, 1, 3, 3)

    x = _ref_conv(x, ms_w, -rng * mean / std)                 # sub_mean
    w, b = raw["head"]
    x = _ref_conv(x, w, b)

    res = x
    for (w1, b1), (w2, b2) in raw["body"]:
        t = _ref_conv(res, w1, b1, relu=True)
        res = _ref_conv(t, w2, b2) * res_scale + res
    w, b = raw["body_tail"]
    res = _ref_conv(res, w, b) + x

    y = res
    for w, b in raw["upsampler"]:
        y = _ref_conv(y, w, b)
        y = pixel_shuffle_nhwc(y, 2)
    w, b = raw["tail"]
    y = _ref_conv(y, w, b)
    y = _ref_conv(y, ms_w, rng * mean / std)                  # add_mean
    return jnp.transpose(y, (0, 3, 1, 2))


if __name__ == "__main__":
    # Small EDSR config: num_feat=16, n_resblock=4, upscale=2, res_scale=0.1
    N_FEATS = 16
    N_RESBLOCKS = 4
    UPSCALE = 2
    RES_SCALE = 0.1
    N, H, W = 2, 8, 8            # H multiple of 8 -> aligned row blocks

    key = jax.random.PRNGKey(0)
    k_params, k_x = jax.random.split(key)
    raw = make_raw_params(k_params, n_feats=N_FEATS, n_resblocks=N_RESBLOCKS,
                          upscale=UPSCALE)
    kern = pack_params(raw, W=W, upscale=UPSCALE)

    # Input: NCHW RGB image in [0, 255] (img_range = 255.0)
    x = jax.random.uniform(k_x, (N, 3, H, W), jnp.float32) * 255.0

    fwd = jax.jit(functools.partial(edsr_forward, n_feats=N_FEATS,
                                    res_scale=RES_SCALE))
    out = jax.block_until_ready(fwd(x, kern))
    assert out.shape == (N, 3, H * UPSCALE, W * UPSCALE), out.shape

    ref = jax.block_until_ready(edsr_forward_ref(x, raw, res_scale=RES_SCALE))
    max_err = float(jnp.max(jnp.abs(out - ref)))
    # bf16 MXU operands / bf16 conv inputs (f32 residual accumulation) vs an
    # f32-HIGHEST reference; outputs are O(100) after add_mean.
    assert jnp.allclose(out, ref, atol=2.0, rtol=5e-2), max_err

    print("KERNEL_OK")
</pallas_src>

<mosaic_0001>
module attributes {stable_mosaic.version = 11 : i64} {
  func.func @_head_kernel(%arg0: i32, %arg1: memref<8x24xf32, #tpu.memory_space<vmem>>, %arg2: memref<1x24xf32, #tpu.memory_space<vmem>>, %arg3: memref<1x24xf32, #tpu.memory_space<vmem>>, %arg4: memref<3x30x128xbf16, #tpu.memory_space<vmem>>, %arg5: memref<1x128xf32, #tpu.memory_space<vmem>>, %arg6: memref<8x128xf32, #tpu.memory_space<vmem>>, %arg7: memref<10x30xbf16, #tpu.memory_space<vmem>>) attributes {dimension_semantics = [#tpu.dimension_semantics<parallel>], iteration_bounds = array<i64: 2>, scalar_prefetch = 0 : i64, scratch_operands = 1 : i64, tpu.core_type = #tpu.core_type<tc>, window_params = [{transform_indices = @transform_0, window_bounds = array<i64: 8, 24>}, {pipeline_mode = #tpu.pipeline_mode<synchronous>, transform_indices = @transform_1, window_bounds = array<i64: 1, 24>}, {pipeline_mode = #tpu.pipeline_mode<synchronous>, transform_indices = @transform_2, window_bounds = array<i64: 1, 24>}, {pipeline_mode = #tpu.pipeline_mode<synchronous>, transform_indices = @transform_3, window_bounds = array<i64: 3, 30, 128>}, {pipeline_mode = #tpu.pipeline_mode<synchronous>, transform_indices = @transform_4, window_bounds = array<i64: 1, 128>}, {transform_indices = @transform_5, window_bounds = array<i64: 8, 128>}]} {
    %c0 = arith.constant 0 : index
    %c0_0 = arith.constant 0 : index
    %0 = vector.load %arg1[%c0, %c0_0] : memref<8x24xf32, #tpu.memory_space<vmem>>, vector<8x24xf32>
    %c0_1 = arith.constant 0 : index
    %c0_2 = arith.constant 0 : index
    %1 = vector.load %arg2[%c0_1, %c0_2] : memref<1x24xf32, #tpu.memory_space<vmem>>, vector<1x24xf32>
    %2 = vector.broadcast %1 : vector<1x24xf32> to vector<8x24xf32>
    %3 = arith.mulf %0, %2 : vector<8x24xf32>
    %c0_3 = arith.constant 0 : index
    %c0_4 = arith.constant 0 : index
    %4 = vector.load %arg3[%c0_3, %c0_4] : memref<1x24xf32, #tpu.memory_space<vmem>>, vector<1x24xf32>
    %5 = vector.broadcast %4 : vector<1x24xf32> to vector<8x24xf32>
    %6 = arith.addf %3, %5 : vector<8x24xf32>
    %cst = arith.constant 0.000000e+00 : bf16
    %7 = vector.broadcast %cst : bf16 to vector<1x30xbf16>
    %cst_5 = arith.constant 0.000000e+00 : bf16
    %8 = vector.broadcast %cst_5 : bf16 to vector<10x3xbf16>
    %c0_6 = arith.constant 0 : index
    %c0_7 = arith.constant 0 : index
    %9 = vector.load %arg7[%c0_6, %c0_7] : memref<10x30xbf16, #tpu.memory_space<vmem>>, vector<1x30xbf16>
    tpu.vector_store %arg7[%c0_6, %c0_7], %7 {strides = array<i32>} : memref<10x30xbf16, #tpu.memory_space<vmem>>, vector<1x30xbf16>,
    %c9 = arith.constant 9 : index
    %c0_8 = arith.constant 0 : index
    %10 = vector.load %arg7[%c9, %c0_8] : memref<10x30xbf16, #tpu.memory_space<vmem>>, vector<1x30xbf16>
    tpu.vector_store %arg7[%c9, %c0_8], %7 {strides = array<i32>} : memref<10x30xbf16, #tpu.memory_space<vmem>>, vector<1x30xbf16>,
    %c0_9 = arith.constant 0 : index
    %c0_10 = arith.constant 0 : index
    %11 = vector.load %arg7[%c0_9, %c0_10] : memref<10x30xbf16, #tpu.memory_space<vmem>>, vector<10x3xbf16>
    tpu.vector_store %arg7[%c0_9, %c0_10], %8 {strides = array<i32>} : memref<10x30xbf16, #tpu.memory_space<vmem>>, vector<10x3xbf16>,
    %c0_11 = arith.constant 0 : index
    %c27 = arith.constant 27 : index
    %12 = vector.load %arg7[%c0_11, %c27] : memref<10x30xbf16, #tpu.memory_space<vmem>>, vector<10x3xbf16>
    tpu.vector_store %arg7[%c0_11, %c27], %8 {strides = array<i32>} : memref<10x30xbf16, #tpu.memory_space<vmem>>, vector<10x3xbf16>,
    %13 = arith.truncf %6 : vector<8x24xf32> to vector<8x24xbf16>
    %c1 = arith.constant 1 : index
    %c3 = arith.constant 3 : index
    %14 = vector.load %arg7[%c1, %c3] : memref<10x30xbf16, #tpu.memory_space<vmem>>, vector<8x24xbf16>
    tpu.vector_store %arg7[%c1, %c3], %13 {strides = array<i32>} : memref<10x30xbf16, #tpu.memory_space<vmem>>, vector<8x24xbf16>,
    %c0_12 = arith.constant 0 : index
    %c0_13 = arith.constant 0 : index
    %c0_14 = arith.constant 0 : index
    %15 = vector.load %arg4[%c0_12, %c0_13, %c0_14] : memref<3x30x128xbf16, #tpu.memory_space<vmem>>, vector<1x30x128xbf16>
    %16 = vector.shape_cast %15 : vector<1x30x128xbf16> to vector<30x128xbf16>
    %c1_15 = arith.constant 1 : index
    %c0_16 = arith.constant 0 : index
    %c0_17 = arith.constant 0 : index
    %17 = vector.load %arg4[%c1_15, %c0_16, %c0_17] : memref<3x30x128xbf16, #tpu.memory_space<vmem>>, vector<1x30x128xbf16>
    %18 = vector.shape_cast %17 : vector<1x30x128xbf16> to vector<30x128xbf16>
    %c2 = arith.constant 2 : index
    %c0_18 = arith.constant 0 : index
    %c0_19 = arith.constant 0 : index
    %19 = vector.load %arg4[%c2, %c0_18, %c0_19] : memref<3x30x128xbf16, #tpu.memory_space<vmem>>, vector<1x30x128xbf16>
    %20 = vector.shape_cast %19 : vector<1x30x128xbf16> to vector<30x128xbf16>
    %c0_20 = arith.constant 0 : index
    %c0_21 = arith.constant 0 : index
    %21 = vector.load %arg5[%c0_20, %c0_21] : memref<1x128xf32, #tpu.memory_space<vmem>>, vector<1x128xf32>
    %c0_22 = arith.constant 0 : index
    %c0_23 = arith.constant 0 : index
    %22 = vector.load %arg7[%c0_22, %c0_23] : memref<10x30xbf16, #tpu.memory_space<vmem>>, vector<8x30xbf16>
    %cst_24 = arith.constant dense<0.000000e+00> : vector<8x128xf32>
    %23 = tpu.matmul %22, %16, %cst_24 {dimension_numbers = #tpu.dot_dimension_numbers<[1], [0], [0], [1], [0, 0, 1, 1], [], []>} : vector<8x30xbf16>, vector<30x128xbf16>, vector<8x128xf32> -> vector<8x128xf32>
    %c1_25 = arith.constant 1 : index
    %c0_26 = arith.constant 0 : index
    %24 = vector.load %arg7[%c1_25, %c0_26] : memref<10x30xbf16, #tpu.memory_space<vmem>>, vector<8x30xbf16>
    %cst_27 = arith.constant dense<0.000000e+00> : vector<8x128xf32>
    %25 = tpu.matmul %24, %18, %cst_27 {dimension_numbers = #tpu.dot_dimension_numbers<[1], [0], [0], [1], [0, 0, 1, 1], [], []>} : vector<8x30xbf16>, vector<30x128xbf16>, vector<8x128xf32> -> vector<8x128xf32>
    %26 = arith.addf %23, %25 : vector<8x128xf32>
    %c2_28 = arith.constant 2 : index
    %c0_29 = arith.constant 0 : index
    %27 = vector.load %arg7[%c2_28, %c0_29] : memref<10x30xbf16, #tpu.memory_space<vmem>>, vector<8x30xbf16>
    %cst_30 = arith.constant dense<0.000000e+00> : vector<8x128xf32>
    %28 = tpu.matmul %27, %20, %cst_30 {dimension_numbers = #tpu.dot_dimension_numbers<[1], [0], [0], [1], [0, 0, 1, 1], [], []>} : vector<8x30xbf16>, vector<30x128xbf16>, vector<8x128xf32> -> vector<8x128xf32>
    %29 = arith.addf %26, %28 : vector<8x128xf32>
    %30 = vector.broadcast %21 : vector<1x128xf32> to vector<8x128xf32>
    %31 = arith.addf %29, %30 : vector<8x128xf32>
    %c0_31 = arith.constant 0 : index
    %c0_32 = arith.constant 0 : index
    %32 = vector.load %arg6[%c0_31, %c0_32] : memref<8x128xf32, #tpu.memory_space<vmem>>, vector<8x128xf32>
    tpu.vector_store %arg6[%c0_31, %c0_32], %31 {strides = array<i32>} : memref<8x128xf32, #tpu.memory_space<vmem>>, vector<8x128xf32>,
    return
  }
  func.func @transform_0(%arg0: i32) -> (i32, i32) {
    %c0_i32 = arith.constant 0 : i32
    %c0_i32_0 = arith.constant 0 : i32
    return %arg0, %c0_i32 : i32, i32
  }
  func.func @transform_1(%arg0: i32) -> (i32, i32) {
    %c0_i32 = arith.constant 0 : i32
    %c0_i32_0 = arith.constant 0 : i32
    %c0_i32_1 = arith.constant 0 : i32
    return %c0_i32, %c0_i32_0 : i32, i32
  }
  func.func @transform_2(%arg0: i32) -> (i32, i32) {
    %c0_i32 = arith.constant 0 : i32
    %c0_i32_0 = arith.constant 0 : i32
    %c0_i32_1 = arith.constant 0 : i32
    return %c0_i32, %c0_i32_0 : i32, i32
  }
  func.func @transform_3(%arg0: i32) -> (i32, i32, i32) {
    %c0_i32 = arith.constant 0 : i32
    %c0_i32_0 = arith.constant 0 : i32
    %c0_i32_1 = arith.constant 0 : i32
    %c0_i32_2 = arith.constant 0 : i32
    return %c0_i32, %c0_i32_0, %c0_i32_1 : i32, i32, i32
  }
  func.func @transform_4(%arg0: i32) -> (i32, i32) {
    %c0_i32 = arith.constant 0 : i32
    %c0_i32_0 = arith.constant 0 : i32
    %c0_i32_1 = arith.constant 0 : i32
    return %c0_i32, %c0_i32_0 : i32, i32
  }
  func.func @transform_5(%arg0: i32) -> (i32, i32) {
    %c0_i32 = arith.constant 0 : i32
    %c0_i32_0 = arith.constant 0 : i32
    return %arg0, %c0_i32 : i32, i32
  }
}

module attributes {stable_mosaic.version = 11 : i64} {
  func.func @_conv_kernel(%arg0: i32, %arg1: memref<8x128xf32, #tpu.memory_space<vmem>>, %arg2: memref<3x160x512xbf16, #tpu.memory_space<vmem>>, %arg3: memref<1x512xf32, #tpu.memory_space<vmem>>, %arg4: memref<8x512xf32, #tpu.memory_space<vmem>>, %arg5: memref<10x160xbf16, #tpu.memory_space<vmem>>) attributes {dimension_semantics = [#tpu.dimension_semantics<parallel>], iteration_bounds = array<i64: 2>, scalar_prefetch = 0 : i64, scratch_operands = 1 : i64, tpu.core_type = #tpu.core_type<tc>, window_params = [{transform_indices = @transform_0, window_bounds = array<i64: 8, 128>}, {pipeline_mode = #tpu.pipeline_mode<synchronous>, transform_indices = @transform_1, window_bounds = array<i64: 3, 160, 512>}, {pipeline_mode = #tpu.pipeline_mode<synchronous>, transform_indices = @transform_2, window_bounds = array<i64: 1, 512>}, {transform_indices = @transform_3, window_bounds = array<i64: 8, 512>}]} {
    %cst = arith.constant 0.000000e+00 : bf16
    %0 = vector.broadcast %cst : bf16 to vector<1x160xbf16>
    %cst_0 = arith.constant 0.000000e+00 : bf16
    %1 = vector.broadcast %cst_0 : bf16 to vector<10x16xbf16>
    %c0 = arith.constant 0 : index
    %c0_1 = arith.constant 0 : index
    %2 = vector.load %arg5[%c0, %c0_1] : memref<10x160xbf16, #tpu.memory_space<vmem>>, vector<1x160xbf16>
    tpu.vector_store %arg5[%c0, %c0_1], %0 {strides = array<i32>} : memref<10x160xbf16, #tpu.memory_space<vmem>>, vector<1x160xbf16>,
    %c9 = arith.constant 9 : index
    %c0_2 = arith.constant 0 : index
    %3 = vector.load %arg5[%c9, %c0_2] : memref<10x160xbf16, #tpu.memory_space<vmem>>, vector<1x160xbf16>
    tpu.vector_store %arg5[%c9, %c0_2], %0 {strides = array<i32>} : memref<10x160xbf16, #tpu.memory_space<vmem>>, vector<1x160xbf16>,
    %c0_3 = arith.constant 0 : index
    %c0_4 = arith.constant 0 : index
    %4 = vector.load %arg5[%c0_3, %c0_4] : memref<10x160xbf16, #tpu.memory_space<vmem>>, vector<10x16xbf16>
    tpu.vector_store %arg5[%c0_3, %c0_4], %1 {strides = array<i32>} : memref<10x160xbf16, #tpu.memory_space<vmem>>, vector<10x16xbf16>,
    %c0_5 = arith.constant 0 : index
    %c144 = arith.constant 144 : index
    %5 = vector.load %arg5[%c0_5, %c144] : memref<10x160xbf16, #tpu.memory_space<vmem>>, vector<10x16xbf16>
    tpu.vector_store %arg5[%c0_5, %c144], %1 {strides = array<i32>} : memref<10x160xbf16, #tpu.memory_space<vmem>>, vector<10x16xbf16>,
    %c0_6 = arith.constant 0 : index
    %c0_7 = arith.constant 0 : index
    %6 = vector.load %arg1[%c0_6, %c0_7] : memref<8x128xf32, #tpu.memory_space<vmem>>, vector<8x128xf32>
    %7 = arith.truncf %6 : vector<8x128xf32> to vector<8x128xbf16>
    %c1 = arith.constant 1 : index
    %c16 = arith.constant 16 : index
    %8 = vector.load %arg5[%c1, %c16] : memref<10x160xbf16, #tpu.memory_space<vmem>>, vector<8x128xbf16>
    tpu.vector_store %arg5[%c1, %c16], %7 {strides = array<i32>} : memref<10x160xbf16, #tpu.memory_space<vmem>>, vector<8x128xbf16>,
    %c0_8 = arith.constant 0 : index
    %c0_9 = arith.constant 0 : index
    %c0_10 = arith.constant 0 : index
    %9 = vector.load %arg2[%c0_8, %c0_9, %c0_10] : memref<3x160x512xbf16, #tpu.memory_space<vmem>>, vector<1x160x512xbf16>
    %10 = vector.shape_cast %9 : vector<1x160x512xbf16> to vector<160x512xbf16>
    %c1_11 = arith.constant 1 : index
    %c0_12 = arith.constant 0 : index
    %c0_13 = arith.constant 0 : index
    %11 = vector.load %arg2[%c1_11, %c0_12, %c0_13] : memref<3x160x512xbf16, #tpu.memory_space<vmem>>, vector<1x160x512xbf16>
    %12 = vector.shape_cast %11 : vector<1x160x512xbf16> to vector<160x512xbf16>
    %c2 = arith.constant 2 : index
    %c0_14 = arith.constant 0 : index
    %c0_15 = arith.constant 0 : index
    %13 = vector.load %arg2[%c2, %c0_14, %c0_15] : memref<3x160x512xbf16, #tpu.memory_space<vmem>>, vector<1x160x512xbf16>
    %14 = vector.shape_cast %13 : vector<1x160x512xbf16> to vector<160x512xbf16>
    %c0_16 = arith.constant 0 : index
    %c0_17 = arith.constant 0 : index
    %15 = vector.load %arg3[%c0_16, %c0_17] : memref<1x512xf32, #tpu.memory_space<vmem>>, vector<1x512xf32>
    %c0_18 = arith.constant 0 : index
    %c0_19 = arith.constant 0 : index
    %16 = vector.load %arg5[%c0_18, %c0_19] : memref<10x160xbf16, #tpu.memory_space<vmem>>, vector<8x160xbf16>
    %cst_20 = arith.constant dense<0.000000e+00> : vector<8x512xf32>
    %17 = tpu.matmul %16, %10, %cst_20 {dimension_numbers = #tpu.dot_dimension_numbers<[1], [0], [0], [1], [0, 0, 1, 1], [], []>} : vector<8x160xbf16>, vector<160x512xbf16>, vector<8x512xf32> -> vector<8x512xf32>
    %c1_21 = arith.constant 1 : index
    %c0_22 = arith.constant 0 : index
    %18 = vector.load %arg5[%c1_21, %c0_22] : memref<10x160xbf16, #tpu.memory_space<vmem>>, vector<8x160xbf16>
    %cst_23 = arith.constant dense<0.000000e+00> : vector<8x512xf32>
    %19 = tpu.matmul %18, %12, %cst_23 {dimension_numbers = #tpu.dot_dimension_numbers<[1], [0], [0], [1], [0, 0, 1, 1], [], []>} : vector<8x160xbf16>, vector<160x512xbf16>, vector<8x512xf32> -> vector<8x512xf32>
    %20 = arith.addf %17, %19 : vector<8x512xf32>
    %c2_24 = arith.constant 2 : index
    %c0_25 = arith.constant 0 : index
    %21 = vector.load %arg5[%c2_24, %c0_25] : memref<10x160xbf16, #tpu.memory_space<vmem>>, vector<8x160xbf16>
    %cst_26 = arith.constant dense<0.000000e+00> : vector<8x512xf32>
    %22 = tpu.matmul %21, %14, %cst_26 {dimension_numbers = #tpu.dot_dimension_numbers<[1], [0], [0], [1], [0, 0, 1, 1], [], []>} : vector<8x160xbf16>, vector<160x512xbf16>, vector<8x512xf32> -> vector<8x512xf32>
    %23 = arith.addf %20, %22 : vector<8x512xf32>
    %24 = vector.broadcast %15 : vector<1x512xf32> to vector<8x512xf32>
    %25 = arith.addf %23, %24 : vector<8x512xf32>
    %c0_27 = arith.constant 0 : index
    %c0_28 = arith.constant 0 : index
    %26 = vector.load %arg4[%c0_27, %c0_28] : memref<8x512xf32, #tpu.memory_space<vmem>>, vector<8x512xf32>
    tpu.vector_store %arg4[%c0_27, %c0_28], %25 {strides = array<i32>} : memref<8x512xf32, #tpu.memory_space<vmem>>, vector<8x512xf32>,
    return
  }
  func.func @transform_0(%arg0: i32) -> (i32, i32) {
    %c0_i32 = arith.constant 0 : i32
    %c0_i32_0 = arith.constant 0 : i32
    return %arg0, %c0_i32 : i32, i32
  }
  func.func @transform_1(%arg0: i32) -> (i32, i32, i32) {
    %c0_i32 = arith.constant 0 : i32
    %c0_i32_0 = arith.constant 0 : i32
    %c0_i32_1 = arith.constant 0 : i32
    %c0_i32_2 = arith.constant 0 : i32
    return %c0_i32, %c0_i32_0, %c0_i32_1 : i32, i32, i32
  }
  func.func @transform_2(%arg0: i32) -> (i32, i32) {
    %c0_i32 = arith.constant 0 : i32
    %c0_i32_0 = arith.constant 0 : i32
    %c0_i32_1 = arith.constant 0 : i32
    return %c0_i32, %c0_i32_0 : i32, i32
  }
  func.func @transform_3(%arg0: i32) -> (i32, i32) {
    %c0_i32 = arith.constant 0 : i32
    %c0_i32_0 = arith.constant 0 : i32
    return %arg0, %c0_i32 : i32, i32
  }
}

module attributes {stable_mosaic.version = 11 : i64} {
  func.func @_body_kernel(%arg0: i32, %arg1: i32, %arg2: memref<8x128xf32, #tpu.memory_space<vmem>>, %arg3: memref<1x3x160x128xbf16, #tpu.memory_space<vmem>>, %arg4: memref<1x1x128xf32, #tpu.memory_space<vmem>>, %arg5: memref<1x3x160x128xbf16, #tpu.memory_space<vmem>>, %arg6: memref<1x1x128xf32, #tpu.memory_space<vmem>>, %arg7: memref<3x160x128xbf16, #tpu.memory_space<vmem>>, %arg8: memref<1x128xf32, #tpu.memory_space<vmem>>, %arg9: memref<8x128xf32, #tpu.memory_space<vmem>>, %arg10: memref<10x160xbf16, #tpu.memory_space<vmem>>, %arg11: memref<10x160xbf16, #tpu.memory_space<vmem>>, %arg12: memref<8x128xf32, #tpu.memory_space<vmem>>) attributes {dimension_semantics = [#tpu.dimension_semantics<parallel>, #tpu.dimension_semantics<arbitrary>], iteration_bounds = array<i64: 2, 4>, scalar_prefetch = 0 : i64, scratch_operands = 3 : i64, tpu.core_type = #tpu.core_type<tc>, window_params = [{transform_indices = @transform_0, window_bounds = array<i64: 8, 128>}, {transform_indices = @transform_1, window_bounds = array<i64: 1, 3, 160, 128>}, {transform_indices = @transform_2, window_bounds = array<i64: 1, 1, 128>}, {transform_indices = @transform_3, window_bounds = array<i64: 1, 3, 160, 128>}, {transform_indices = @transform_4, window_bounds = array<i64: 1, 1, 128>}, {pipeline_mode = #tpu.pipeline_mode<synchronous>, transform_indices = @transform_5, window_bounds = array<i64: 3, 160, 128>}, {pipeline_mode = #tpu.pipeline_mode<synchronous>, transform_indices = @transform_6, window_bounds = array<i64: 1, 128>}, {transform_indices = @transform_7, window_bounds = array<i64: 8, 128>}]} {
    %c0_i32 = arith.constant 0 : i32
    %0 = arith.cmpi eq, %arg1, %c0_i32 : i32
    %1 = arith.extui %0 : i1 to i32
    %c0_i32_0 = arith.constant 0 : i32
    %2 = arith.cmpi ne, %1, %c0_i32_0 : i32
    scf.if %2 {
      %cst_57 = arith.constant 0.000000e+00 : bf16
      %54 = vector.broadcast %cst_57 : bf16 to vector<10x160xbf16>
      %c0_58 = arith.constant 0 : index
      %c0_59 = arith.constant 0 : index
      %55 = vector.load %arg10[%c0_58, %c0_59] : memref<10x160xbf16, #tpu.memory_space<vmem>>, vector<10x160xbf16>
      tpu.vector_store %arg10[%c0_58, %c0_59], %54 {strides = array<i32>} : memref<10x160xbf16, #tpu.memory_space<vmem>>, vector<10x160xbf16>,
      %cst_60 = arith.constant 0.000000e+00 : bf16
      %56 = vector.broadcast %cst_60 : bf16 to vector<10x160xbf16>
      %c0_61 = arith.constant 0 : index
      %c0_62 = arith.constant 0 : index
      %57 = vector.load %arg11[%c0_61, %c0_62] : memref<10x160xbf16, #tpu.memory_space<vmem>>, vector<10x160xbf16>
      tpu.vector_store %arg11[%c0_61, %c0_62], %56 {strides = array<i32>} : memref<10x160xbf16, #tpu.memory_space<vmem>>, vector<10x160xbf16>,
      %c0_63 = arith.constant 0 : index
      %c0_64 = arith.constant 0 : index
      %58 = vector.load %arg2[%c0_63, %c0_64] : memref<8x128xf32, #tpu.memory_space<vmem>>, vector<8x128xf32>
      %c0_65 = arith.constant 0 : index
      %c0_66 = arith.constant 0 : index
      %59 = vector.load %arg12[%c0_65, %c0_66] : memref<8x128xf32, #tpu.memory_space<vmem>>, vector<8x128xf32>
      tpu.vector_store %arg12[%c0_65, %c0_66], %58 {strides = array<i32>} : memref<8x128xf32, #tpu.memory_space<vmem>>, vector<8x128xf32>,
      %c0_67 = arith.constant 0 : index
      %c0_68 = arith.constant 0 : index
      %60 = vector.load %arg2[%c0_67, %c0_68] : memref<8x128xf32, #tpu.memory_space<vmem>>, vector<8x128xf32>
      %61 = arith.truncf %60 : vector<8x128xf32> to vector<8x128xbf16>
      %c1_69 = arith.constant 1 : index
      %c16_70 = arith.constant 16 : index
      %62 = vector.load %arg10[%c1_69, %c16_70] : memref<10x160xbf16, #tpu.memory_space<vmem>>, vector<8x128xbf16>
      tpu.vector_store %arg10[%c1_69, %c16_70], %61 {strides = array<i32>} : memref<10x160xbf16, #tpu.memory_space<vmem>>, vector<8x128xbf16>,
    } else {
    }
    %c0 = arith.constant 0 : index
    %c0_1 = arith.constant 0 : index
    %c0_2 = arith.constant 0 : index
    %c0_3 = arith.constant 0 : index
    %3 = vector.load %arg3[%c0, %c0_1, %c0_2, %c0_3] : memref<1x3x160x128xbf16, #tpu.memory_space<vmem>>, vector<1x1x160x128xbf16>
    %4 = vector.shape_cast %3 : vector<1x1x160x128xbf16> to vector<160x128xbf16>
    %c0_4 = arith.constant 0 : index
    %c1 = arith.constant 1 : index
    %c0_5 = arith.constant 0 : index
    %c0_6 = arith.constant 0 : index
    %5 = vector.load %arg3[%c0_4, %c1, %c0_5, %c0_6] : memref<1x3x160x128xbf16, #tpu.memory_space<vmem>>, vector<1x1x160x128xbf16>
    %6 = vector.shape_cast %5 : vector<1x1x160x128xbf16> to vector<160x128xbf16>
    %c0_7 = arith.constant 0 : index
    %c2 = arith.constant 2 : index
    %c0_8 = arith.constant 0 : index
    %c0_9 = arith.constant 0 : index
    %7 = vector.load %arg3[%c0_7, %c2, %c0_8, %c0_9] : memref<1x3x160x128xbf16, #tpu.memory_space<vmem>>, vector<1x1x160x128xbf16>
    %8 = vector.shape_cast %7 : vector<1x1x160x128xbf16> to vector<160x128xbf16>
    %c0_10 = arith.constant 0 : index
    %c0_11 = arith.constant 0 : index
    %c0_12 = arith.constant 0 : index
    %9 = vector.load %arg4[%c0_10, %c0_11, %c0_12] : memref<1x1x128xf32, #tpu.memory_space<vmem>>, vector<1x1x128xf32>
    %10 = vector.shape_cast %9 : vector<1x1x128xf32> to vector<1x128xf32>
    %c0_13 = arith.constant 0 : index
    %c0_14 = arith.constant 0 : index
    %11 = vector.load %arg10[%c0_13, %c0_14] : memref<10x160xbf16, #tpu.memory_space<vmem>>, vector<8x160xbf16>
    %cst = arith.constant dense<0.000000e+00> : vector<8x128xf32>
    %12 = tpu.matmul %11, %4, %cst {dimension_numbers = #tpu.dot_dimension_numbers<[1], [0], [0], [1], [0, 0, 1, 1], [], []>} : vector<8x160xbf16>, vector<160x128xbf16>, vector<8x128xf32> -> vector<8x128xf32>
    %c1_15 = arith.constant 1 : index
    %c0_16 = arith.constant 0 : index
    %13 = vector.load %arg10[%c1_15, %c0_16] : memref<10x160xbf16, #tpu.memory_space<vmem>>, vector<8x160xbf16>
    %cst_17 = arith.constant dense<0.000000e+00> : vector<8x128xf32>
    %14 = tpu.matmul %13, %6, %cst_17 {dimension_numbers = #tpu.dot_dimension_numbers<[1], [0], [0], [1], [0, 0, 1, 1], [], []>} : vector<8x160xbf16>, vector<160x128xbf16>, vector<8x128xf32> -> vector<8x128xf32>
    %15 = arith.addf %12, %14 : vector<8x128xf32>
    %c2_18 = arith.constant 2 : index
    %c0_19 = arith.constant 0 : index
    %16 = vector.load %arg10[%c2_18, %c0_19] : memref<10x160xbf16, #tpu.memory_space<vmem>>, vector<8x160xbf16>
    %cst_20 = arith.constant dense<0.000000e+00> : vector<8x128xf32>
    %17 = tpu.matmul %16, %8, %cst_20 {dimension_numbers = #tpu.dot_dimension_numbers<[1], [0], [0], [1], [0, 0, 1, 1], [], []>} : vector<8x160xbf16>, vector<160x128xbf16>, vector<8x128xf32> -> vector<8x128xf32>
    %18 = arith.addf %15, %17 : vector<8x128xf32>
    %19 = vector.broadcast %10 : vector<1x128xf32> to vector<8x128xf32>
    %20 = arith.addf %18, %19 : vector<8x128xf32>
    %cst_21 = arith.constant 0.000000e+00 : f32
    %21 = vector.broadcast %cst_21 : f32 to vector<8x128xf32>
    %22 = arith.maximumf %20, %21 : vector<8x128xf32>
    %23 = arith.truncf %22 : vector<8x128xf32> to vector<8x128xbf16>
    %c1_22 = arith.constant 1 : index
    %c16 = arith.constant 16 : index
    %24 = vector.load %arg11[%c1_22, %c16] : memref<10x160xbf16, #tpu.memory_space<vmem>>, vector<8x128xbf16>
    tpu.vector_store %arg11[%c1_22, %c16], %23 {strides = array<i32>} : memref<10x160xbf16, #tpu.memory_space<vmem>>, vector<8x128xbf16>,
    %c0_23 = arith.constant 0 : index
    %c0_24 = arith.constant 0 : index
    %c0_25 = arith.constant 0 : index
    %c0_26 = arith.constant 0 : index
    %25 = vector.load %arg5[%c0_23, %c0_24, %c0_25, %c0_26] : memref<1x3x160x128xbf16, #tpu.memory_space<vmem>>, vector<1x1x160x128xbf16>
    %26 = vector.shape_cast %25 : vector<1x1x160x128xbf16> to vector<160x128xbf16>
    %c0_27 = arith.constant 0 : index
    %c1_28 = arith.constant 1 : index
    %c0_29 = arith.constant 0 : index
    %c0_30 = arith.constant 0 : index
    %27 = vector.load %arg5[%c0_27, %c1_28, %c0_29, %c0_30] : memref<1x3x160x128xbf16, #tpu.memory_space<vmem>>, vector<1x1x160x128xbf16>
    %28 = vector.shape_cast %27 : vector<1x1x160x128xbf16> to vector<160x128xbf16>
    %c0_31 = arith.constant 0 : index
    %c2_32 = arith.constant 2 : index
    %c0_33 = arith.constant 0 : index
    %c0_34 = arith.constant 0 : index
    %29 = vector.load %arg5[%c0_31, %c2_32, %c0_33, %c0_34] : memref<1x3x160x128xbf16, #tpu.memory_space<vmem>>, vector<1x1x160x128xbf16>
    %30 = vector.shape_cast %29 : vector<1x1x160x128xbf16> to vector<160x128xbf16>
    %c0_35 = arith.constant 0 : index
    %c0_36 = arith.constant 0 : index
    %c0_37 = arith.constant 0 : index
    %31 = vector.load %arg6[%c0_35, %c0_36, %c0_37] : memref<1x1x128xf32, #tpu.memory_space<vmem>>, vector<1x1x128xf32>
    %32 = vector.shape_cast %31 : vector<1x1x128xf32> to vector<1x128xf32>
    %c0_38 = arith.constant 0 : index
    %c0_39 = arith.constant 0 : index
    %33 = vector.load %arg11[%c0_38, %c0_39] : memref<10x160xbf16, #tpu.memory_space<vmem>>, vector<8x160xbf16>
    %cst_40 = arith.constant dense<0.000000e+00> : vector<8x128xf32>
    %34 = tpu.matmul %33, %26, %cst_40 {dimension_numbers = #tpu.dot_dimension_numbers<[1], [0], [0], [1], [0, 0, 1, 1], [], []>} : vector<8x160xbf16>, vector<160x128xbf16>, vector<8x128xf32> -> vector<8x128xf32>
    %c1_41 = arith.constant 1 : index
    %c0_42 = arith.constant 0 : index
    %35 = vector.load %arg11[%c1_41, %c0_42] : memref<10x160xbf16, #tpu.memory_space<vmem>>, vector<8x160xbf16>
    %cst_43 = arith.constant dense<0.000000e+00> : vector<8x128xf32>
    %36 = tpu.matmul %35, %28, %cst_43 {dimension_numbers = #tpu.dot_dimension_numbers<[1], [0], [0], [1], [0, 0, 1, 1], [], []>} : vector<8x160xbf16>, vector<160x128xbf16>, vector<8x128xf32> -> vector<8x128xf32>
    %37 = arith.addf %34, %36 : vector<8x128xf32>
    %c2_44 = arith.constant 2 : index
    %c0_45 = arith.constant 0 : index
    %38 = vector.load %arg11[%c2_44, %c0_45] : memref<10x160xbf16, #tpu.memory_space<vmem>>, vector<8x160xbf16>
    %cst_46 = arith.constant dense<0.000000e+00> : vector<8x128xf32>
    %39 = tpu.matmul %38, %30, %cst_46 {dimension_numbers = #tpu.dot_dimension_numbers<[1], [0], [0], [1], [0, 0, 1, 1], [], []>} : vector<8x160xbf16>, vector<160x128xbf16>, vector<8x128xf32> -> vector<8x128xf32>
    %40 = arith.addf %37, %39 : vector<8x128xf32>
    %41 = vector.broadcast %32 : vector<1x128xf32> to vector<8x128xf32>
    %42 = arith.addf %40, %41 : vector<8x128xf32>
    %c0_47 = arith.constant 0 : index
    %c0_48 = arith.constant 0 : index
    %43 = vector.load %arg12[%c0_47, %c0_48] : memref<8x128xf32, #tpu.memory_space<vmem>>, vector<8x128xf32>
    %cst_49 = arith.constant 1.000000e-01 : f32
    %44 = vector.broadcast %cst_49 : f32 to vector<8x128xf32>
    %45 = arith.mulf %42, %44 : vector<8x128xf32>
    %46 = arith.addf %43, %45 : vector<8x128xf32>
    %c0_50 = arith.constant 0 : index
    %c0_51 = arith.constant 0 : index
    %47 = vector.load %arg12[%c0_50, %c0_51] : memref<8x128xf32, #tpu.memory_space<vmem>>, vector<8x128xf32>
    tpu.vector_store %arg12[%c0_50, %c0_51], %46 {strides = array<i32>} : memref<8x128xf32, #tpu.memory_space<vmem>>, vector<8x128xf32>,
    %c0_52 = arith.constant 0 : index
    %c0_53 = arith.constant 0 : index
    %48 = vector.load %arg12[%c0_52, %c0_53] : memref<8x128xf32, #tpu.memory_space<vmem>>, vector<8x128xf32>
    %49 = arith.truncf %48 : vector<8x128xf32> to vector<8x128xbf16>
    %c1_54 = arith.constant 1 : index
    %c16_55 = arith.constant 16 : index
    %50 = vector.load %arg10[%c1_54, %c16_55] : memref<10x160xbf16, #tpu.memory_space<vmem>>, vector<8x128xbf16>
    tpu.vector_store %arg10[%c1_54, %c16_55], %49 {strides = array<i32>} : memref<10x160xbf16, #tpu.memory_space<vmem>>, vector<8x128xbf16>,
    %c3_i32 = arith.constant 3 : i32
    %51 = arith.cmpi eq, %arg1, %c3_i32 : i32
    %52 = arith.extui %51 : i1 to i32
    %c0_i32_56 = arith.constant 0 : i32
    %53 = arith.cmpi ne, %52, %c0_i32_56 : i32
    scf.if %53 {
      %c0_57 = arith.constant 0 : index
      %c0_58 = arith.constant 0 : index
      %c0_59 = arith.constant 0 : index
      %54 = vector.load %arg7[%c0_57, %c0_58, %c0_59] : memref<3x160x128xbf16, #tpu.memory_space<vmem>>, vector<1x160x128xbf16>
      %55 = vector.shape_cast %54 : vector<1x160x128xbf16> to vector<160x128xbf16>
      %c1_60 = arith.constant 1 : index
      %c0_61 = arith.constant 0 : index
      %c0_62 = arith.constant 0 : index
      %56 = vector.load %arg7[%c1_60, %c0_61, %c0_62] : memref<3x160x128xbf16, #tpu.memory_space<vmem>>, vector<1x160x128xbf16>
      %57 = vector.shape_cast %56 : vector<1x160x128xbf16> to vector<160x128xbf16>
      %c2_63 = arith.constant 2 : index
      %c0_64 = arith.constant 0 : index
      %c0_65 = arith.constant 0 : index
      %58 = vector.load %arg7[%c2_63, %c0_64, %c0_65] : memref<3x160x128xbf16, #tpu.memory_space<vmem>>, vector<1x160x128xbf16>
      %59 = vector.shape_cast %58 : vector<1x160x128xbf16> to vector<160x128xbf16>
      %c0_66 = arith.constant 0 : index
      %c0_67 = arith.constant 0 : index
      %60 = vector.load %arg8[%c0_66, %c0_67] : memref<1x128xf32, #tpu.memory_space<vmem>>, vector<1x128xf32>
      %c0_68 = arith.constant 0 : index
      %c0_69 = arith.constant 0 : index
      %61 = vector.load %arg10[%c0_68, %c0_69] : memref<10x160xbf16, #tpu.memory_space<vmem>>, vector<8x160xbf16>
      %cst_70 = arith.constant dense<0.000000e+00> : vector<8x128xf32>
      %62 = tpu.matmul %61, %55, %cst_70 {dimension_numbers = #tpu.dot_dimension_numbers<[1], [0], [0], [1], [0, 0, 1, 1], [], []>} : vector<8x160xbf16>, vector<160x128xbf16>, vector<8x128xf32> -> vector<8x128xf32>
      %c1_71 = arith.constant 1 : index
      %c0_72 = arith.constant 0 : index
      %63 = vector.load %arg10[%c1_71, %c0_72] : memref<10x160xbf16, #tpu.memory_space<vmem>>, vector<8x160xbf16>
      %cst_73 = arith.constant dense<0.000000e+00> : vector<8x128xf32>
      %64 = tpu.matmul %63, %57, %cst_73 {dimension_numbers = #tpu.dot_dimension_numbers<[1], [0], [0], [1], [0, 0, 1, 1], [], []>} : vector<8x160xbf16>, vector<160x128xbf16>, vector<8x128xf32> -> vector<8x128xf32>
      %65 = arith.addf %62, %64 : vector<8x128xf32>
      %c2_74 = arith.constant 2 : index
      %c0_75 = arith.constant 0 : index
      %66 = vector.load %arg10[%c2_74, %c0_75] : memref<10x160xbf16, #tpu.memory_space<vmem>>, vector<8x160xbf16>
      %cst_76 = arith.constant dense<0.000000e+00> : vector<8x128xf32>
      %67 = tpu.matmul %66, %59, %cst_76 {dimension_numbers = #tpu.dot_dimension_numbers<[1], [0], [0], [1], [0, 0, 1, 1], [], []>} : vector<8x160xbf16>, vector<160x128xbf16>, vector<8x128xf32> -> vector<8x128xf32>
      %68 = arith.addf %65, %67 : vector<8x128xf32>
      %69 = vector.broadcast %60 : vector<1x128xf32> to vector<8x128xf32>
      %70 = arith.addf %68, %69 : vector<8x128xf32>
      %c0_77 = arith.constant 0 : index
      %c0_78 = arith.constant 0 : index
      %71 = vector.load %arg2[%c0_77, %c0_78] : memref<8x128xf32, #tpu.memory_space<vmem>>, vector<8x128xf32>
      %72 = arith.addf %70, %71 : vector<8x128xf32>
      %c0_79 = arith.constant 0 : index
      %c0_80 = arith.constant 0 : index
      %73 = vector.load %arg9[%c0_79, %c0_80] : memref<8x128xf32, #tpu.memory_space<vmem>>, vector<8x128xf32>
      tpu.vector_store %arg9[%c0_79, %c0_80], %72 {strides = array<i32>} : memref<8x128xf32, #tpu.memory_space<vmem>>, vector<8x128xf32>,
    } else {
    }
    return
  }
  func.func @transform_0(%arg0: i32, %arg1: i32) -> (i32, i32) {
    %c0_i32 = arith.constant 0 : i32
    %c0_i32_0 = arith.constant 0 : i32
    return %arg0, %c0_i32 : i32, i32
  }
  func.func @transform_1(%arg0: i32, %arg1: i32) -> (i32, i32, i32, i32) {
    %c0_i32 = arith.constant 0 : i32
    %c0_i32_0 = arith.constant 0 : i32
    %c0_i32_1 = arith.constant 0 : i32
    %c0_i32_2 = arith.constant 0 : i32
    return %arg1, %c0_i32, %c0_i32_0, %c0_i32_1 : i32, i32, i32, i32
  }
  func.func @transform_2(%arg0: i32, %arg1: i32) -> (i32, i32, i32) {
    %c0_i32 = arith.constant 0 : i32
    %c0_i32_0 = arith.constant 0 : i32
    %c0_i32_1 = arith.constant 0 : i32
    return %arg1, %c0_i32, %c0_i32_0 : i32, i32, i32
  }
  func.func @transform_3(%arg0: i32, %arg1: i32) -> (i32, i32, i32, i32) {
    %c0_i32 = arith.constant 0 : i32
    %c0_i32_0 = arith.constant 0 : i32
    %c0_i32_1 = arith.constant 0 : i32
    %c0_i32_2 = arith.constant 0 : i32
    return %arg1, %c0_i32, %c0_i32_0, %c0_i32_1 : i32, i32, i32, i32
  }
  func.func @transform_4(%arg0: i32, %arg1: i32) -> (i32, i32, i32) {
    %c0_i32 = arith.constant 0 : i32
    %c0_i32_0 = arith.constant 0 : i32
    %c0_i32_1 = arith.constant 0 : i32
    return %arg1, %c0_i32, %c0_i32_0 : i32, i32, i32
  }
  func.func @transform_5(%arg0: i32, %arg1: i32) -> (i32, i32, i32) {
    %c0_i32 = arith.constant 0 : i32
    %c0_i32_0 = arith.constant 0 : i32
    %c0_i32_1 = arith.constant 0 : i32
    %c0_i32_2 = arith.constant 0 : i32
    return %c0_i32, %c0_i32_0, %c0_i32_1 : i32, i32, i32
  }
  func.func @transform_6(%arg0: i32, %arg1: i32) -> (i32, i32) {
    %c0_i32 = arith.constant 0 : i32
    %c0_i32_0 = arith.constant 0 : i32
    %c0_i32_1 = arith.constant 0 : i32
    return %c0_i32, %c0_i32_0 : i32, i32
  }
  func.func @transform_7(%arg0: i32, %arg1: i32) -> (i32, i32) {
    %c0_i32 = arith.constant 0 : i32
    %c0_i32_0 = arith.constant 0 : i32
    return %arg0, %c0_i32 : i32, i32
  }
}

module attributes {stable_mosaic.version = 11 : i64} {
  func.func @_conv_kernel(%arg0: i32, %arg1: memref<16x256xf32, #tpu.memory_space<vmem>>, %arg2: memref<3x288x48xbf16, #tpu.memory_space<vmem>>, %arg3: memref<1x48xf32, #tpu.memory_space<vmem>>, %arg4: memref<16x48xf32, #tpu.memory_space<vmem>>, %arg5: memref<18x288xbf16, #tpu.memory_space<vmem>>) attributes {dimension_semantics = [#tpu.dimension_semantics<parallel>], iteration_bounds = array<i64: 2>, scalar_prefetch = 0 : i64, scratch_operands = 1 : i64, tpu.core_type = #tpu.core_type<tc>, window_params = [{transform_indices = @transform_0, window_bounds = array<i64: 16, 256>}, {pipeline_mode = #tpu.pipeline_mode<synchronous>, transform_indices = @transform_1, window_bounds = array<i64: 3, 288, 48>}, {pipeline_mode = #tpu.pipeline_mode<synchronous>, transform_indices = @transform_2, window_bounds = array<i64: 1, 48>}, {transform_indices = @transform_3, window_bounds = array<i64: 16, 48>}]} {
    %cst = arith.constant 0.000000e+00 : bf16
    %0 = vector.broadcast %cst : bf16 to vector<1x288xbf16>
    %cst_0 = arith.constant 0.000000e+00 : bf16
    %1 = vector.broadcast %cst_0 : bf16 to vector<18x16xbf16>
    %c0 = arith.constant 0 : index
    %c0_1 = arith.constant 0 : index
    %2 = vector.load %arg5[%c0, %c0_1] : memref<18x288xbf16, #tpu.memory_space<vmem>>, vector<1x288xbf16>
    tpu.vector_store %arg5[%c0, %c0_1], %0 {strides = array<i32>} : memref<18x288xbf16, #tpu.memory_space<vmem>>, vector<1x288xbf16>,
    %c17 = arith.constant 17 : index
    %c0_2 = arith.constant 0 : index
    %3 = vector.load %arg5[%c17, %c0_2] : memref<18x288xbf16, #tpu.memory_space<vmem>>, vector<1x288xbf16>
    tpu.vector_store %arg5[%c17, %c0_2], %0 {strides = array<i32>} : memref<18x288xbf16, #tpu.memory_space<vmem>>, vector<1x288xbf16>,
    %c0_3 = arith.constant 0 : index
    %c0_4 = arith.constant 0 : index
    %4 = vector.load %arg5[%c0_3, %c0_4] : memref<18x288xbf16, #tpu.memory_space<vmem>>, vector<18x16xbf16>
    tpu.vector_store %arg5[%c0_3, %c0_4], %1 {strides = array<i32>} : memref<18x288xbf16, #tpu.memory_space<vmem>>, vector<18x16xbf16>,
    %c0_5 = arith.constant 0 : index
    %c272 = arith.constant 272 : index
    %5 = vector.load %arg5[%c0_5, %c272] : memref<18x288xbf16, #tpu.memory_space<vmem>>, vector<18x16xbf16>
    tpu.vector_store %arg5[%c0_5, %c272], %1 {strides = array<i32>} : memref<18x288xbf16, #tpu.memory_space<vmem>>, vector<18x16xbf16>,
    %c0_6 = arith.constant 0 : index
    %c0_7 = arith.constant 0 : index
    %6 = vector.load %arg1[%c0_6, %c0_7] : memref<16x256xf32, #tpu.memory_space<vmem>>, vector<16x256xf32>
    %7 = arith.truncf %6 : vector<16x256xf32> to vector<16x256xbf16>
    %c1 = arith.constant 1 : index
    %c16 = arith.constant 16 : index
    %8 = vector.load %arg5[%c1, %c16] : memref<18x288xbf16, #tpu.memory_space<vmem>>, vector<16x256xbf16>
    tpu.vector_store %arg5[%c1, %c16], %7 {strides = array<i32>} : memref<18x288xbf16, #tpu.memory_space<vmem>>, vector<16x256xbf16>,
    %c0_8 = arith.constant 0 : index
    %c0_9 = arith.constant 0 : index
    %c0_10 = arith.constant 0 : index
    %9 = vector.load %arg2[%c0_8, %c0_9, %c0_10] : memref<3x288x48xbf16, #tpu.memory_space<vmem>>, vector<1x288x48xbf16>
    %10 = vector.shape_cast %9 : vector<1x288x48xbf16> to vector<288x48xbf16>
    %c1_11 = arith.constant 1 : index
    %c0_12 = arith.constant 0 : index
    %c0_13 = arith.constant 0 : index
    %11 = vector.load %arg2[%c1_11, %c0_12, %c0_13] : memref<3x288x48xbf16, #tpu.memory_space<vmem>>, vector<1x288x48xbf16>
    %12 = vector.shape_cast %11 : vector<1x288x48xbf16> to vector<288x48xbf16>
    %c2 = arith.constant 2 : index
    %c0_14 = arith.constant 0 : index
    %c0_15 = arith.constant 0 : index
    %13 = vector.load %arg2[%c2, %c0_14, %c0_15] : memref<3x288x48xbf16, #tpu.memory_space<vmem>>, vector<1x288x48xbf16>
    %14 = vector.shape_cast %13 : vector<1x288x48xbf16> to vector<288x48xbf16>
    %c0_16 = arith.constant 0 : index
    %c0_17 = arith.constant 0 : index
    %15 = vector.load %arg3[%c0_16, %c0_17] : memref<1x48xf32, #tpu.memory_space<vmem>>, vector<1x48xf32>
    %c0_18 = arith.constant 0 : index
    %c0_19 = arith.constant 0 : index
    %16 = vector.load %arg5[%c0_18, %c0_19] : memref<18x288xbf16, #tpu.memory_space<vmem>>, vector<16x288xbf16>
    %cst_20 = arith.constant dense<0.000000e+00> : vector<16x48xf32>
    %17 = tpu.matmul %16, %10, %cst_20 {dimension_numbers = #tpu.dot_dimension_numbers<[1], [0], [0], [1], [0, 0, 1, 1], [], []>} : vector<16x288xbf16>, vector<288x48xbf16>, vector<16x48xf32> -> vector<16x48xf32>
    %c1_21 = arith.constant 1 : index
    %c0_22 = arith.constant 0 : index
    %18 = vector.load %arg5[%c1_21, %c0_22] : memref<18x288xbf16, #tpu.memory_space<vmem>>, vector<16x288xbf16>
    %cst_23 = arith.constant dense<0.000000e+00> : vector<16x48xf32>
    %19 = tpu.matmul %18, %12, %cst_23 {dimension_numbers = #tpu.dot_dimension_numbers<[1], [0], [0], [1], [0, 0, 1, 1], [], []>} : vector<16x288xbf16>, vector<288x48xbf16>, vector<16x48xf32> -> vector<16x48xf32>
    %20 = arith.addf %17, %19 : vector<16x48xf32>
    %c2_24 = arith.constant 2 : index
    %c0_25 = arith.constant 0 : index
    %21 = vector.load %arg5[%c2_24, %c0_25] : memref<18x288xbf16, #tpu.memory_space<vmem>>, vector<16x288xbf16>
    %cst_26 = arith.constant dense<0.000000e+00> : vector<16x48xf32>
    %22 = tpu.matmul %21, %14, %cst_26 {dimension_numbers = #tpu.dot_dimension_numbers<[1], [0], [0], [1], [0, 0, 1, 1], [], []>} : vector<16x288xbf16>, vector<288x48xbf16>, vector<16x48xf32> -> vector<16x48xf32>
    %23 = arith.addf %20, %22 : vector<16x48xf32>
    %24 = vector.broadcast %15 : vector<1x48xf32> to vector<16x48xf32>
    %25 = arith.addf %23, %24 : vector<16x48xf32>
    %c0_27 = arith.constant 0 : index
    %c0_28 = arith.constant 0 : index
    %26 = vector.load %arg4[%c0_27, %c0_28] : memref<16x48xf32, #tpu.memory_space<vmem>>, vector<16x48xf32>
    tpu.vector_store %arg4[%c0_27, %c0_28], %25 {strides = array<i32>} : memref<16x48xf32, #tpu.memory_space<vmem>>, vector<16x48xf32>,
    return
  }
  func.func @transform_0(%arg0: i32) -> (i32, i32) {
    %c0_i32 = arith.constant 0 : i32
    %c0_i32_0 = arith.constant 0 : i32
    return %arg0, %c0_i32 : i32, i32
  }
  func.func @transform_1(%arg0: i32) -> (i32, i32, i32) {
    %c0_i32 = arith.constant 0 : i32
    %c0_i32_0 = arith.constant 0 : i32
    %c0_i32_1 = arith.constant 0 : i32
    %c0_i32_2 = arith.constant 0 : i32
    return %c0_i32, %c0_i32_0, %c0_i32_1 : i32, i32, i32
  }
  func.func @transform_2(%arg0: i32) -> (i32, i32) {
    %c0_i32 = arith.constant 0 : i32
    %c0_i32_0 = arith.constant 0 : i32
    %c0_i32_1 = arith.constant 0 : i32
    return %c0_i32, %c0_i32_0 : i32, i32
  }
  func.func @transform_3(%arg0: i32) -> (i32, i32) {
    %c0_i32 = arith.constant 0 : i32
    %c0_i32_0 = arith.constant 0 : i32
    return %arg0, %c0_i32 : i32, i32
  }
}

</mosaic_0001>

<bundles_post_ra>
// kernel: edsr_forward.4
= control target key start
LH: loop header
LB: loop body
LE: loop exit
PB: predicated region body
PF: predicated region fallthrough
CT: control target
= control target key end

     0   :  { %s682_s18 = smov 0   ;;  %s747_s0 = inlined_call_operand.vmem [shape: f32[16,24], index: 0, kind: input, shape index: {}]   ;;  %s748_s1 = inlined_call_operand.vmem [shape: f32[1,24], index: 1, kind: input, shape index: {}]   ;;  %s749_s2 = inlined_call_operand.vmem [shape: f32[1,24], index: 2, kind: input, shape index: {}]   ;;  %s750_s3 = inlined_call_operand.vmem [shape: bf16[3,30,128], index: 3, kind: input, shape index: {}]   ;;  %s751_s4 = inlined_call_operand.vmem [shape: f32[1,128], index: 4, kind: input, shape index: {}]   ;;  %s752_s5 = inlined_call_operand.vmem [shape: f32[16,128], index: 5, kind: output, shape index: {}]  }
   0x1 LB: > { %s554_s19 = sadd.s32 4294967295, %s646_s18   ;;  %p558_p0 = scmp.ge.s32.totalorder %s646_s18, 1  ;;  %s646_s18 = sphi %s682_s18, %s15_s18  }
   0x2   : > { %p186_p1 = scmp.lt.s32.totalorder %s646_s18, 3 }
   0x4   : > { %p187_p2 = pnand %p558_p0, %p186_p1 }
   0x5   : > { %p212_p3 = scmp.lt.s32.totalorder (!%p187_p2), %s554_s19, 1  ;;  %vm238_vm0 = vcmask (!%p187_p2), 237568   ;;  %vm239_vm1 = vsmask.f32 (!%p187_p2), 256  ;;  %v241_v0 = vld [vmem:[#allocation2] sm:$0x1] (!%p187_p2) }
   0x6   : > { %190 = sbr.rel (%p187_p2) target bundleno = 390 (0x186), region = 40  ;;  %vm249_vm2 = vcmask (!%p187_p2), 19456   ;;  %v561_v1 = vld [vmem:[%s748_s1] ss:$0 sm:$0xff] (!%p187_p2)  ;;  %vm240_vm3 = vmand (!%p187_p2), %vm238_vm0, %vm239_vm1  ;;  %vm244_vm4 = vsmask.f32 (!%p187_p2), 7938 }
   0x7   : > { %v246_v2 = vld [vmem:[#allocation2 + $0x4] sm:$0x1] (!%p187_p2)  ;;  %v242_v3 = vsel (!%p187_p2), %vm240_vm3, 0, %v241_v0  ;;  %vm245_vm5 = vmand (!%p187_p2), %vm238_vm0, %vm244_vm4  ;;  %vm251_vm6 = vcmask (!%p187_p2), 16384   ;;  %vm253_vm7 = vcmask (!%p187_p2), 240856   ;;  %vm255_vm8 = vcmask (!%p187_p2), 237784  }
   0x8   : > { %v562_v4 = vld [vmem:[%s749_s2] ss:$0 sm:$0xff] (!%p187_p2)  ;;  %243 = vst [vmem:[#allocation2] sm:$0x1] (!%p187_p2), %v242_v3  ;;  %v247_v5 = vsel (!%p187_p2), %vm245_vm5, 0, %v246_v2  ;;  %v648_v6 = vmov (!%p187_p2), 0  }
   0x9   : > { %248 = vst [vmem:[#allocation2 + $0x4] sm:$0x1] (!%p187_p2), %v247_v5  ;;  %250 = vst.msk [vmem:[#allocation2] sm:$0xf] (!%p187_p2), %vm249_vm2, %v648_v6  ;;  %v632_v8 = vld [vmem:[%s750_s3] sm:$0xff] (!%p187_p2)   ;;  %v649_v10 = vmov (!%p187_p2), 0.0  }
   0xa   : > { %252 = vst.msk [vmem:[#allocation2 + $0x4] sm:$0x1] (!%p187_p2), %vm251_vm6, %v648_v6  ;;  %604 = vmatprep.subr.bf16.mxu1 (!%p187_p2), %v649_v10  ;;  %596 = vmatprep.subr.bf16.mxu0 (!%p187_p2), %v649_v10  ;;  %v633_v12 = vld [vmem:[%s750_s3 + $0x8] sm:$0x7f] (!%p187_p2)   ;;  %vm329_vm9 = vcmask (!%p187_p2), 1046528   ;;  %vm650_vm10 = vmmov (!%p187_p2), 0  }
   0xb   : > { %254 = vst.msk [vmem:[#allocation2] sm:$0xf] (!%p187_p2), %vm253_vm7, %v648_v6  ;;  %605 = vmatpush3.bf16.msra.mxu1 (!%p187_p2), %v632_v8  ;;  %v388_v14 = vsel (!%p187_p2), %vm329_vm9, %v633_v12, 0  ;;  %608 = vmatprep.mubr.msk.bf16.mxu1 (!%p187_p2), %vm650_vm10, %v649_v10  ;;  %v636_v19 = vld [vmem:[%s750_s3 + $0x10] sm:$0xff] (!%p187_p2)   ;;  %s651_s9 = smov (!%p187_p2), 3   ;;  %vm275_vm11 = vcmask (!%p187_p2), 216088  }
   0xc   : > { %256 = vst.msk [vmem:[#allocation2 + $0x4] sm:$0x1] (!%p187_p2), %vm255_vm8, %v648_v6  ;;  %606 = vmatprep.subr.bf16.mxu1 (!%p187_p2), %v649_v10  ;;  %600 = vmatprep.mubr.msk.bf16.mxu0 (!%p187_p2), %vm650_vm10, %v649_v10  ;;  %v637_v21 = vld [vmem:[%s750_s3 + $0x18] sm:$0x7f] (!%p187_p2)   ;;  %vm276_vm12 = vmand (!%p187_p2), %vm275_vm11, %vm244_vm4  ;;  %vm280_vm13 = vcmask (!%p187_p2), 213016   ;;  %vm325_vm15 = vcmask (!%p187_p2), 244736  }
   0xd   : > { %s754_s19 = smov (!%p212_p3, %s554_s19), 1  ;;  %597 = vmatpush3.bf16.msra.mxu0 %v636_v19  ;;  %v331_v22 = vsel %vm329_vm9, %v637_v21, 0  ;;  %vm281_vm14 = vmand %vm280_vm13, %vm239_vm1  ;;  %v638_v35 = vld [vmem:[%s750_s3 + $0x20] sm:$0xff]   ;;  %v639_v37 = vld [vmem:[%s750_s3 + $0x28] sm:$0x7f]  }
   0xe   : > { %s559_s22 = sshll.u32 %s754_s19, 3  ;;  %598 = vmatprep.subr.bf16.mxu0 %v649_v10  ;;  %v450_v40 = vsel %vm329_vm9, %v639_v37, 0  ;;  %v583_v51 = vld [vmem:[%s751_s4] ss:$0 sm:$0xff] }
   0xf   : > { %s215_s27 = scalar_lea.vmem %s747_s0, %s559_s22  ;;  %607 = vmatpush3.bf16.msra.mxu1 %v388_v14  ;;  %s219_s23 = scalar_lea.vmem %s752_s5, %s559_s22 }
  0x10   : > { %v221_v7 = vld [vmem:[%s215_s27] sm:$0xff] }
  0x11   : > { %v229_v9 = vmul.f32 %v561_v1, %v221_v7  ;;  %599 = vmatpush3.bf16.msra.mxu0 %v331_v22 }
  0x12   : > { %612 = vmatprep.subr.bf16.mxu0 %v649_v10  ;;  %v277_v23 = vld [vmem:[#allocation2] sm:$0xf] }
  0x13   : > { %v237_v11 = vadd.f32 %v562_v4, %v229_v9  ;;  %v282_v26 = vld [vmem:[#allocation2 + $0x4] sm:$0x1] }
  0x15   : > { %v586_v13 = vpack.c.bf16 %v237_v11, %v237_v11 }
  0x17   : > { %v262_v15 = vshrl.u32 %v586_v13, 16  ;;  %v265_v16 = vshll.u32 %v586_v13, 16 }
  0x19   : > { %v264_v17 = vrot.slane %v262_v15, 7 }
  0x1b   : > { %v267_v18 = vor.u32 %v265_v16, %v264_v17  ;;  %v268_v20 = vrot.slane %v264_v17, 4 }
  0x1d   : > { %269 = vrot.lane.b32.xlu0 %v267_v18, %s651_s9 }
  0x21   : > { %271 = vrot.lane.b32.xlu0 %v268_v20, %s651_s9 }
  0x8f   : > { %v270_v24 = vpop.permute.xlu0 %269 }
  0x90   : > { %v278_v25 = vsel %vm276_vm12, %v270_v24, %v277_v23 }
  0x91   : > { %279 = vst [vmem:[#allocation2] sm:$0xf] %v278_v25 }
  0x93   : > { %v272_v27 = vpop.permute.xlu0 %271 }
  0x94   : > { %v283_v28 = vsel %vm281_vm14, %v272_v27, %v282_v26 }
  0x95   : > { %284 = vst [vmem:[#allocation2 + $0x4] sm:$0x1] %v283_v28 }
  0x98   : > { %v300_v29 = vld [vmem:[#allocation2] sm:$0xf] }
  0x99   : > { %609 = vmatmul.mubr.msk.bf16.vlgmr.msra.gmra.mrb[0].mxu1 %vm325_vm15, %v300_v29  ;;  %v430_v38 = vld [vmem:[#allocation2] sm:$0xe] }
  0x9c   : > { %v301_v30 = vld [vmem:[#allocation2 + $0x4] sm:$0x1] }
  0x9d   : > { %v572_v31 = vcombine.low %v300_v29, %v301_v30  ;;  %v579_v39 = vcombine.low %v430_v38, %v301_v30 }
  0x9f   : > { %v310_v32 = vshll.u32 %v572_v31, 16  ;;  %v308_v33 = vshrl.u32 %v572_v31, 16  ;;  %v434_v41 = vrot.slane %v579_v39, 1 }
  0xa1   : > { %v312_v34 = vrot.slane %v310_v32, 1 }
  0xa3   : > { %v313_v36 = vor.u32 %v312_v34, %v308_v33 }
  0xa5   : > { %601 = vmatmul.mubr.msk.bf16.vlgmr.msra.gmra.mrb[0].mxu0 %vm325_vm15, %v313_v36 }
  0xa6   : > { %613 = vmatpush3.bf16.msra.mxu0 %v638_v35  ;;  %616 = vmatprep.mubr.msk.bf16.mxu0 %vm650_vm10, %v649_v10 }
  0xa7   : > { %614 = vmatprep.subr.bf16.mxu0 %v649_v10 }
  0xaa   : > { %615 = vmatpush3.bf16.msra.mxu0 %v450_v40 }
  0xad   : > { %617 = vmatmul.mubr.msk.bf16.vlgmr.msra.gmra.mrb[4].mxu0 %vm325_vm15, %v434_v41 }
 0x16c   : > { %v424_v42 = vpop.f32.mrb[0].mxu1 }
 0x16d   : > { %v610_v43 = vpop.f32.mrb[1].mxu1 }
 0x16e   : > { %v427_v44 = vpop.f32.mrb[2].mxu1 }
 0x16f   : > { %v611_v45 = vpop.f32.mrb[3].mxu1 }
 0x178   : > { %v367_v46 = vpop.f32.mrb[0].mxu0 }
 0x179   : > { %v425_v47 = vadd.f32 %v424_v42, %v367_v46  ;;  %v602_v48 = vpop.f32.mrb[1].mxu0 }
 0x17a   : > { %v370_v49 = vpop.f32.mrb[2].mxu0 }
 0x17b   : > { %v603_v50 = vpop.f32.mrb[3].mxu0 }
 0x180   : > { %v486_v52 = vpop.f32.mrb[4].mxu0 }
 0x181   : > { %v492_v53 = vadd.f32 %v486_v52, %v425_v47  ;;  %v618_v54 = vpop.f32.mrb[5].mxu0 }
 0x182   : > { %v489_v55 = vpop.f32.mrb[6].mxu0 }
 0x183   : > { %v499_v56 = vadd.f32 %v583_v51, %v492_v53  ;;  %v619_v57 = vpop.f32.mrb[7].mxu0 }
 0x185   : > { %500 = vst [vmem:[%s219_s23] sm:$0xff] %v499_v56 }
 0x186 PF: > { %s15_s18 = sadd.s32 1, %s646_s18  }
 0x187   : > { %p12_p4 = scmp.ge.s32.totalorder %s15_s18, 4  }
 0x189   :  { %14 = sbr.rel (!%p12_p4) target bundleno = 1 (0x1), region = 72 }

// kernel: edsr_forward.6
= control target key start
LH: loop header
LB: loop body
LE: loop exit
PB: predicated region body
PF: predicated region fallthrough
CT: control target
= control target key end

     0   :  { %s1786_s12 = smov 0   ;;  %s2251_s0 = inlined_call_operand.vmem [shape: f32[16,128], index: 0, kind: input, shape index: {}]   ;;  %s2252_s1 = inlined_call_operand.vmem [shape: bf16[3,160,512], index: 1, kind: input, shape index: {}]   ;;  %s2253_s2 = inlined_call_operand.vmem [shape: f32[1,512], index: 2, kind: input, shape index: {}]   ;;  %s2254_s3 = inlined_call_operand.vmem [shape: f32[16,512], index: 3, kind: output, shape index: {}]  }
   0x1 LB: > { %s1339_s13 = sadd.s32 4294967295, %s1762_s12   ;;  %p1343_p0 = scmp.ge.s32.totalorder %s1762_s12, 1  ;;  %s1762_s12 = sphi %s1786_s12, %s13_s12  }
   0x2   : > { %p136_p1 = scmp.lt.s32.totalorder %s1762_s12, 3 }
   0x4   : > { %p137_p2 = pnand %p1343_p0, %p136_p1 }
   0x5   : > { %p159_p3 = scmp.lt.s32.totalorder (!%p137_p2), %s1339_s13, 1  ;;  %v1574_v0 = vld [vmem:[%s2252_s1 + $0x144] ss:$16 sps:$4 sm:$0xff] (!%p137_p2)   ;;  %v1576_v1 = vld [vmem:[%s2252_s1 + $0x14c] ss:$16 sps:$4 sm:$0xff] (!%p137_p2)   ;;  %vm169_vm0 = vcmask (!%p137_p2), 1040384  }
   0x6   : > { %140 = sbr.rel (%p137_p2) target bundleno = 464 (0x1d0), region = 32  ;;  %587 = vmatprep.subr.bf16.mxu0 (!%p137_p2), %v1574_v0  ;;  %v1578_v2 = vld [vmem:[%s2252_s1 + $0x140] ss:$16 sps:$4 sm:$0xff] (!%p137_p2)   ;;  %v1579_v3 = vld [vmem:[%s2252_s1 + $0x148] ss:$16 sps:$4 sm:$0xff] (!%p137_p2)   ;;  %628 = vmatprep.subr.bf16.mxu1 (!%p137_p2), %v1576_v1  ;;  %vm172_vm2 = vcmask (!%p137_p2), 258052  }
   0x7   : > { %v1580_v4 = vld [vmem:[%s2252_s1 + $0x164] ss:$16 sps:$4 sm:$0xff] (!%p137_p2)   ;;  %588 = vmatpush1.bf16.msra.mxu0 (!%p137_p2), %v1578_v2  ;;  %629 = vmatpush1.bf16.msra.mxu1 (!%p137_p2), %v1579_v3  ;;  %v1582_v5 = vld [vmem:[%s2252_s1 + $0x16c] ss:$16 sps:$4 sm:$0xff] (!%p137_p2)   ;;  %v1584_v6 = vld [vmem:[%s2252_s1 + $0x160] ss:$16 sps:$4 sm:$0xff] (!%p137_p2)  }
   0x8   : > { %589 = vmatprep.subr.bf16.mxu0 (!%p137_p2), %v1580_v4  ;;  %v1585_v7 = vld [vmem:[%s2252_s1 + $0x168] ss:$16 sps:$4 sm:$0xff] (!%p137_p2)   ;;  %630 = vmatprep.subr.bf16.mxu1 (!%p137_p2), %v1582_v5  ;;  %v1586_v9 = vld [vmem:[%s2252_s1 + $0x184] ss:$16 sps:$4 sm:$0xff] (!%p137_p2)   ;;  %vm170_vm1 = vsmask.f32 (!%p137_p2), 256 }
   0x9   : > { %v1588_v11 = vld [vmem:[%s2252_s1 + $0x18c] ss:$16 sps:$4 sm:$0xff] (!%p137_p2)   ;;  %v1590_v12 = vld [vmem:[%s2252_s1 + $0x180] ss:$16 sps:$4 sm:$0xff] (!%p137_p2)   ;;  %v1591_v13 = vld [vmem:[%s2252_s1 + $0x188] ss:$16 sps:$4 sm:$0xff] (!%p137_p2)  }
   0xa   : > { %vm173_vm3 = vsmask.f32 (!%p137_p2), 4352  ;;  %v1592_v16 = vld [vmem:[%s2252_s1 + $0x1a4] ss:$16 sps:$4 sm:$0xff] (!%p137_p2)   ;;  %v1594_v17 = vld [vmem:[%s2252_s1 + $0x1ac] ss:$16 sps:$4 sm:$0xff] (!%p137_p2)   ;;  %vm171_vm5 = vmand (!%p137_p2), %vm169_vm0, %vm170_vm1 }
   0xb   : > { %590 = vmatpush1.bf16.msra.mxu0 (!%p137_p2), %v1584_v6  ;;  %631 = vmatpush1.bf16.msra.mxu1 (!%p137_p2), %v1585_v7  ;;  %v1596_v18 = vld [vmem:[%s2252_s1 + $0x1a0] ss:$16 sps:$4 sm:$0xff] (!%p137_p2)   ;;  %vm179_vm4 = vsmask.f32 (!%p137_p2), 7938  ;;  %v1597_v20 = vld [vmem:[%s2252_s1 + $0x1a8] ss:$16 sps:$4 sm:$0xff] (!%p137_p2)   ;;  %vm174_vm6 = vmand (!%p137_p2), %vm172_vm2, %vm173_vm3 }
   0xc   : > { %591 = vmatprep.subr.bf16.mxu0 (!%p137_p2), %v1586_v9  ;;  %632 = vmatprep.subr.bf16.mxu1 (!%p137_p2), %v1588_v11  ;;  %v176_v21 = vld [vmem:[#allocation2] sm:$0x11] (!%p137_p2)  ;;  %vm181_vm7 = vsmask.f32 (!%p137_p2), 7954  ;;  %v184_v22 = vld [vmem:[#allocation2 + $0x8] sm:$0x11] (!%p137_p2)  ;;  %vm175_vm8 = vmor (!%p137_p2), %vm174_vm6, %vm171_vm5 }
   0xd   : > { %s2266_s13 = smov (!%p159_p3, %s1339_s13), 1  ;;  %vm187_vm9 = vcmask 125952   ;;  %vm191_vm10 = vcmask 257152   ;;  %v1598_v24 = vld [vmem:[%s2252_s1 + $0x1c4] ss:$16 sps:$4 sm:$0xff]   ;;  %v177_v25 = vsel %vm175_vm8, 0, %v176_v21  ;;  %vm1857_vm11 = vmand %vm169_vm0, %vm179_vm4 }
   0xe   : > { %s1344_s24 = sshll.u32 %s2266_s13, 3  ;;  %vm219_vm12 = vcmask 1043584   ;;  %v1600_v27 = vld [vmem:[%s2252_s1 + $0x1cc] ss:$16 sps:$4 sm:$0xff]   ;;  %s1764_s29 = smov 16   ;;  %vm182_vm13 = vmand %vm172_vm2, %vm181_vm7  ;;  %vm221_vm14 = vcmask 130052  }
   0xf   : > { %s162_s4 = scalar_lea.vmem %s2251_s0, %s1344_s24  ;;  %592 = vmatpush1.bf16.msra.mxu0 %v1590_v12  ;;  %633 = vmatpush1.bf16.msra.mxu1 %v1591_v13  ;;  %178 = vst [vmem:[#allocation2] sm:$0x11] %v177_v25  ;;  %v1602_v29 = vld [vmem:[%s2252_s1 + $0x1c0] ss:$16 sps:$4 sm:$0xff]   ;;  %v1603_v30 = vld [vmem:[%s2252_s1 + $0x1c8] ss:$16 sps:$4 sm:$0xff]   ;;  %vm183_vm15 = vmor %vm182_vm13, %vm1857_vm11 }
  0x10   : > { %v195_v8 = vld [vmem:[%s162_s4] sm:$0xff]  ;;  %593 = vmatprep.subr.bf16.mxu0 %v1592_v16  ;;  %634 = vmatprep.subr.bf16.mxu1 %v1594_v17  ;;  %v1765_v31 = vmov 0   ;;  %vm189_vm0 = vcmask 122880   ;;  %vm193_vm2 = vcmask 254080   ;;  %v185_v32 = vsel %vm183_vm15, 0, %v184_v22  ;;  %vm1878_vm5 = vmand %vm219_vm12, %vm179_vm4  ;;  %s1562_s9 = sshll.u32 %s2266_s13, 5 }
  0x11   : > { %v1563_v10 = vpack.c.bf16 %v195_v8, %v195_v8  ;;  %188 = vst.msk [vmem:[#allocation2] sm:$0xf] %vm187_vm9, %v1765_v31  ;;  %vm227_vm6 = vcmask 1040512   ;;  %v1604_v34 = vld [vmem:[%s2252_s1 + $0x1e4] ss:$16 sps:$4 sm:$0xff]   ;;  %vm1887_vm8 = vmand %vm221_vm14, %vm181_vm7  ;;  %vm229_vm9 = vcmask 126980   ;;  %s167_s14 = scalar_lea.vmem %s2254_s3, %s1562_s9 }
  0x12   : > { %192 = vst.msk [vmem:[#allocation2 + $0x4] sm:$0xf] %vm191_vm10, %v1765_v31  ;;  %186 = vst [vmem:[#allocation2 + $0x8] sm:$0x11] %v185_v32  ;;  %v1606_v36 = vld [vmem:[%s2252_s1 + $0x1ec] ss:$16 sps:$4 sm:$0xff]  }
  0x13   : > { %v201_v14 = vshrl.u32 %v1563_v10, 16  ;;  %v204_v15 = vshll.u32 %v1563_v10, 16  ;;  %594 = vmatpush1.bf16.msra.mxu0 %v1596_v18  ;;  %635 = vmatpush1.bf16.msra.mxu1 %v1597_v20  ;;  %190 = vst.msk [vmem:[#allocation2 + $0x8] sm:$0x1] %vm189_vm0, %v1765_v31  ;;  %vm223_vm4 = vmor %vm1887_vm8, %vm1878_vm5  ;;  %v1608_v37 = vld [vmem:[%s2252_s1 + $0x1e0] ss:$16 sps:$4 sm:$0xff]  }
  0x14   : > { %595 = vmatprep.subr.bf16.mxu0 %v1598_v24  ;;  %636 = vmatprep.subr.bf16.mxu1 %v1600_v27  ;;  %194 = vst.msk [vmem:[#allocation2 + $0xc] sm:$0x1] %vm193_vm2, %v1765_v31  ;;  %v1609_v38 = vld [vmem:[%s2252_s1 + $0x1e8] ss:$16 sps:$4 sm:$0xff]   ;;  %vm1905_vm7 = vmand %vm227_vm6, %vm170_vm1  ;;  %v1610_v41 = vld [vmem:[%s2252_s1 + $0x204] ss:$16 sps:$4 sm:$0xff]  }
  0x15   : > { %v203_v19 = vrot.slane %v201_v14, 7  ;;  %vm1910_vm10 = vmand %vm229_vm9, %vm173_vm3  ;;  %v1612_v42 = vld [vmem:[%s2252_s1 + $0x20c] ss:$16 sps:$4 sm:$0xff]   ;;  %v1614_v43 = vld [vmem:[%s2252_s1 + $0x200] ss:$16 sps:$4 sm:$0xff]   ;;  %vm214_vm1 = vcmask 130048  }
  0x16   : > { %vm231_vm11 = vmor %vm1910_vm10, %vm1905_vm7  ;;  %v1615_v44 = vld [vmem:[%s2252_s1 + $0x208] ss:$16 sps:$4 sm:$0xff]   ;;  %v1616_v45 = vld [vmem:[%s2252_s1 + $0x224] ss:$16 sps:$4 sm:$0xff]   ;;  %vm583_vm3 = vcmask 261120  }
  0x17   : > { %v206_v23 = vor.u32 %v204_v15, %v203_v19  ;;  %v207_v28 = vrot.slane %v203_v19, 4  ;;  %596 = vmatpush1.bf16.msra.mxu0 %v1602_v29  ;;  %637 = vmatpush1.bf16.msra.mxu1 %v1603_v30  ;;  %v1618_v46 = vld [vmem:[%s2252_s1 + $0x22c] ss:$16 sps:$4 sm:$0xff]   ;;  %v1620_v47 = vld [vmem:[%s2252_s1 + $0x220] ss:$16 sps:$4 sm:$0xff]  }
  0x18   : > { %597 = vmatprep.subr.bf16.mxu0 %v1604_v34  ;;  %638 = vmatprep.subr.bf16.mxu1 %v1606_v36  ;;  %v1621_v48 = vld [vmem:[%s2252_s1 + $0x228] ss:$16 sps:$4 sm:$0xff]   ;;  %v1622_v49 = vld [vmem:[%s2252_s1 + $0x244] ss:$16 sps:$4 sm:$0xff]   ;;  %v1624_v50 = vld [vmem:[%s2252_s1 + $0x24c] ss:$16 sps:$4 sm:$0xff]  }
  0x19   : > { %208 = vrot.lane.b32.xlu0 %v206_v23, %s1764_s29  ;;  %v1626_v51 = vld [vmem:[%s2252_s1 + $0x240] ss:$16 sps:$4 sm:$0xff]   ;;  %v1627_v52 = vld [vmem:[%s2252_s1 + $0x248] ss:$16 sps:$4 sm:$0xff]   ;;  %v1628_v53 = vld [vmem:[%s2252_s1 + $0x264] ss:$16 sps:$4 sm:$0xff]  }
  0x1a   : > { %v1630_v54 = vld [vmem:[%s2252_s1 + $0x26c] ss:$16 sps:$4 sm:$0xff]   ;;  %v1632_v55 = vld [vmem:[%s2252_s1 + $0x260] ss:$16 sps:$4 sm:$0xff]   ;;  %v1633_v56 = vld [vmem:[%s2252_s1 + $0x268] ss:$16 sps:$4 sm:$0xff]  }
  0x1b   : > { %598 = vmatpush1.bf16.msra.mxu0 %v1608_v37  ;;  %639 = vmatpush1.bf16.msra.mxu1 %v1609_v38  ;;  %v1636_v57 = vld [vmem:[%s2252_s1 + $0x4] ss:$16 sps:$4 sm:$0xff]   ;;  %v1639_v58 = vld [vmem:[%s2252_s1 + $0xc] ss:$16 sps:$4 sm:$0xff]   ;;  %v1634_v15 = vld [vmem:[%s2252_s1] ss:$16 sps:$4 sm:$0xff]  }
  0x1c   : > { %599 = vmatprep.subr.bf16.mxu0 %v1610_v41  ;;  %640 = vmatprep.subr.bf16.mxu1 %v1612_v42  ;;  %v224_v60 = vld [vmem:[#allocation2] sm:$0xff]  ;;  %v232_v1 = vld [vmem:[#allocation2 + $0x8] sm:$0x11] }
  0x1d   : > { %210 = vrot.lane.b32.xlu0 %v207_v28, %s1764_s29  ;;  %v1637_v16 = vld [vmem:[%s2252_s1 + $0x8] ss:$16 sps:$4 sm:$0xff]   ;;  %v1642_v18 = vld [vmem:[%s2252_s1 + $0x24] ss:$16 sps:$4 sm:$0xff]   ;;  %v1645_v19 = vld [vmem:[%s2252_s1 + $0x2c] ss:$16 sps:$4 sm:$0xff]  }
  0x1e   : > { %v1640_v21 = vld [vmem:[%s2252_s1 + $0x20] ss:$16 sps:$4 sm:$0xff]   ;;  %v1643_v22 = vld [vmem:[%s2252_s1 + $0x28] ss:$16 sps:$4 sm:$0xff]   ;;  %v1648_v23 = vld [vmem:[%s2252_s1 + $0x44] ss:$16 sps:$4 sm:$0xff]  }
  0x1f   : > { %600 = vmatpush1.bf16.msra.mxu0 %v1614_v43  ;;  %641 = vmatpush1.bf16.msra.mxu1 %v1615_v44  ;;  %v1651_v24 = vld [vmem:[%s2252_s1 + $0x4c] ss:$16 sps:$4 sm:$0xff]   ;;  %v1646_v25 = vld [vmem:[%s2252_s1 + $0x40] ss:$16 sps:$4 sm:$0xff]   ;;  %v1649_v26 = vld [vmem:[%s2252_s1 + $0x48] ss:$16 sps:$4 sm:$0xff]  }
  0x20   : > { %601 = vmatprep.subr.bf16.mxu0 %v1616_v45  ;;  %642 = vmatprep.subr.bf16.mxu1 %v1618_v46  ;;  %v1654_v27 = vld [vmem:[%s2252_s1 + $0x64] ss:$16 sps:$4 sm:$0xff]   ;;  %v1657_v28 = vld [vmem:[%s2252_s1 + $0x6c] ss:$16 sps:$4 sm:$0xff]   ;;  %v1652_v29 = vld [vmem:[%s2252_s1 + $0x60] ss:$16 sps:$4 sm:$0xff]  }
  0x21   : > { %v1655_v30 = vld [vmem:[%s2252_s1 + $0x68] ss:$16 sps:$4 sm:$0xff]   ;;  %v1660_v31 = vld [vmem:[%s2252_s1 + $0x84] ss:$16 sps:$4 sm:$0xff]   ;;  %v1663_v32 = vld [vmem:[%s2252_s1 + $0x8c] ss:$16 sps:$4 sm:$0xff]  }
  0x22   : > { %v1658_v33 = vld [vmem:[%s2252_s1 + $0x80] ss:$16 sps:$4 sm:$0xff]   ;;  %v1661_v34 = vld [vmem:[%s2252_s1 + $0x88] ss:$16 sps:$4 sm:$0xff]   ;;  %v1666_v35 = vld [vmem:[%s2252_s1 + $0xa4] ss:$16 sps:$4 sm:$0xff]  }
  0x23   : > { %602 = vmatpush1.bf16.msra.mxu0 %v1620_v47  ;;  %643 = vmatpush1.bf16.msra.mxu1 %v1621_v48  ;;  %v1669_v36 = vld [vmem:[%s2252_s1 + $0xac] ss:$16 sps:$4 sm:$0xff]   ;;  %v1664_v37 = vld [vmem:[%s2252_s1 + $0xa0] ss:$16 sps:$4 sm:$0xff]   ;;  %v1667_v38 = vld [vmem:[%s2252_s1 + $0xa8] ss:$16 sps:$4 sm:$0xff]  }
  0x24   : > { %603 = vmatprep.subr.bf16.mxu0 %v1622_v49  ;;  %644 = vmatprep.subr.bf16.mxu1 %v1624_v50  ;;  %v1672_v39 = vld [vmem:[%s2252_s1 + $0xc4] ss:$16 sps:$4 sm:$0xff]   ;;  %v1675_v40 = vld [vmem:[%s2252_s1 + $0xcc] ss:$16 sps:$4 sm:$0xff]   ;;  %v1670_v41 = vld [vmem:[%s2252_s1 + $0xc0] ss:$16 sps:$4 sm:$0xff]  }
  0x25   : > { %v1673_v42 = vld [vmem:[%s2252_s1 + $0xc8] ss:$16 sps:$4 sm:$0xff]   ;;  %v1678_v43 = vld [vmem:[%s2252_s1 + $0xe4] ss:$16 sps:$4 sm:$0xff]   ;;  %v1681_v44 = vld [vmem:[%s2252_s1 + $0xec] ss:$16 sps:$4 sm:$0xff]  }
  0x26   : > { %v1676_v45 = vld [vmem:[%s2252_s1 + $0xe0] ss:$16 sps:$4 sm:$0xff]   ;;  %v1679_v46 = vld [vmem:[%s2252_s1 + $0xe8] ss:$16 sps:$4 sm:$0xff]   ;;  %v1684_v47 = vld [vmem:[%s2252_s1 + $0x104] ss:$16 sps:$4 sm:$0xff]  }
  0x27   : > { %604 = vmatpush1.bf16.msra.mxu0 %v1626_v51  ;;  %645 = vmatpush1.bf16.msra.mxu1 %v1627_v52  ;;  %v1687_v48 = vld [vmem:[%s2252_s1 + $0x10c] ss:$16 sps:$4 sm:$0xff]   ;;  %v1682_v49 = vld [vmem:[%s2252_s1 + $0x100] ss:$16 sps:$4 sm:$0xff]   ;;  %v1685_v50 = vld [vmem:[%s2252_s1 + $0x108] ss:$16 sps:$4 sm:$0xff]  }
  0x28   : > { %605 = vmatprep.subr.bf16.mxu0 %v1628_v53  ;;  %646 = vmatprep.subr.bf16.mxu1 %v1630_v54  ;;  %v1690_v51 = vld [vmem:[%s2252_s1 + $0x124] ss:$16 sps:$4 sm:$0xff]   ;;  %v1693_v52 = vld [vmem:[%s2252_s1 + $0x12c] ss:$16 sps:$4 sm:$0xff]   ;;  %v1688_v53 = vld [vmem:[%s2252_s1 + $0x120] ss:$16 sps:$4 sm:$0xff]  }
  0x29   : > { %v1691_v54 = vld [vmem:[%s2252_s1 + $0x128] ss:$16 sps:$4 sm:$0xff]  }
  0x2b   : > { %606 = vmatpush1.bf16.msra.mxu0 %v1632_v55  ;;  %647 = vmatpush1.bf16.msra.mxu1 %v1633_v56  ;;  %v1696_v55 = vld [vmem:[%s2252_s1 + $0x284] ss:$16 sps:$4 sm:$0xff]   ;;  %v1699_v56 = vld [vmem:[%s2252_s1 + $0x28c] ss:$16 sps:$4 sm:$0xff]  }
  0x2c   : > { %875 = vmatprep.subr.bf16.mxu0 %v1636_v57  ;;  %916 = vmatprep.subr.bf16.mxu1 %v1639_v58 }
  0x8b   : > { %v209_v59 = vpop.permute.xlu0 %208 }
  0x8c   : > { %v212_v61 = vrot.slane %v209_v59, 4 }
  0x8e   : > { %v215_v62 = vsel %vm214_vm1, %v212_v61, %v209_v59  ;;  %v1694_v59 = vld [vmem:[%s2252_s1 + $0x280] ss:$16 sps:$4 sm:$0xff]   ;;  %v1697_v61 = vld [vmem:[%s2252_s1 + $0x288] ss:$16 sps:$4 sm:$0xff]  }
  0x8f   : > { %v1977_v63 = vsel %vm223_vm4, %v215_v62, %v224_v60  ;;  %v211_v0 = vpop.permute.xlu0 %210 }
  0x90   : > { %226 = vst [vmem:[#allocation2] sm:$0xff] %v1977_v63  ;;  %v213_v2 = vrot.slane %v211_v0, 4  ;;  %v1473_v20 = vcombine.high %v1977_v63, %v1977_v63  ;;  %v1472_v60 = vcombine.low %v1977_v63, %v1977_v63 }
  0x92   : > { %v216_v3 = vsel %vm214_vm1, %v213_v2, %v211_v0  ;;  %v1703_v0 = vld [vmem:[%s2252_s1 + $0x2a4] ss:$16 sps:$4 sm:$0xff]   ;;  %v1704_v2 = vld [vmem:[%s2252_s1 + $0x2a8] ss:$16 sps:$4 sm:$0xff]  }
  0x93   : > { %v233_v4 = vsel %vm231_vm11, %v216_v3, %v232_v1  ;;  %v1706_v1 = vld [vmem:[%s2252_s1 + $0x2ac] ss:$16 sps:$4 sm:$0xff]   ;;  %v1709_v3 = vld [vmem:[%s2252_s1 + $0x2c4] ss:$16 sps:$4 sm:$0xff]  }
  0x94   : > { %234 = vst [vmem:[#allocation2 + $0x8] sm:$0x11] %v233_v4  ;;  %v1712_v4 = vld [vmem:[%s2252_s1 + $0x2cc] ss:$16 sps:$4 sm:$0xff]  }
  0x97   : > { %v2117_v57 = vld [vmem:[#allocation2] sm:$0xee] }
  0x9b   : > { %v1985_v5 = vld [vmem:[#allocation2 + $0x8] sm:$0x11] }
  0x9c   : > { %v1429_v6 = vcombine.high %v1977_v63, %v1985_v5  ;;  %v1428_v7 = vcombine.low %v1977_v63, %v1985_v5  ;;  %v1517_v58 = vcombine.high %v2117_v57, %v1985_v5  ;;  %v1701_v63 = vld [vmem:[%s2252_s1 + $0x2a0] ss:$16 sps:$4 sm:$0xff]  }
  0x9e   : > { %v378_v8 = vshll.u32 %v1429_v6, 16  ;;  %v371_v9 = vshll.u32 %v1428_v7, 16  ;;  %v376_v10 = vshrl.u32 %v1429_v6, 16  ;;  %v369_v12 = vshrl.u32 %v1428_v7, 16  ;;  %v1707_v6 = vld [vmem:[%s2252_s1 + $0x2c0] ss:$16 sps:$4 sm:$0xff]  }
  0x9f   : > { %v964_v62 = vrot.slane %v1517_v58, 1  ;;  %v1710_v7 = vld [vmem:[%s2252_s1 + $0x2c8] ss:$16 sps:$4 sm:$0xff]  }
  0xa0   : > { %v380_v11 = vrot.slane %v378_v8, 1  ;;  %v373_v13 = vrot.slane %v371_v9, 1  ;;  %v1715_v8 = vld [vmem:[%s2252_s1 + $0x2e4] ss:$16 sps:$4 sm:$0xff]   ;;  %v1718_v9 = vld [vmem:[%s2252_s1 + $0x2ec] ss:$16 sps:$4 sm:$0xff]  }
  0xa2   : > { %v381_v14 = vor.u32 %v380_v11, %v376_v10  ;;  %v374_v17 = vor.u32 %v373_v13, %v369_v12  ;;  %v1713_v10 = vld [vmem:[%s2252_s1 + $0x2e0] ss:$16 sps:$4 sm:$0xff]   ;;  %v1716_v11 = vld [vmem:[%s2252_s1 + $0x2e8] ss:$16 sps:$4 sm:$0xff]   ;;  %v1721_v12 = vld [vmem:[%s2252_s1 + $0x304] ss:$16 sps:$4 sm:$0xff]  }
  0xa3   : > { %v1724_v13 = vld [vmem:[%s2252_s1 + $0x30c] ss:$16 sps:$4 sm:$0xff]  }
  0xa4   : > { %1470 = vmatprep.mubr.msk.bf16.mxu0 %vm583_vm3, %v381_v14  ;;  %1471 = vmatprep.mubr.msk.bf16.mxu1 %vm583_vm3, %v381_v14  ;;  %v1719_v14 = vld [vmem:[%s2252_s1 + $0x300] ss:$16 sps:$4 sm:$0xff]  }
  0xa5   : > { %620 = vmatmul.mubr.bf16.vlgmr.msra.gmra.mrb[0].mxu0 %v374_v17  ;;  %661 = vmatmul.mubr.bf16.vlgmr.msra.gmra.mrb[0].mxu1 %v374_v17  ;;  %v1730_v17 = vld [vmem:[%s2252_s1 + $0x32c] ss:$16 sps:$4 sm:$0xff]  }
  0xa6   : > { %876 = vmatpush1.bf16.msra.mxu0 %v1634_v15  ;;  %917 = vmatpush1.bf16.msra.mxu1 %v1637_v16  ;;  %v1722_v15 = vld [vmem:[%s2252_s1 + $0x308] ss:$16 sps:$4 sm:$0xff]   ;;  %v1727_v16 = vld [vmem:[%s2252_s1 + $0x324] ss:$16 sps:$4 sm:$0xff]  }
  0xa7   : > { %1514 = vmatprep.mubr.msk.bf16.mxu0 %vm583_vm3, %v1473_v20  ;;  %1515 = vmatprep.mubr.msk.bf16.mxu1 %vm583_vm3, %v1473_v20  ;;  %v1733_v20 = vld [vmem:[%s2252_s1 + $0x344] ss:$16 sps:$4 sm:$0xff]  }
  0xa8   : > { %877 = vmatprep.subr.bf16.mxu0 %v1642_v18  ;;  %918 = vmatprep.subr.bf16.mxu1 %v1645_v19  ;;  %v1725_v18 = vld [vmem:[%s2252_s1 + $0x320] ss:$16 sps:$4 sm:$0xff]   ;;  %v1728_v19 = vld [vmem:[%s2252_s1 + $0x328] ss:$16 sps:$4 sm:$0xff]  }
  0xaa   : > { %878 = vmatpush1.bf16.msra.mxu0 %v1640_v21  ;;  %919 = vmatpush1.bf16.msra.mxu1 %v1643_v22  ;;  %v1736_v21 = vld [vmem:[%s2252_s1 + $0x34c] ss:$16 sps:$4 sm:$0xff]   ;;  %v1731_v22 = vld [vmem:[%s2252_s1 + $0x340] ss:$16 sps:$4 sm:$0xff]  }
  0xab   : > { %879 = vmatprep.subr.bf16.mxu0 %v1648_v23  ;;  %920 = vmatprep.subr.bf16.mxu1 %v1651_v24  ;;  %v1734_v23 = vld [vmem:[%s2252_s1 + $0x348] ss:$16 sps:$4 sm:$0xff]   ;;  %v1739_v24 = vld [vmem:[%s2252_s1 + $0x364] ss:$16 sps:$4 sm:$0xff]  }
  0xae   : > { %880 = vmatpush1.bf16.msra.mxu0 %v1646_v25  ;;  %921 = vmatpush1.bf16.msra.mxu1 %v1649_v26  ;;  %v1742_v25 = vld [vmem:[%s2252_s1 + $0x36c] ss:$16 sps:$4 sm:$0xff]   ;;  %v1737_v26 = vld [vmem:[%s2252_s1 + $0x360] ss:$16 sps:$4 sm:$0xff]  }
  0xaf   : > { %881 = vmatprep.subr.bf16.mxu0 %v1654_v27  ;;  %922 = vmatprep.subr.bf16.mxu1 %v1657_v28  ;;  %v1740_v27 = vld [vmem:[%s2252_s1 + $0x368] ss:$16 sps:$4 sm:$0xff]   ;;  %v1745_v28 = vld [vmem:[%s2252_s1 + $0x384] ss:$16 sps:$4 sm:$0xff]  }
  0xb2   : > { %882 = vmatpush1.bf16.msra.mxu0 %v1652_v29  ;;  %923 = vmatpush1.bf16.msra.mxu1 %v1655_v30  ;;  %v1748_v29 = vld [vmem:[%s2252_s1 + $0x38c] ss:$16 sps:$4 sm:$0xff]   ;;  %v1743_v30 = vld [vmem:[%s2252_s1 + $0x380] ss:$16 sps:$4 sm:$0xff]  }
  0xb3   : > { %883 = vmatprep.subr.bf16.mxu0 %v1660_v31  ;;  %924 = vmatprep.subr.bf16.mxu1 %v1663_v32  ;;  %v1746_v31 = vld [vmem:[%s2252_s1 + $0x388] ss:$16 sps:$4 sm:$0xff]   ;;  %v1751_v32 = vld [vmem:[%s2252_s1 + $0x3a4] ss:$16 sps:$4 sm:$0xff]  }
  0xb6   : > { %884 = vmatpush1.bf16.msra.mxu0 %v1658_v33  ;;  %925 = vmatpush1.bf16.msra.mxu1 %v1661_v34  ;;  %v1754_v33 = vld [vmem:[%s2252_s1 + $0x3ac] ss:$16 sps:$4 sm:$0xff]   ;;  %v1749_v34 = vld [vmem:[%s2252_s1 + $0x3a0] ss:$16 sps:$4 sm:$0xff]  }
  0xb7   : > { %885 = vmatprep.subr.bf16.mxu0 %v1666_v35  ;;  %926 = vmatprep.subr.bf16.mxu1 %v1669_v36  ;;  %v1752_v35 = vld [vmem:[%s2252_s1 + $0x3a8] ss:$16 sps:$4 sm:$0xff]   ;;  %v1516_v36 = vcombine.low %v2117_v57, %v1985_v5  ;;  %v1256_v57 = vlaneseq }
  0xb9   : > { %v1257_v58 = vshrl.u32 %v1256_v57, 7 }
  0xba   : > { %886 = vmatpush1.bf16.msra.mxu0 %v1664_v37  ;;  %927 = vmatpush1.bf16.msra.mxu1 %v1667_v38  ;;  %v963_v37 = vrot.slane %v1516_v36, 1 }
  0xbb   : > { %887 = vmatprep.subr.bf16.mxu0 %v1672_v39  ;;  %928 = vmatprep.subr.bf16.mxu1 %v1675_v40 }
  0xbe   : > { %888 = vmatpush1.bf16.msra.mxu0 %v1670_v41  ;;  %929 = vmatpush1.bf16.msra.mxu1 %v1673_v42 }
  0xbf   : > { %889 = vmatprep.subr.bf16.mxu0 %v1678_v43  ;;  %930 = vmatprep.subr.bf16.mxu1 %v1681_v44 }
  0xc2   : > { %890 = vmatpush1.bf16.msra.mxu0 %v1676_v45  ;;  %931 = vmatpush1.bf16.msra.mxu1 %v1679_v46 }
  0xc3   : > { %891 = vmatprep.subr.bf16.mxu0 %v1684_v47  ;;  %932 = vmatprep.subr.bf16.mxu1 %v1687_v48 }
  0xc6   : > { %892 = vmatpush1.bf16.msra.mxu0 %v1682_v49  ;;  %933 = vmatpush1.bf16.msra.mxu1 %v1685_v50 }
  0xc7   : > { %893 = vmatprep.subr.bf16.mxu0 %v1690_v51  ;;  %934 = vmatprep.subr.bf16.mxu1 %v1693_v52 }
  0xca   : > { %894 = vmatpush1.bf16.msra.mxu0 %v1688_v53  ;;  %935 = vmatpush1.bf16.msra.mxu1 %v1691_v54 }
  0xcb   : > { %1169 = vmatprep.subr.bf16.mxu0 %v1696_v55  ;;  %1210 = vmatprep.subr.bf16.mxu1 %v1699_v56 }
  0xcd   : > { %908 = vmatmul.mubr.bf16.vlgmr.msra.gmra.mrb[4].mxu0 %v1472_v60  ;;  %949 = vmatmul.mubr.bf16.vlgmr.msra.gmra.mrb[4].mxu1 %v1472_v60  ;;  %v357_v60 = vld [vmem:[%s2253_s2] sm:$0xf] }
  0xce   : > { %1170 = vmatpush1.bf16.msra.mxu0 %v1694_v59  ;;  %1558 = vmatprep.mubr.msk.bf16.mxu0 %vm583_vm3, %v964_v62  ;;  %v1258_v59 = vsub.s32 0, %v1257_v58 }
  0xcf   : > { %1211 = vmatpush1.bf16.msra.mxu1 %v1697_v61  ;;  %1559 = vmatprep.mubr.msk.bf16.mxu1 %vm583_vm3, %v964_v62  ;;  %v1266_v61 = vsub.s32 2, %v1257_v58  ;;  %v1262_v62 = vsub.s32 1, %v1257_v58 }
  0xd0   : > { %1171 = vmatprep.subr.bf16.mxu0 %v1703_v0  ;;  %1212 = vmatprep.subr.bf16.mxu1 %v1706_v1  ;;  %v1270_v0 = vsub.s32 3, %v1257_v58  ;;  %v1259_v1 = vrot.slane %v357_v60, %v1258_v59 }
  0xd2   : > { %1172 = vmatpush1.bf16.msra.mxu0 %v1701_v63 }
  0xd3   : > { %1213 = vmatpush1.bf16.msra.mxu1 %v1704_v2  ;;  %1173 = vmatprep.subr.bf16.mxu0 %v1709_v3  ;;  %v1267_v2 = vrot.slane %v357_v60, %v1266_v61  ;;  %v1263_v3 = vrot.slane %v357_v60, %v1262_v62 }
  0xd4   : > { %1214 = vmatprep.subr.bf16.mxu1 %v1712_v4 }
  0xd6   : > { %1174 = vmatpush1.bf16.msra.mxu0 %v1707_v6 }
  0xd7   : > { %1215 = vmatpush1.bf16.msra.mxu1 %v1710_v7  ;;  %1175 = vmatprep.subr.bf16.mxu0 %v1715_v8  ;;  %v1271_v8 = vrot.slane %v357_v60, %v1270_v0 }
  0xd8   : > { %1216 = vmatprep.subr.bf16.mxu1 %v1718_v9 }
  0xda   : > { %1176 = vmatpush1.bf16.msra.mxu0 %v1713_v10 }
  0xdb   : > { %1217 = vmatpush1.bf16.msra.mxu1 %v1716_v11  ;;  %1177 = vmatprep.subr.bf16.mxu0 %v1721_v12 }
  0xdc   : > { %1218 = vmatprep.subr.bf16.mxu1 %v1724_v13 }
  0xde   : > { %1178 = vmatpush1.bf16.msra.mxu0 %v1719_v14 }
  0xdf   : > { %1219 = vmatpush1.bf16.msra.mxu1 %v1722_v15  ;;  %1179 = vmatprep.subr.bf16.mxu0 %v1727_v16 }
  0xe0   : > { %1220 = vmatprep.subr.bf16.mxu1 %v1730_v17 }
  0xe2   : > { %1180 = vmatpush1.bf16.msra.mxu0 %v1725_v18 }
  0xe3   : > { %1221 = vmatpush1.bf16.msra.mxu1 %v1728_v19  ;;  %1181 = vmatprep.subr.bf16.mxu0 %v1733_v20 }
  0xe4   : > { %1222 = vmatprep.subr.bf16.mxu1 %v1736_v21 }
  0xe6   : > { %1182 = vmatpush1.bf16.msra.mxu0 %v1731_v22 }
  0xe7   : > { %1223 = vmatpush1.bf16.msra.mxu1 %v1734_v23  ;;  %1183 = vmatprep.subr.bf16.mxu0 %v1739_v24 }
  0xe8   : > { %1224 = vmatprep.subr.bf16.mxu1 %v1742_v25 }
  0xea   : > { %1184 = vmatpush1.bf16.msra.mxu0 %v1737_v26 }
  0xeb   : > { %1225 = vmatpush1.bf16.msra.mxu1 %v1740_v27  ;;  %1185 = vmatprep.subr.bf16.mxu0 %v1745_v28 }
  0xec   : > { %1226 = vmatprep.subr.bf16.mxu1 %v1748_v29 }
  0xee   : > { %1186 = vmatpush1.bf16.msra.mxu0 %v1743_v30 }
  0xef   : > { %1227 = vmatpush1.bf16.msra.mxu1 %v1746_v31  ;;  %1187 = vmatprep.subr.bf16.mxu0 %v1751_v32 }
  0xf0   : > { %1228 = vmatprep.subr.bf16.mxu1 %v1754_v33 }
  0xf2   : > { %1188 = vmatpush1.bf16.msra.mxu0 %v1749_v34 }
  0xf3   : > { %1229 = vmatpush1.bf16.msra.mxu1 %v1752_v35 }
  0xf5   : > { %1202 = vmatmul.mubr.bf16.vlgmr.msra.gmra.mrb[8].mxu0 %v963_v37 }
  0xf6   : > { %1243 = vmatmul.mubr.bf16.vlgmr.msra.gmra.mrb[8].mxu1 %v963_v37 }
 0x178   : > { %v621_v38 = vpop.f32.mrb[0].mxu0  ;;  %v662_v39 = vpop.f32.mrb[0].mxu1 }
 0x179   : > { %v623_v40 = vpop.f32.mrb[1].mxu0  ;;  %v664_v41 = vpop.f32.mrb[1].mxu1 }
 0x17a   : > { %v625_v42 = vpop.f32.mrb[2].mxu0  ;;  %v666_v43 = vpop.f32.mrb[2].mxu1 }
 0x17b   : > { %v626_v44 = vpop.f32.mrb[3].mxu0  ;;  %v667_v45 = vpop.f32.mrb[3].mxu1 }
 0x1a0   : > { %v909_v46 = vpop.f32.mrb[4].mxu0  ;;  %v950_v47 = vpop.f32.mrb[4].mxu1 }
 0x1a1   : > { %v910_v48 = vadd.f32 %v909_v46, %v621_v38  ;;  %v951_v49 = vadd.f32 %v950_v47, %v662_v39  ;;  %v911_v5 = vpop.f32.mrb[5].mxu0  ;;  %v952_v50 = vpop.f32.mrb[5].mxu1 }
 0x1a2   : > { %v912_v51 = vadd.f32 %v911_v5, %v623_v40  ;;  %v953_v52 = vadd.f32 %v952_v50, %v664_v41  ;;  %v913_v53 = vpop.f32.mrb[6].mxu0  ;;  %v954_v54 = vpop.f32.mrb[6].mxu1 }
 0x1a3   : > { %v914_v55 = vpop.f32.mrb[7].mxu0  ;;  %v955_v56 = vpop.f32.mrb[7].mxu1 }
 0x1c8   : > { %v1203_v63 = vpop.f32.mrb[8].mxu0 }
 0x1c9   : > { %v1251_v4 = vadd.f32 %v1203_v63, %v910_v48  ;;  %v1244_v6 = vpop.f32.mrb[8].mxu1  ;;  %v1205_v7 = vpop.f32.mrb[9].mxu0 }
 0x1ca   : > { %v1253_v9 = vadd.f32 %v1244_v6, %v951_v49  ;;  %v1252_v10 = vadd.f32 %v1205_v7, %v912_v51  ;;  %v1246_v11 = vpop.f32.mrb[9].mxu1  ;;  %v1207_v12 = vpop.f32.mrb[10].mxu0 }
 0x1cb   : > { %v1276_v13 = vadd.f32 %v1259_v1, %v1251_v4  ;;  %v1254_v14 = vadd.f32 %v1246_v11, %v953_v52  ;;  %v1248_v15 = vpop.f32.mrb[10].mxu1  ;;  %v1208_v16 = vpop.f32.mrb[11].mxu0 }
 0x1cc   : > { %v1278_v17 = vadd.f32 %v1267_v2, %v1253_v9  ;;  %v1277_v18 = vadd.f32 %v1263_v3, %v1252_v10  ;;  %v1249_v19 = vpop.f32.mrb[11].mxu1 }
 0x1cd   : > { %1280 = vst [vmem:[%s167_s14] sm:$0xff] %v1276_v13  ;;  %v1279_v20 = vadd.f32 %v1271_v8, %v1254_v14 }
 0x1ce   : > { %1282 = vst [vmem:[%s167_s14 + $0x10] sm:$0xff] %v1278_v17  ;;  %1281 = vst [vmem:[%s167_s14 + $0x8] sm:$0xff] %v1277_v18 }
 0x1cf   : > { %1283 = vst [vmem:[%s167_s14 + $0x18] sm:$0xff] %v1279_v20 }
 0x1d0 PF: > { %s13_s12 = sadd.s32 1, %s1762_s12  }
 0x1d1   : > { %p10_p4 = scmp.ge.s32.totalorder %s13_s12, 4  }
 0x1d3   :  { %12 = sbr.rel (!%p10_p4) target bundleno = 1 (0x1), region = 64 }

// kernel: edsr_forward.5
= control target key start
LH: loop header
LB: loop body
LE: loop exit
PB: predicated region body
PF: predicated region fallthrough
CT: control target
= control target key end

     0   :  { %s3113_s0 = inlined_call_operand.vmem [shape: f32[16,128], index: 0, kind: input, shape index: {}]   ;;  %s3114_s1 = inlined_call_operand.hbm [shape: bf16[4,3,160,128], index: 1, kind: input, shape index: {}]   ;;  %s3115_s2 = inlined_call_operand.vmem [shape: f32[4,1,128], index: 2, kind: input, shape index: {}]   ;;  %s3116_s3 = inlined_call_operand.hbm [shape: bf16[4,3,160,128], index: 3, kind: input, shape index: {}]   ;;  %s3117_s4 = inlined_call_operand.vmem [shape: f32[4,1,128], index: 4, kind: input, shape index: {}]   ;;  %s3118_s5 = inlined_call_operand.vmem [shape: bf16[3,160,128], index: 5, kind: input, shape index: {}]   ;;  %s3119_s6 = inlined_call_operand.vmem [shape: f32[1,128], index: 6, kind: input, shape index: {}]   ;;  %s3120_s7 = inlined_call_operand.vmem [shape: f32[16,128], index: 7, kind: output, shape index: {}]  }
   0x1   :  { %3125 = sst [smem:[#allocation13_spill]] %s3114_s1 }
   0x2   :  { %12 = vsyncpa [#allocation6], 0 }
   0x3   :  { %14 = vsyncpa [#allocation6 + $0x1], 0 }
   0x4   :  { %15 = vsyncpa [#allocation8], 0 }
   0x5   :  { %17 = vsyncpa [#allocation8 + $0x1], 0  ;;  %s2552_s24 = smov 0   ;;  %s2554_s25 = smov 0  }
   0x6   :  { %s2556_s26 = smov 0   ;;  %s2558_s27 = smov 0  }
   0x7   :  { %s2560_s28 = smov 0   ;;  %s2562_s29 = smov 0  }
   0x8   :  { %s2564_s30 = smov 0   ;;  %s2566_s8 = smov 0  }
   0x9 LB: > { %s1920_s9 = sadd.s32 4294967295, %s2501_s8   ;;  %s32_s10 = sadd.s32 1, %s2493_s29  ;;  %s2501_s8 = sphi %s2566_s8, %s23_s8   ;;  %s2497_s30 = sphi %s2564_s30, %s3151_s30   ;;  %s2493_s29 = sphi %s2562_s29, %s3150_s29   ;;  %s2489_s28 = sphi %s2560_s28, %s3149_s28   ;;  %s2485_s27 = sphi %s2558_s27, %s3148_s27   ;;  %s2481_s26 = sphi %s2556_s26, %s3147_s26   ;;  %s2477_s25 = sphi %s2554_s25, %s3146_s25   ;;  %s2473_s24 = sphi %s2552_s24, %s3145_s24  }
   0xa   : > { %p33_p0 = scmp.ge.s32.totalorder %s32_s10, 4  ;;  %s35_s11 = sadd.s32 1, %s2497_s30 }
   0xb   : > { %s68_s12 = sadd.s32 1, %s2481_s26  ;;  %p75_p1 = scmp.ne.s32.totalorder %s2481_s26, %s2477_s25 }
   0xc   : > { %s3153_s10 = smov (%p33_p0, %s32_s10), 0  ;;  %s3155_s11 = smov (!%p33_p0, %s35_s11), %s2497_s30 }
   0xd   : > { %3126 = sst [smem:[#allocation11_spill]] %s3153_s10  ;;  %s65_s13 = ssub.s32 %s2493_s29, %s3153_s10 }
   0xe   : > { %p76_p2 = scmp.eq.s32.totalorder %s2501_s8, 0  ;;  %p37_p3 = scmp.ge.s32.totalorder %s3155_s11, 2 }
   0xf   : > { %p66_p4 = scmp.eq.s32.totalorder %s65_s13, 0  ;;  %p81_p6 = scmp.ne.s32.totalorder %s2477_s25, %s2473_s24 }
  0x10   : > { %p77_p5 = por %p76_p2, %p75_p1  ;;  %s3157_s11 = smov (%p37_p3, %s3155_s11), 0 }
  0x11   : > { %3127 = sst [smem:[#allocation12_spill]] %s3157_s11  ;;  %p82_p7 = scmp.eq.s32.totalorder %s1920_s9, 0 }
  0x12   : > { %s2606_s14 = scalar_select %p66_p4, %s2481_s26, %s68_s12  }
  0x13   : > { %p2195_p8 = scmp.lt.s32.totalorder %s2501_s8, 8  ;;  %s2610_s15 = sand.u32 1, %s2481_s26  }
  0x14   : > { %p2612_p9 = por %p82_p7, %p81_p6  ;;  %s2179_s17 = smul.u32 240, %s2610_s15 }
  0x15   : > { %p2617_p10 = pnand %p2195_p8, %p77_p5  ;;  %s3121_s19 = smul.u32 3840, %s2493_s29 }
  0x16   : > { %s3128_s16 = scalar_select %p2612_p9, 1, 0 }
  0x17   : > { %s3130_s1 = sld [smem:[#allocation13_spill]]  ;;  %s268_s23 = scalar_lea.vmem [#allocation5], %s2179_s17 }
  0x18   : > { %s275_s24 = sshll.u32 %s268_s23, 4  ;;  %s265_s9 = scalar_lea.sflag [#allocation6], %s2610_s15  ;;  %s2631_s24 = int_to_ptr.vmem [resolvable:$true] %s275_s24 }
  0x19   : > { %p2373_p12 = pneg %p2617_p10 }
  0x1d   : > { %s2627_s22 = scalar_lea.hbm %s3130_s1, %s3121_s19  ;;  %s2376_s21 = scalar_lea.hbm %s3130_s1, 15360 }
  0x1e   : > { %s2371_s12 = scalar_lea.hbm %s2627_s22, 3840  ;;  %p2377_p1 = scmp.lt.u32.totalorder %s2627_s22, %s3130_s1 }
  0x1f   : > { %p2372_p11 = scmp.ne.s32.totalorder %s2627_s22, %s2371_s12  ;;  %p2378_p2 = scmp.lt.u32.totalorder %s2376_s21, %s2371_s12 }
  0x20   : > { %p2380_p4 = scmp.lt.u32.totalorder %s2371_s12, %s2627_s22 }
  0x21   : > { %p2374_p13 = pnand %p2373_p12, %p2372_p11  ;;  %p2379_p3 = por %p2378_p2, %p2377_p1 }
  0x23   : > { %p2375_p0 = pneg %p2374_p13  ;;  %p2381_p5 = por %p2380_p4, %p2379_p3 }
  0x25   : > { %p2382_p6 = pnand %p2381_p5, %p2375_p0 }
  0x27   : > { %2385 = shalt.err (!%p2382_p6)
}
  0x28   : > { %s2386_s23 = scalar_lea.vmem %s2631_s24, 3840  ;;  %s2503_s13 = smov [#allocation5]  }
  0x29   : > { %p2387_p7 = scmp.ne.s32.totalorder %s2631_s24, %s2386_s23  ;;  %s2391_s20 = sshll.u32 %s2503_s13, 4  ;;  %s2392_s20 = int_to_ptr.vmem [resolvable:$false] %s2391_s20 }
  0x2a   : > { %s2393_s11 = scalar_lea.vmem %s2392_s20, 7680  ;;  %p2394_p13 = scmp.lt.s32.totalorder %s2631_s24, %s2392_s20 }
  0x2b   : > { %p2389_p8 = pnand %p2387_p7, %p2373_p12  ;;  %p2395_p1 = scmp.lt.s32.totalorder %s2393_s11, %s2386_s23 }
  0x2d   : > { %p2390_p11 = pneg %p2389_p8  ;;  %p2396_p2 = por %p2395_p1, %p2394_p13 }
  0x2f   : > { %p2397_p3 = pnand %p2396_p2, %p2390_p11 }
  0x31   : > { %2400 = shalt.err (!%p2397_p3)
}
  0x32   : > { %s3123_s19 = smov 64   ;;  %s2505_s12 = smov 4  }
  0x33   : > { %2191 = dma.hbm_to_vmem [thread:$0]  (!%p2617_p10), %s2627_s22, 3840, %s2631_s24, %s265_s9, %s3123_s19, %s3123_s19, %s2505_s12  }
  0x34   : > { %p1926_p0 = scmp.ge.s32.totalorder %s2501_s8, 1  ;;  %p316_p4 = scmp.lt.s32.totalorder %s2501_s8, 9 }
  0x35   : > { %s3132_s23 = smul.u32 3840, %s2493_s29  ;;  %s295_s1 = scalar_lea.vmem [#allocation7], %s2179_s17 }
  0x36   : > { %p2666_p5 = pnand %p1926_p0, %p316_p4  ;;  %s302_s10 = sshll.u32 %s295_s1, 4  ;;  %s2679_s10 = int_to_ptr.vmem [resolvable:$true] %s302_s10 }
  0x37   : > { %s2675_s11 = scalar_lea.hbm %s3116_s3, %s3132_s23  ;;  %s292_s22 = scalar_lea.sflag [#allocation8], %s2610_s15 }
  0x38   : > { %s2401_s24 = scalar_lea.hbm %s2675_s11, 3840  ;;  %s2406_s23 = scalar_lea.hbm %s3116_s3, 15360 }
  0x39   : > { %p2402_p6 = scmp.ne.s32.totalorder %s2675_s11, %s2401_s24  ;;  %p2407_p11 = scmp.lt.u32.totalorder %s2675_s11, %s3116_s3 }
  0x3a   : > { %p2408_p13 = scmp.lt.u32.totalorder %s2406_s23, %s2401_s24  ;;  %p2410_p2 = scmp.lt.u32.totalorder %s2401_s24, %s2675_s11 }
  0x3b   : > { %p2404_p7 = pnand %p2402_p6, %p2373_p12 }
  0x3c   : > { %p2409_p1 = por %p2408_p13, %p2407_p11 }
  0x3d   : > { %p2405_p8 = pneg %p2404_p7 }
  0x3e   : > { %p2411_p3 = por %p2410_p2, %p2409_p1 }
  0x40   : > { %p2412_p0 = pnand %p2411_p3, %p2405_p8 }
  0x42   : > { %2415 = shalt.err (!%p2412_p0)
}
  0x43   : > { %s2416_s1 = scalar_lea.vmem %s2679_s10, 3840  ;;  %s2506_s17 = smov [#allocation7]  }
  0x44   : > { %p2417_p4 = scmp.ne.s32.totalorder %s2679_s10, %s2416_s1  ;;  %s2421_s9 = sshll.u32 %s2506_s17, 4  ;;  %s2422_s9 = int_to_ptr.vmem [resolvable:$false] %s2421_s9 }
  0x45   : > { %s2423_s19 = scalar_lea.vmem %s2422_s9, 7680  ;;  %p2424_p9 = scmp.lt.s32.totalorder %s2679_s10, %s2422_s9 }
  0x46   : > { %p2419_p6 = pnand %p2417_p4, %p2373_p12  ;;  %p2425_p11 = scmp.lt.s32.totalorder %s2423_s19, %s2416_s1 }
  0x48   : > { %p2420_p7 = pneg %p2419_p6  ;;  %p2426_p13 = por %p2425_p11, %p2424_p9 }
  0x4a   : > { %p2427_p1 = pnand %p2426_p13, %p2420_p7 }
  0x4c   : > { %2430 = shalt.err (!%p2427_p1)
}
  0x4d   : > { %s3133_s24 = smov 64   ;;  %320 = sbr.rel (%p2666_p5) target bundleno = 1358 (0x54e), region = 48 }
  0x4e   : > { %2194 = dma.hbm_to_vmem [thread:$0]  (!%p2617_p10), %s2675_s11, 3840, %s2679_s10, %s292_s22, %s3133_s24, %s3133_s24, %s2505_s12  }
  0x4f   : > { %s322_s13 = sand.u32 (!%p2666_p5), 1, %s2477_s25   ;;  %p3134_p9 = scmp.ne.s32.totalorder (!%p2666_p5), %s3128_s16, 0 }
  0x50   : > { %s2183_s23 = smul.u32 (!%p2666_p5), 240, %s322_s13  ;;  %s323_s20 = scalar_lea.sflag (!%p2666_p5), [#allocation6], %s322_s13 }
  0x52   : > { %s2713_s1 = scalar_lea.vmem (!%p2666_p5), [#allocation5], %s2183_s23 }
  0x54   : > { %2464 = dma.done.wait (%p3134_p9), %s323_s20, 3840  }
  0x55   : > { %2466 = vsyncadd (%p3134_p9), %s323_s20, 4294963456  ;;  %s332_s15 = scalar_lea.sflag [#allocation8], %s322_s13  ;;  %s2719_s18 = scalar_lea.vmem [#allocation7], %s2183_s23 }
  0x56   : > { %2468 = dma.done.wait (%p3134_p9), %s332_s15, 3840  }
  0x57   : > { %2470 = vsyncadd (%p3134_p9), %s332_s15, 4294963456  ;;  %p380_p10 = scmp.lt.s32.totalorder %s2489_s28, 1  ;;  %p384_p12 = scmp.lt.s32.totalorder %s2485_s27, 3 }
  0x58   : > { %p1929_p5 = scmp.ne.s32.totalorder %s2485_s27, 0 }
  0x59   : > { %s3159_s28 = smov (!%p380_p10, %s2489_s28), 1  ;;  %vm399_vm0 = vcmask (!%p1929_p5), 1043456   ;;  %vm400_vm1 = vcmask (!%p1929_p5), 261124   ;;  %v2507_v5 = vmov (!%p1929_p5), 0   ;;  %vm403_vm3 = vcmask (!%p1929_p5), 1040384  }
  0x5a   : > { %s2729_s10 = scalar_select %p384_p12, %s2485_s27, 3 }
  0x5b   : > { %s1927_s12 = sshll.u32 %s3159_s28, 3  ;;  %398 = sbr.rel (%p1929_p5) target bundleno = 226 (0xe2), region = 60  ;;  %vm401_vm2 = vmor (!%p1929_p5), %vm400_vm1, %vm399_vm0  ;;  %vm404_vm4 = vcmask (!%p1929_p5), 258052   ;;  %vm435_vm6 = vcmask (!%p1929_p5), 1043584   ;;  %vm436_vm7 = vsmask.f32 (!%p1929_p5), 7938 }
  0x5c   : > { %s2734_s22 = scalar_lea.vmem %s3113_s0, %s1927_s12  ;;  %s386_s9 = scalar_lea.vmem %s3115_s2, %s2729_s10  ;;  %402 = vst.msk [vmem:[#allocation2] sm:$0xff] (!%p1929_p5), %vm401_vm2, %v2507_v5  ;;  %407 = vst.msk [vmem:[#allocation3] sm:$0xff] (!%p1929_p5), %vm401_vm2, %v2507_v5  ;;  %vm438_vm8 = vcmask (!%p1929_p5), 130052   ;;  %vm439_vm9 = vsmask.f32 (!%p1929_p5), 7954  ;;  %vm445_vm12 = vcmask (!%p1929_p5), 1040512  }
  0x5d   : > { %s389_s13 = scalar_lea.vmem %s3117_s4, %s2729_s10  ;;  %s2747_s15 = scalar_lea.vmem %s3120_s7, %s1927_s12  ;;  %v411_v0 = vld [vmem:[%s2734_s22] sm:$0xff] (!%p1929_p5)  ;;  %vm405_vm5 = vmor (!%p1929_p5), %vm404_vm4, %vm403_vm3  ;;  %vm446_vm13 = vsmask.f32 (!%p1929_p5), 256  ;;  %vm448_vm14 = vcmask (!%p1929_p5), 126980   ;;  %vm449_vm15 = vsmask.f32 (!%p1929_p5), 4352 }
  0x5e   : > { %v2176_v1 = vpack.c.bf16 (!%p1929_p5), %v411_v0, %v411_v0  ;;  %410 = vst [vmem:[#allocation4] sm:$0xff] (!%p1929_p5), %v411_v0  ;;  %s2508_s28 = smov (!%p1929_p5), 16   ;;  %406 = vst.msk [vmem:[#allocation2 + $0x8] sm:$0x11] (!%p1929_p5), %vm405_vm5, %v2507_v5  ;;  %vm430_vm0 = vcmask (!%p1929_p5), 130048  }
  0x5f   : > { %408 = vst.msk [vmem:[#allocation3 + $0x8] sm:$0x11] (!%p1929_p5), %vm405_vm5, %v2507_v5  ;;  %vm437_vm10 = vmand (!%p1929_p5), %vm435_vm6, %vm436_vm7 }
  0x60   : > { %v417_v2 = vshrl.u32 (!%p1929_p5), %v2176_v1, 16  ;;  %v420_v3 = vshll.u32 (!%p1929_p5), %v2176_v1, 16  ;;  %vm440_vm11 = vmand (!%p1929_p5), %vm438_vm8, %vm439_vm9 }
  0x61   : > { %vm441_vm1 = vmor (!%p1929_p5), %vm440_vm11, %vm437_vm10 }
  0x62   : > { %v419_v4 = vrot.slane %v417_v2, 7  ;;  %vm447_vm2 = vmand %vm445_vm12, %vm446_vm13 }
  0x63   : > { %v442_v10 = vld [vmem:[#allocation2] sm:$0xff]  ;;  %vm450_vm3 = vmand %vm448_vm14, %vm449_vm15 }
  0x64   : > { %v422_v6 = vor.u32 %v420_v3, %v419_v4  ;;  %v423_v7 = vrot.slane %v419_v4, 4  ;;  %vm451_vm4 = vmor %vm450_vm3, %vm447_vm2 }
  0x65   : > { %v452_v15 = vld [vmem:[#allocation2 + $0x8] sm:$0x11] }
  0x66   : > { %424 = vrot.lane.b32.xlu0 %v422_v6, %s2508_s28 }
  0x6a   : > { %426 = vrot.lane.b32.xlu0 %v423_v7, %s2508_s28 }
  0xd8   : > { %v425_v8 = vpop.permute.xlu0 %424 }
  0xd9   : > { %v428_v9 = vrot.slane %v425_v8, 4 }
  0xdb   : > { %v431_v11 = vsel %vm430_vm0, %v428_v9, %v425_v8 }
  0xdc   : > { %v443_v12 = vsel %vm441_vm1, %v431_v11, %v442_v10  ;;  %v427_v13 = vpop.permute.xlu0 %426 }
  0xdd   : > { %444 = vst [vmem:[#allocation2] sm:$0xff] %v443_v12  ;;  %v429_v14 = vrot.slane %v427_v13, 4 }
  0xdf   : > { %v432_v16 = vsel %vm430_vm0, %v429_v14, %v427_v13 }
  0xe0   : > { %v453_v17 = vsel %vm451_vm4, %v432_v16, %v452_v15 }
  0xe1   : > { %454 = vst [vmem:[#allocation2 + $0x8] sm:$0x11] %v453_v17 }
  0xe2 PF: > { %v2267_v18 = vld [vmem:[%s2713_s1 + $0x50] sm:$0xff]   ;;  %v2509_v19 = vmov 0   ;;  %v2268_v20 = vld [vmem:[%s2713_s1] sm:$0xff]   ;;  %v2269_v21 = vld [vmem:[%s2713_s1 + $0x58] sm:$0xff]   ;;  %vm603_vm5 = vcmask 261120   ;;  %s2510_s21 = smov 16  }
  0xe3   : > { %607 = vmatprep.subr.bf16.mxu0 %v2509_v19  ;;  %713 = vmatprep.subr.bf16.mxu1 %v2509_v19  ;;  %v2270_v22 = vld [vmem:[%s2713_s1 + $0x8] sm:$0xff]   ;;  %v2271_v23 = vld [vmem:[%s2713_s1 + $0x60] sm:$0xff]   ;;  %v2272_v24 = vld [vmem:[%s2713_s1 + $0x10] sm:$0xff]   ;;  %vm897_vm6 = vcmask 1043584   ;;  %vm898_vm7 = vsmask.f32 7938 }
  0xe4   : > { %608 = vmatpush1.bf16.msra.mxu0 %v2267_v18  ;;  %714 = vmatpush1.bf16.msra.mxu1 %v2268_v20  ;;  %v2273_v25 = vld [vmem:[%s2713_s1 + $0x68] sm:$0xff]   ;;  %v2274_v26 = vld [vmem:[%s2713_s1 + $0x18] sm:$0xff]   ;;  %v2275_v27 = vld [vmem:[%s2713_s1 + $0x70] sm:$0xff]   ;;  %vm900_vm8 = vcmask 130052   ;;  %vm901_vm9 = vsmask.f32 7954 }
  0xe5   : > { %609 = vmatprep.subr.bf16.mxu0 %v2509_v19  ;;  %715 = vmatprep.subr.bf16.mxu1 %v2509_v19  ;;  %v2276_v28 = vld [vmem:[%s2713_s1 + $0x20] sm:$0xff]   ;;  %v2277_v29 = vld [vmem:[%s2713_s1 + $0x78] sm:$0xff]   ;;  %v2278_v30 = vld [vmem:[%s2713_s1 + $0x28] sm:$0xff]   ;;  %vm907_vm12 = vcmask 1040512   ;;  %vm908_vm13 = vsmask.f32 256 }
  0xe6   : > { %v2775_v31 = vld [vmem:[#allocation2] sm:$0xff]  ;;  %v2279_v35 = vld [vmem:[%s2713_s1 + $0x80] sm:$0xff]   ;;  %v2280_v36 = vld [vmem:[%s2713_s1 + $0x30] sm:$0xff]   ;;  %vm910_vm14 = vcmask 126980   ;;  %vm911_vm15 = vsmask.f32 4352 }
  0xe7   : > { %v1985_v34 = vcombine.high %v2775_v31, %v2775_v31  ;;  %v2281_v40 = vld [vmem:[%s2713_s1 + $0x88] sm:$0xff]   ;;  %v2282_v42 = vld [vmem:[%s2713_s1 + $0x38] sm:$0xff]   ;;  %v2283_v45 = vld [vmem:[%s2713_s1 + $0x90] sm:$0xff]   ;;  %v1984_v56 = vcombine.low %v2775_v31, %v2775_v31  ;;  %vm892_vm0 = vcmask 130048   ;;  %p2093_p8 = scmp.ne.s32.totalorder %s2485_s27, 3 }
  0xe8   : > { %610 = vmatpush1.bf16.msra.mxu0 %v2269_v21  ;;  %716 = vmatpush1.bf16.msra.mxu1 %v2270_v22  ;;  %v2777_v32 = vld [vmem:[#allocation2 + $0x8] sm:$0x11]  ;;  %v753_v49 = vld [vmem:[#allocation2] sm:$0xee]  ;;  %vm2876_vm10 = vmand %vm897_vm6, %vm898_vm7 }
  0xe9   : > { %611 = vmatprep.subr.bf16.mxu0 %v2509_v19  ;;  %717 = vmatprep.subr.bf16.mxu1 %v2509_v19  ;;  %v1972_v33 = vcombine.high %v2775_v31, %v2777_v32  ;;  %v1971_v39 = vcombine.low %v2775_v31, %v2777_v32  ;;  %v2284_v46 = vld [vmem:[%s2713_s1 + $0x40] sm:$0xff]   ;;  %v2285_v50 = vld [vmem:[%s2713_s1 + $0x98] sm:$0xff]   ;;  %v1998_v51 = vcombine.high %v753_v49, %v2777_v32  ;;  %v2286_v52 = vld [vmem:[%s2713_s1 + $0x48] sm:$0xff]  }
  0xea   : > { %1996 = vmatprep.mubr.msk.bf16.mxu1 %vm603_vm5, %v1985_v34  ;;  %v2291_v54 = vld [vmem:[%s2713_s1 + $0xa0] sm:$0xff]   ;;  %v2292_v57 = vld [vmem:[%s2713_s1 + $0xa8] sm:$0xff]   ;;  %v2293_v58 = vld [vmem:[%s2713_s1 + $0xb0] sm:$0xff]   ;;  %v1997_v1 = vcombine.low %v753_v49, %v2777_v32  ;;  %v2511_v49 = vmov (!%p2093_p8), 0  }
  0xeb   : > { %v536_v37 = vshrl.u32 %v1972_v33, 16  ;;  %v538_v38 = vshll.u32 %v1972_v33, 16  ;;  %v531_v44 = vshll.u32 %v1971_v39, 16  ;;  %v529_v47 = vshrl.u32 %v1971_v39, 16  ;;  %v2294_v59 = vld [vmem:[%s2713_s1 + $0xb8] sm:$0xff]   ;;  %v2295_v60 = vld [vmem:[%s2713_s1 + $0xc0] sm:$0xff]   ;;  %vm2880_vm11 = vmand %vm900_vm8, %vm901_vm9 }
  0xec   : > { %612 = vmatpush1.bf16.msra.mxu0 %v2271_v23  ;;  %718 = vmatpush1.bf16.msra.mxu1 %v2272_v24  ;;  %v760_v53 = vrot.slane %v1998_v51, 1  ;;  %v2296_v61 = vld [vmem:[%s2713_s1 + $0xc8] sm:$0xff]   ;;  %v2297_v62 = vld [vmem:[%s2713_s1 + $0xd0] sm:$0xff]   ;;  %v2298_v63 = vld [vmem:[%s2713_s1 + $0xd8] sm:$0xff]   ;;  %v759_v3 = vrot.slane %v1997_v1, 1 }
  0xed   : > { %613 = vmatprep.subr.bf16.mxu0 %v2509_v19  ;;  %719 = vmatprep.subr.bf16.mxu1 %v2509_v19  ;;  %v540_v41 = vrot.slane %v538_v38, 1  ;;  %v533_v48 = vrot.slane %v531_v44, 1  ;;  %v2299_v0 = vld [vmem:[%s2713_s1 + $0xe0] sm:$0xff]   ;;  %v2300_v2 = vld [vmem:[%s2713_s1 + $0xe8] sm:$0xff]   ;;  %v2306_v5 = vld [vmem:[%s2719_s18 + $0x50] sm:$0xff]  }
  0xee   : > { %v2303_v4 = vld [vmem:[%s2719_s18] sm:$0xff]   ;;  %v2304_v6 = vld [vmem:[%s2719_s18 + $0x8] sm:$0xff]   ;;  %v2308_v7 = vld [vmem:[%s2719_s18 + $0x58] sm:$0xff]  }
  0xef   : > { %v541_v43 = vor.u32 %v540_v41, %v536_v37  ;;  %v534_v55 = vor.u32 %v533_v48, %v529_v47  ;;  %v2305_v8 = vld [vmem:[%s2719_s18 + $0x10] sm:$0xff]   ;;  %v2310_v9 = vld [vmem:[%s2719_s18 + $0x60] sm:$0xff]   ;;  %v2307_v10 = vld [vmem:[%s2719_s18 + $0x18] sm:$0xff]  }
  0xf0   : > { %614 = vmatpush1.bf16.msra.mxu0 %v2273_v25  ;;  %720 = vmatpush1.bf16.msra.mxu1 %v2274_v26  ;;  %v2312_v11 = vld [vmem:[%s2719_s18 + $0x68] sm:$0xff]   ;;  %v2309_v12 = vld [vmem:[%s2719_s18 + $0x20] sm:$0xff]   ;;  %v2313_v24 = vld [vmem:[%s2719_s18 + $0x30] sm:$0xff]  }
  0xf1   : > { %615 = vmatprep.subr.bf16.mxu0 %v2509_v19  ;;  %721 = vmatprep.subr.bf16.mxu1 %v2509_v19  ;;  %v2311_v13 = vld [vmem:[%s2719_s18 + $0x28] sm:$0xff]   ;;  %v2315_v25 = vld [vmem:[%s2719_s18 + $0x38] sm:$0xff]   ;;  %v2314_v32 = vld [vmem:[%s2719_s18 + $0x70] sm:$0xff]  }
  0xf2   : > { %1983 = vmatprep.mubr.msk.bf16.mxu0 %vm603_vm5, %v541_v43  ;;  %v2010_v26 = vld [vmem:[%s386_s9] ss:$0 sm:$0xff]  ;;  %v2318_v41 = vld [vmem:[%s2719_s18 + $0x80] sm:$0xff]   ;;  %vm903_vm1 = vmor %vm2880_vm11, %vm2876_vm10 }
  0xf3   : > { %v2316_v38 = vld [vmem:[%s2719_s18 + $0x78] sm:$0xff]   ;;  %v2320_v44 = vld [vmem:[%s2719_s18 + $0x88] sm:$0xff]   ;;  %vm2888_vm2 = vmand %vm907_vm12, %vm908_vm13 }
  0xf4   : > { %616 = vmatpush1.bf16.msra.mxu0 %v2275_v27  ;;  %722 = vmatpush1.bf16.msra.mxu1 %v2276_v28  ;;  %v2317_v28 = vld [vmem:[%s2719_s18 + $0x40] sm:$0xff]   ;;  %v2322_v48 = vld [vmem:[%s2719_s18 + $0x98] sm:$0xff]   ;;  %vm2892_vm3 = vmand %vm910_vm14, %vm911_vm15 }
  0xf5   : > { %617 = vmatprep.subr.bf16.mxu0 %v2509_v19  ;;  %723 = vmatprep.subr.bf16.mxu1 %v2509_v19  ;;  %vm913_vm4 = vmor %vm2892_vm3, %vm2888_vm2 }
  0xf8   : > { %618 = vmatpush1.bf16.msra.mxu0 %v2277_v29  ;;  %724 = vmatpush1.bf16.msra.mxu1 %v2278_v30 }
  0xf9   : > { %619 = vmatprep.subr.bf16.mxu0 %v2509_v19  ;;  %725 = vmatprep.subr.bf16.mxu1 %v2509_v19 }
  0xfc   : > { %620 = vmatpush1.bf16.msra.mxu0 %v2279_v35  ;;  %726 = vmatpush1.bf16.msra.mxu1 %v2280_v36  ;;  %v2319_v36 = vld [vmem:[%s2719_s18 + $0x48] sm:$0xff]  }
  0xfd   : > { %621 = vmatprep.subr.bf16.mxu0 %v2509_v19  ;;  %727 = vmatprep.subr.bf16.mxu1 %v2509_v19 }
 0x100   : > { %622 = vmatpush1.bf16.msra.mxu0 %v2281_v40  ;;  %728 = vmatpush1.bf16.msra.mxu1 %v2282_v42 }
 0x101   : > { %623 = vmatprep.subr.bf16.mxu0 %v2509_v19  ;;  %729 = vmatprep.subr.bf16.mxu1 %v2509_v19 }
 0x104   : > { %624 = vmatpush1.bf16.msra.mxu0 %v2283_v45  ;;  %730 = vmatpush1.bf16.msra.mxu1 %v2284_v46  ;;  %v2321_v46 = vld [vmem:[%s2719_s18 + $0x90] sm:$0xff]  }
 0x105   : > { %625 = vmatprep.subr.bf16.mxu0 %v2509_v19  ;;  %731 = vmatprep.subr.bf16.mxu1 %v2509_v19 }
 0x108   : > { %626 = vmatpush1.bf16.msra.mxu0 %v2285_v50  ;;  %732 = vmatpush1.bf16.msra.mxu1 %v2286_v52  ;;  %v904_v52 = vld [vmem:[#allocation3] sm:$0xff]  ;;  %v2336_v50 = vld [vmem:[%s3118_s5] sm:$0xff] (!%p2093_p8)  }
 0x109   : > { %825 = vmatprep.subr.bf16.mxu0 %v2509_v19  ;;  %1068 = vmatprep.subr.bf16.mxu1 %v2509_v19 }
 0x10b   : > { %640 = vmatmul.mubr.bf16.vlgmr.msra.gmra.mrb[0].mxu0 %v534_v55  ;;  %746 = vmatmul.mubr.bf16.vlgmr.msra.gmra.mrb[0].mxu1 %v1984_v56  ;;  %v2338_v55 = vld [vmem:[%s3118_s5 + $0x8] sm:$0xff] (!%p2093_p8)  }
 0x10c   : > { %826 = vmatpush1.bf16.msra.mxu0 %v2291_v54  ;;  %2009 = vmatprep.mubr.msk.bf16.mxu0 %vm603_vm5, %v760_v53  ;;  %v2337_v54 = vld [vmem:[%s3118_s5 + $0x58] sm:$0xff] (!%p2093_p8)  }
 0x10d   : > { %827 = vmatprep.subr.bf16.mxu0 %v2509_v19  ;;  %1069 = vmatpush1.bf16.msra.mxu1 %v2306_v5 }
 0x10e   : > { %1070 = vmatprep.subr.bf16.mxu1 %v2509_v19 }
 0x110   : > { %828 = vmatpush1.bf16.msra.mxu0 %v2292_v57 }
 0x111   : > { %829 = vmatprep.subr.bf16.mxu0 %v2509_v19  ;;  %1071 = vmatpush1.bf16.msra.mxu1 %v2308_v7 }
 0x112   : > { %1072 = vmatprep.subr.bf16.mxu1 %v2509_v19 }
 0x114   : > { %830 = vmatpush1.bf16.msra.mxu0 %v2293_v58 }
 0x115   : > { %831 = vmatprep.subr.bf16.mxu0 %v2509_v19  ;;  %1073 = vmatpush1.bf16.msra.mxu1 %v2310_v9 }
 0x116   : > { %1074 = vmatprep.subr.bf16.mxu1 %v2509_v19 }
 0x118   : > { %832 = vmatpush1.bf16.msra.mxu0 %v2294_v59  ;;  %v914_v59 = vld [vmem:[#allocation3 + $0x8] sm:$0x11] }
 0x119   : > { %833 = vmatprep.subr.bf16.mxu0 %v2509_v19  ;;  %1075 = vmatpush1.bf16.msra.mxu1 %v2312_v11 }
 0x11a   : > { %1076 = vmatprep.subr.bf16.mxu1 %v2509_v19 }
 0x11c   : > { %834 = vmatpush1.bf16.msra.mxu0 %v2295_v60 }
 0x11d   : > { %835 = vmatprep.subr.bf16.mxu0 %v2509_v19  ;;  %1077 = vmatpush1.bf16.msra.mxu1 %v2314_v32 }
 0x11e   : > { %1078 = vmatprep.subr.bf16.mxu1 %v2509_v19 }
 0x120   : > { %836 = vmatpush1.bf16.msra.mxu0 %v2296_v61 }
 0x121   : > { %837 = vmatprep.subr.bf16.mxu0 %v2509_v19  ;;  %1079 = vmatpush1.bf16.msra.mxu1 %v2316_v38  ;;  %v2091_v38 = vld [vmem:[%s389_s13] ss:$0 sm:$0xff] }
 0x122   : > { %1080 = vmatprep.subr.bf16.mxu1 %v2509_v19 }
 0x124   : > { %838 = vmatpush1.bf16.msra.mxu0 %v2297_v62 }
 0x125   : > { %839 = vmatprep.subr.bf16.mxu0 %v2509_v19  ;;  %1081 = vmatpush1.bf16.msra.mxu1 %v2318_v41 }
 0x126   : > { %1082 = vmatprep.subr.bf16.mxu1 %v2509_v19 }
 0x128   : > { %840 = vmatpush1.bf16.msra.mxu0 %v2298_v63 }
 0x129   : > { %841 = vmatprep.subr.bf16.mxu0 %v2509_v19  ;;  %1083 = vmatpush1.bf16.msra.mxu1 %v2320_v44  ;;  %v1334_v44 = vld [vmem:[#allocation4] sm:$0xff] }
 0x12a   : > { %1084 = vmatprep.subr.bf16.mxu1 %v2509_v19 }
 0x12c   : > { %842 = vmatpush1.bf16.msra.mxu0 %v2299_v0 }
 0x12d   : > { %843 = vmatprep.subr.bf16.mxu0 %v2509_v19  ;;  %1085 = vmatpush1.bf16.msra.mxu1 %v2321_v46 }
 0x12e   : > { %1086 = vmatprep.subr.bf16.mxu1 %v2509_v19 }
 0x130   : > { %844 = vmatpush1.bf16.msra.mxu0 %v2300_v2 }
 0x131   : > { %1174 = vmatprep.subr.bf16.mxu0 %v2509_v19  ;;  %1087 = vmatpush1.bf16.msra.mxu1 %v2322_v48 }
 0x132   : > { %1286 = vmatprep.subr.bf16.mxu1 %v2509_v19 }
 0x133   : > { %858 = vmatmul.mubr.bf16.vlgmr.msra.gmra.mrb[4].mxu0 %v759_v3 }
 0x134   : > { %1175 = vmatpush1.bf16.msra.mxu0 %v2303_v4 }
 0x135   : > { %1176 = vmatprep.subr.bf16.mxu0 %v2509_v19 }
 0x138   : > { %1177 = vmatpush1.bf16.msra.mxu0 %v2304_v6 }
 0x139   : > { %1178 = vmatprep.subr.bf16.mxu0 %v2509_v19 }
 0x13c   : > { %1179 = vmatpush1.bf16.msra.mxu0 %v2305_v8 }
 0x13d   : > { %1180 = vmatprep.subr.bf16.mxu0 %v2509_v19 }
 0x140   : > { %1181 = vmatpush1.bf16.msra.mxu0 %v2307_v10 }
 0x141   : > { %1182 = vmatprep.subr.bf16.mxu0 %v2509_v19 }
 0x144   : > { %1183 = vmatpush1.bf16.msra.mxu0 %v2309_v12 }
 0x145   : > { %1184 = vmatprep.subr.bf16.mxu0 %v2509_v19 }
 0x148   : > { %1185 = vmatpush1.bf16.msra.mxu0 %v2311_v13 }
 0x149   : > { %1186 = vmatprep.subr.bf16.mxu0 %v2509_v19 }
 0x14c   : > { %1187 = vmatpush1.bf16.msra.mxu0 %v2313_v24  ;;  %v2332_v24 = vld [vmem:[%s2719_s18 + $0xe0] sm:$0xff]  }
 0x14d   : > { %1188 = vmatprep.subr.bf16.mxu0 %v2509_v19 }
 0x150   : > { %1189 = vmatpush1.bf16.msra.mxu0 %v2315_v25  ;;  %v2333_v25 = vld [vmem:[%s2719_s18 + $0xe8] sm:$0xff]  }
 0x151   : > { %1190 = vmatprep.subr.bf16.mxu0 %v2509_v19 }
 0x154   : > { %1191 = vmatpush1.bf16.msra.mxu0 %v2317_v28 }
 0x155   : > { %1192 = vmatprep.subr.bf16.mxu0 %v2509_v19 }
 0x158   : > { %1193 = vmatpush1.bf16.msra.mxu0 %v2319_v36 }
 0x159   : > { %1522 = vmatprep.subr.bf16.mxu0 (!%p2093_p8), %v2511_v49 }
 0x1de   : > { %v641_v14 = vpop.f32.mrb[0].mxu0  ;;  %v747_v16 = vpop.f32.mrb[0].mxu1 }
 0x1df   : > { %v643_v15 = vpop.f32.mrb[1].mxu0  ;;  %v748_v17 = vadd.f32 %v747_v16, %v641_v14  ;;  %v749_v20 = vpop.f32.mrb[1].mxu1  ;;  %v2323_v14 = vld [vmem:[%s2719_s18 + $0xa0] sm:$0xff]   ;;  %v2325_v16 = vld [vmem:[%s2719_s18 + $0xa8] sm:$0xff]  }
 0x1e0   : > { %v644_v18 = vpop.f32.mrb[2].mxu0  ;;  %v750_v22 = vpop.f32.mrb[2].mxu1  ;;  %v2328_v20 = vld [vmem:[%s2719_s18 + $0xc0] sm:$0xff]  }
 0x1e1   : > { %v645_v21 = vpop.f32.mrb[3].mxu0  ;;  %v751_v23 = vpop.f32.mrb[3].mxu1  ;;  %v2327_v18 = vld [vmem:[%s2719_s18 + $0xb8] sm:$0xff]   ;;  %v2330_v22 = vld [vmem:[%s2719_s18 + $0xd0] sm:$0xff]  }
 0x1e2   : > { %v2329_v21 = vld [vmem:[%s2719_s18 + $0xc8] sm:$0xff]   ;;  %v2331_v23 = vld [vmem:[%s2719_s18 + $0xd8] sm:$0xff]  }
 0x206   : > { %v859_v27 = vpop.f32.mrb[4].mxu0 }
 0x207   : > { %v865_v29 = vadd.f32 %v859_v27, %v748_v17  ;;  %v861_v30 = vpop.f32.mrb[5].mxu0  ;;  %v2326_v17 = vld [vmem:[%s2719_s18 + $0xb0] sm:$0xff]  }
 0x208   : > { %v862_v33 = vpop.f32.mrb[6].mxu0 }
 0x209   : > { %v872_v34 = vadd.f32 %v2010_v26, %v865_v29  ;;  %v863_v35 = vpop.f32.mrb[7].mxu0 }
 0x20b   : > { %v873_v37 = vmax.f32 %v872_v34, 0.0 }
 0x20d   : > { %v2177_v39 = vpack.c.bf16 %v873_v37, %v873_v37 }
 0x20f   : > { %v879_v40 = vshrl.u32 %v2177_v39, 16  ;;  %v882_v43 = vshll.u32 %v2177_v39, 16 }
 0x211   : > { %v881_v42 = vrot.slane %v879_v40, 7 }
 0x213   : > { %v884_v45 = vor.u32 %v882_v43, %v881_v42  ;;  %v885_v47 = vrot.slane %v881_v42, 4 }
 0x215   : > { %886 = vrot.lane.b32.xlu0 %v884_v45, %s2510_s21 }
 0x219   : > { %888 = vrot.lane.b32.xlu0 %v885_v47, %s2510_s21 }
 0x287   : > { %v887_v51 = vpop.permute.xlu0 %886 }
 0x288   : > { %v890_v53 = vrot.slane %v887_v51, 4 }
 0x28a   : > { %v893_v56 = vsel %vm892_vm0, %v890_v53, %v887_v51 }
 0x28b   : > { %v905_v57 = vsel %vm903_vm1, %v893_v56, %v904_v52  ;;  %v889_v58 = vpop.permute.xlu0 %888 }
 0x28c   : > { %906 = vst [vmem:[#allocation3] sm:$0xff] %v905_v57  ;;  %v891_v60 = vrot.slane %v889_v58, 4  ;;  %v2066_v61 = vcombine.high %v905_v57, %v905_v57  ;;  %v2065_v62 = vcombine.low %v905_v57, %v905_v57 }
 0x28e   : > { %v894_v63 = vsel %vm892_vm0, %v891_v60, %v889_v58  ;;  %2077 = vmatprep.mubr.msk.bf16.mxu0 %vm603_vm5, %v2066_v61 }
 0x28f   : > { %v915_v0 = vsel %vm913_vm4, %v894_v63, %v914_v59  ;;  %1207 = vmatmul.mubr.bf16.vlgmr.msra.gmra.mrb[8].mxu0 %v2065_v62  ;;  %v1364_v62 = vld [vmem:[#allocation2 + $0x8] sm:$0x11] }
 0x290   : > { %916 = vst [vmem:[#allocation3 + $0x8] sm:$0x11] %v915_v0 }
 0x293   : > { %v1214_v6 = vld [vmem:[#allocation3] sm:$0xee] }
 0x297   : > { %v981_v1 = vld [vmem:[#allocation3 + $0x8] sm:$0x11] }
 0x298   : > { %v2053_v2 = vcombine.high %v905_v57, %v981_v1  ;;  %v2052_v3 = vcombine.low %v905_v57, %v981_v1  ;;  %v2079_v7 = vcombine.high %v1214_v6, %v981_v1  ;;  %v2078_v26 = vcombine.low %v1214_v6, %v981_v1  ;;  %v2343_v6 = vld [vmem:[%s3118_s5 + $0x70] sm:$0xff] (!%p2093_p8)  }
 0x29a   : > { %v1000_v4 = vshll.u32 %v2053_v2, 16  ;;  %v993_v5 = vshll.u32 %v2052_v3, 16  ;;  %v998_v8 = vshrl.u32 %v2053_v2, 16  ;;  %v991_v10 = vshrl.u32 %v2052_v3, 16  ;;  %v2339_v2 = vld [vmem:[%s3118_s5 + $0x60] sm:$0xff] (!%p2093_p8)   ;;  %v2340_v3 = vld [vmem:[%s3118_s5 + $0x10] sm:$0xff] (!%p2093_p8)  }
 0x29b   : > { %v1221_v15 = vrot.slane %v2079_v7, 1  ;;  %v1220_v27 = vrot.slane %v2078_v26, 1  ;;  %v2344_v7 = vld [vmem:[%s3118_s5 + $0x20] sm:$0xff] (!%p2093_p8)  }
 0x29c   : > { %v1002_v9 = vrot.slane %v1000_v4, 1  ;;  %v995_v11 = vrot.slane %v993_v5, 1  ;;  %v2341_v4 = vld [vmem:[%s3118_s5 + $0x68] sm:$0xff] (!%p2093_p8)   ;;  %v2342_v5 = vld [vmem:[%s3118_s5 + $0x18] sm:$0xff] (!%p2093_p8)   ;;  %v2352_v26 = vld [vmem:[%s3118_s5 + $0x40] sm:$0xff] (!%p2093_p8)  }
 0x29e   : > { %v1003_v12 = vor.u32 %v1002_v9, %v998_v8  ;;  %v996_v13 = vor.u32 %v995_v11, %v991_v10  ;;  %v2345_v8 = vld [vmem:[%s3118_s5 + $0x78] sm:$0xff] (!%p2093_p8)   ;;  %v2346_v9 = vld [vmem:[%s3118_s5 + $0x28] sm:$0xff] (!%p2093_p8)  }
 0x2a0   : > { %2064 = vmatprep.mubr.msk.bf16.mxu1 %vm603_vm5, %v1003_v12 }
 0x2a1   : > { %1101 = vmatmul.mubr.bf16.vlgmr.msra.gmra.mrb[4].mxu1 %v996_v13 }
 0x2a2   : > { %1287 = vmatpush1.bf16.msra.mxu1 %v2323_v14  ;;  %2090 = vmatprep.mubr.msk.bf16.mxu1 %vm603_vm5, %v1221_v15  ;;  %v2347_v14 = vld [vmem:[%s3118_s5 + $0x80] sm:$0xff] (!%p2093_p8)   ;;  %v2348_v15 = vld [vmem:[%s3118_s5 + $0x30] sm:$0xff] (!%p2093_p8)  }
 0x2a3   : > { %1288 = vmatprep.subr.bf16.mxu1 %v2509_v19 }
 0x2a6   : > { %1289 = vmatpush1.bf16.msra.mxu1 %v2325_v16 }
 0x2a7   : > { %1290 = vmatprep.subr.bf16.mxu1 %v2509_v19 }
 0x2aa   : > { %1291 = vmatpush1.bf16.msra.mxu1 %v2326_v17 }
 0x2ab   : > { %1292 = vmatprep.subr.bf16.mxu1 %v2509_v19 }
 0x2ae   : > { %1293 = vmatpush1.bf16.msra.mxu1 %v2327_v18  ;;  %v2349_v18 = vld [vmem:[%s3118_s5 + $0x88] sm:$0xff] (!%p2093_p8)  }
 0x2af   : > { %1294 = vmatprep.subr.bf16.mxu1 %v2509_v19 }
 0x2b2   : > { %1295 = vmatpush1.bf16.msra.mxu1 %v2328_v20 }
 0x2b3   : > { %1296 = vmatprep.subr.bf16.mxu1 %v2509_v19 }
 0x2b6   : > { %1297 = vmatpush1.bf16.msra.mxu1 %v2329_v21 }
 0x2b7   : > { %1298 = vmatprep.subr.bf16.mxu1 %v2509_v19 }
 0x2ba   : > { %1299 = vmatpush1.bf16.msra.mxu1 %v2330_v22  ;;  %v2350_v22 = vld [vmem:[%s3118_s5 + $0x38] sm:$0xff] (!%p2093_p8)  }
 0x2bb   : > { %1300 = vmatprep.subr.bf16.mxu1 %v2509_v19 }
 0x2be   : > { %1301 = vmatpush1.bf16.msra.mxu1 %v2331_v23 }
 0x2bf   : > { %1302 = vmatprep.subr.bf16.mxu1 %v2509_v19 }
 0x2c2   : > { %1303 = vmatpush1.bf16.msra.mxu1 %v2332_v24 }
 0x2c3   : > { %1304 = vmatprep.subr.bf16.mxu1 %v2509_v19 }
 0x2c6   : > { %1305 = vmatpush1.bf16.msra.mxu1 %v2333_v25  ;;  %v2351_v25 = vld [vmem:[%s3118_s5 + $0x90] sm:$0xff] (!%p2093_p8)  }
 0x2c7   : > { %1628 = vmatprep.subr.bf16.mxu1 (!%p2093_p8), %v2511_v49 }
 0x2c9   : > { %1319 = vmatmul.mubr.bf16.vlgmr.msra.gmra.mrb[8].mxu1 %v1220_v27 }
 0x2ca   : > { %1629 = vmatpush1.bf16.msra.mxu1 (!%p2093_p8), %v2336_v50 }
 0x2cb   : > { %1630 = vmatprep.subr.bf16.mxu1 (!%p2093_p8), %v2511_v49 }
 0x2ce   : > { %1631 = vmatpush1.bf16.msra.mxu1 (!%p2093_p8), %v2338_v55 }
 0x2cf   : > { %1632 = vmatprep.subr.bf16.mxu1 (!%p2093_p8), %v2511_v49 }
 0x2d2   : > { %1633 = vmatpush1.bf16.msra.mxu1 (!%p2093_p8), %v2340_v3 }
 0x2d3   : > { %1634 = vmatprep.subr.bf16.mxu1 (!%p2093_p8), %v2511_v49 }
 0x2d6   : > { %1635 = vmatpush1.bf16.msra.mxu1 (!%p2093_p8), %v2342_v5 }
 0x2d7   : > { %1636 = vmatprep.subr.bf16.mxu1 (!%p2093_p8), %v2511_v49 }
 0x2da   : > { %1637 = vmatpush1.bf16.msra.mxu1 (!%p2093_p8), %v2344_v7 }
 0x2db   : > { %1638 = vmatprep.subr.bf16.mxu1 (!%p2093_p8), %v2511_v49 }
 0x2de   : > { %1639 = vmatpush1.bf16.msra.mxu1 (!%p2093_p8), %v2346_v9 }
 0x2df   : > { %1640 = vmatprep.subr.bf16.mxu1 (!%p2093_p8), %v2511_v49 }
 0x2e2   : > { %1641 = vmatpush1.bf16.msra.mxu1 (!%p2093_p8), %v2348_v15 }
 0x2e3   : > { %1642 = vmatprep.subr.bf16.mxu1 (!%p2093_p8), %v2511_v49 }
 0x2e6   : > { %1643 = vmatpush1.bf16.msra.mxu1 (!%p2093_p8), %v2350_v22 }
 0x2e7   : > { %1644 = vmatprep.subr.bf16.mxu1 (!%p2093_p8), %v2511_v49 }
 0x2ea   : > { %1645 = vmatpush1.bf16.msra.mxu1 (!%p2093_p8), %v2352_v26 }
 0x2eb   : > { %1646 = vmatprep.subr.bf16.mxu1 (!%p2093_p8), %v2511_v49 }
 0x362   : > { %v1208_v28 = vpop.f32.mrb[8].mxu0 }
 0x363   : > { %v1210_v29 = vpop.f32.mrb[9].mxu0 }
 0x364   : > { %v1211_v30 = vpop.f32.mrb[10].mxu0 }
 0x365   : > { %v1212_v32 = vpop.f32.mrb[11].mxu0  ;;  %v2353_v30 = vld [vmem:[%s3118_s5 + $0x98] sm:$0xff] (!%p2093_p8)  }
 0x366   : > { %v2354_v32 = vld [vmem:[%s3118_s5 + $0x48] sm:$0xff] (!%p2093_p8)  }
 0x367   : > { %1647 = vmatpush1.bf16.msra.mxu1 (!%p2093_p8), %v2354_v32 }
 0x374   : > { %v1102_v33 = vpop.f32.mrb[4].mxu1 }
 0x375   : > { %v1209_v34 = vadd.f32 %v1208_v28, %v1102_v33  ;;  %v1104_v35 = vpop.f32.mrb[5].mxu1 }
 0x376   : > { %v1105_v36 = vpop.f32.mrb[6].mxu1 }
 0x377   : > { %v1106_v37 = vpop.f32.mrb[7].mxu1  ;;  %v2359_v36 = vld [vmem:[%s3118_s5 + $0xa0] sm:$0xff] (!%p2093_p8)  }
 0x39c   : > { %v1320_v39 = vpop.f32.mrb[8].mxu1 }
 0x39d   : > { %v1326_v19 = vadd.f32 %v1320_v39, %v1209_v34  ;;  %v1322_v40 = vpop.f32.mrb[9].mxu1  ;;  %v2361_v39 = vld [vmem:[%s3118_s5 + $0xb0] sm:$0xff] (!%p2093_p8)  }
 0x39e   : > { %v1323_v41 = vpop.f32.mrb[10].mxu1  ;;  %v2363_v40 = vld [vmem:[%s3118_s5 + $0xc0] sm:$0xff] (!%p2093_p8)  }
 0x39f   : > { %v1333_v42 = vadd.f32 %v2091_v38, %v1326_v19  ;;  %v1324_v43 = vpop.f32.mrb[11].mxu1  ;;  %v2360_v38 = vld [vmem:[%s3118_s5 + $0xa8] sm:$0xff] (!%p2093_p8)   ;;  %v2362_v19 = vld [vmem:[%s3118_s5 + $0xb8] sm:$0xff] (!%p2093_p8)  }
 0x3a0   : > { %v2364_v41 = vld [vmem:[%s3118_s5 + $0xc8] sm:$0xff] (!%p2093_p8)   ;;  %v2366_v43 = vld [vmem:[%s3118_s5 + $0xd8] sm:$0xff] (!%p2093_p8)  }
 0x3a1   : > { %v1335_v45 = vmul.f32 0.1, %v1333_v42  ;;  %v2365_v42 = vld [vmem:[%s3118_s5 + $0xd0] sm:$0xff] (!%p2093_p8)  }
 0x3a3   : > { %v1336_v46 = vadd.f32 %v1335_v45, %v1334_v44  ;;  %v2367_v44 = vld [vmem:[%s3118_s5 + $0xe0] sm:$0xff] (!%p2093_p8)  }
 0x3a5   : > { %1337 = vst [vmem:[#allocation4] sm:$0xff] %v1336_v46  ;;  %v2178_v47 = vpack.c.bf16 %v1336_v46, %v1336_v46  ;;  %v2368_v46 = vld [vmem:[%s3118_s5 + $0xe8] sm:$0xff] (!%p2093_p8)  }
 0x3a7   : > { %v1344_v48 = vshrl.u32 %v2178_v47, 16  ;;  %v1347_v52 = vshll.u32 %v2178_v47, 16 }
 0x3a9   : > { %v1346_v51 = vrot.slane %v1344_v48, 7 }
 0x3ab   : > { %v1349_v53 = vor.u32 %v1347_v52, %v1346_v51  ;;  %v1350_v56 = vrot.slane %v1346_v51, 4 }
 0x3ad   : > { %1351 = vrot.lane.b32.xlu1 %v1349_v53, %s2510_s21 }
 0x3b1   : > { %1353 = vrot.lane.b32.xlu1 %v1350_v56, %s2510_s21 }
 0x41f   : > { %v1352_v57 = vpop.permute.xlu1 %1351 }
 0x420   : > { %v1355_v58 = vrot.slane %v1352_v57, 4 }
 0x422   : > { %v1357_v59 = vsel %vm892_vm0, %v1355_v58, %v1352_v57  ;;  %1370 = sbr.rel (%p2093_p8) target bundleno = 1358 (0x54e), region = 64 }
 0x423   : > { %v1362_v60 = vsel %vm903_vm1, %v1357_v59, %v2775_v31  ;;  %v1354_v61 = vpop.permute.xlu1 %1353  ;;  %v2335_v31 = vld [vmem:[%s3118_s5 + $0x50] sm:$0xff] (!%p2093_p8)  }
 0x424   : > { %1363 = vst [vmem:[#allocation2] sm:$0xff] %v1362_v60  ;;  %v1356_v63 = vrot.slane %v1354_v61, 4  ;;  %1523 = vmatpush1.bf16.msra.mxu0 (!%p2093_p8), %v2335_v31 }
 0x425   : > { %1524 = vmatprep.subr.bf16.mxu0 (!%p2093_p8), %v2511_v49 }
 0x426   : > { %v1358_v0 = vsel %vm892_vm0, %v1356_v63, %v1354_v61  ;;  %v2173_v61 = vld [vmem:[%s3119_s6] ss:$0 sm:$0xff] (!%p2093_p8) }
 0x427   : > { %v1365_v1 = vsel %vm913_vm4, %v1358_v0, %v1364_v62 }
 0x428   : > { %1366 = vst [vmem:[#allocation2 + $0x8] sm:$0x11] %v1365_v1  ;;  %1525 = vmatpush1.bf16.msra.mxu0 (!%p2093_p8), %v2337_v54  ;;  %v1788_v1 = vld [vmem:[%s2734_s22] sm:$0xff] (!%p2093_p8) }
 0x429   : > { %1526 = vmatprep.subr.bf16.mxu0 %v2511_v49 }
 0x42b   : > { %v1434_v10 = vld [vmem:[#allocation2] sm:$0xff] }
 0x42c   : > { %1527 = vmatpush1.bf16.msra.mxu0 %v2339_v2  ;;  %v2148_v13 = vcombine.high %v1434_v10, %v1434_v10  ;;  %v1668_v27 = vld [vmem:[#allocation2] sm:$0xee]  ;;  %v2147_v35 = vcombine.low %v1434_v10, %v1434_v10 }
 0x42d   : > { %1528 = vmatprep.subr.bf16.mxu0 %v2511_v49 }
 0x42e   : > { %2159 = vmatprep.mubr.msk.bf16.mxu1 %vm603_vm5, %v2148_v13 }
 0x42f   : > { %v3003_v11 = vld [vmem:[#allocation2 + $0x8] sm:$0x11]  ;;  %1661 = vmatmul.mubr.bf16.vlgmr.msra.gmra.mrb[0].mxu1 %v2147_v35 }
 0x430   : > { %1529 = vmatpush1.bf16.msra.mxu0 %v2341_v4  ;;  %v2135_v12 = vcombine.high %v1434_v10, %v3003_v11  ;;  %v2134_v21 = vcombine.low %v1434_v10, %v3003_v11  ;;  %v2161_v33 = vcombine.high %v1668_v27, %v3003_v11  ;;  %v2160_v45 = vcombine.low %v1668_v27, %v3003_v11 }
 0x431   : > { %1530 = vmatprep.subr.bf16.mxu0 %v2511_v49 }
 0x432   : > { %v1452_v16 = vshrl.u32 %v2135_v12, 16  ;;  %v1454_v17 = vshll.u32 %v2135_v12, 16  ;;  %v1447_v24 = vshll.u32 %v2134_v21, 16  ;;  %v1445_v28 = vshrl.u32 %v2134_v21, 16 }
 0x433   : > { %v1675_v37 = vrot.slane %v2161_v33, 1  ;;  %v1674_v47 = vrot.slane %v2160_v45, 1 }
 0x434   : > { %1531 = vmatpush1.bf16.msra.mxu0 %v2343_v6  ;;  %v1456_v20 = vrot.slane %v1454_v17, 1  ;;  %v1449_v29 = vrot.slane %v1447_v24, 1 }
 0x435   : > { %1532 = vmatprep.subr.bf16.mxu0 %v2511_v49 }
 0x436   : > { %v1457_v23 = vor.u32 %v1456_v20, %v1452_v16  ;;  %v1450_v34 = vor.u32 %v1449_v29, %v1445_v28 }
 0x438   : > { %1533 = vmatpush1.bf16.msra.mxu0 %v2345_v8  ;;  %2146 = vmatprep.mubr.msk.bf16.mxu0 %vm603_vm5, %v1457_v23 }
 0x439   : > { %1534 = vmatprep.subr.bf16.mxu0 %v2511_v49 }
 0x43c   : > { %1535 = vmatpush1.bf16.msra.mxu0 %v2347_v14 }
 0x43d   : > { %1536 = vmatprep.subr.bf16.mxu0 %v2511_v49 }
 0x440   : > { %1537 = vmatpush1.bf16.msra.mxu0 %v2349_v18 }
 0x441   : > { %1538 = vmatprep.subr.bf16.mxu0 %v2511_v49 }
 0x444   : > { %1539 = vmatpush1.bf16.msra.mxu0 %v2351_v25 }
 0x445   : > { %1540 = vmatprep.subr.bf16.mxu0 %v2511_v49 }
 0x448   : > { %1541 = vmatpush1.bf16.msra.mxu0 %v2353_v30 }
 0x449   : > { %1740 = vmatprep.subr.bf16.mxu0 %v2511_v49 }
 0x44b   : > { %1555 = vmatmul.mubr.bf16.vlgmr.msra.gmra.mrb[0].mxu0 %v1450_v34 }
 0x44c   : > { %1741 = vmatpush1.bf16.msra.mxu0 %v2359_v36  ;;  %2172 = vmatprep.mubr.msk.bf16.mxu0 %vm603_vm5, %v1675_v37 }
 0x44d   : > { %1742 = vmatprep.subr.bf16.mxu0 %v2511_v49 }
 0x450   : > { %1743 = vmatpush1.bf16.msra.mxu0 %v2360_v38 }
 0x451   : > { %1744 = vmatprep.subr.bf16.mxu0 %v2511_v49 }
 0x454   : > { %1745 = vmatpush1.bf16.msra.mxu0 %v2361_v39 }
 0x455   : > { %1746 = vmatprep.subr.bf16.mxu0 %v2511_v49 }
 0x458   : > { %1747 = vmatpush1.bf16.msra.mxu0 %v2362_v19 }
 0x459   : > { %1748 = vmatprep.subr.bf16.mxu0 %v2511_v49 }
 0x45c   : > { %1749 = vmatpush1.bf16.msra.mxu0 %v2363_v40 }
 0x45d   : > { %1750 = vmatprep.subr.bf16.mxu0 %v2511_v49 }
 0x460   : > { %1751 = vmatpush1.bf16.msra.mxu0 %v2364_v41 }
 0x461   : > { %1752 = vmatprep.subr.bf16.mxu0 %v2511_v49 }
 0x464   : > { %1753 = vmatpush1.bf16.msra.mxu0 %v2365_v42 }
 0x465   : > { %1754 = vmatprep.subr.bf16.mxu0 %v2511_v49 }
 0x468   : > { %1755 = vmatpush1.bf16.msra.mxu0 %v2366_v43 }
 0x469   : > { %1756 = vmatprep.subr.bf16.mxu0 %v2511_v49 }
 0x46c   : > { %1757 = vmatpush1.bf16.msra.mxu0 %v2367_v44 }
 0x46d   : > { %1758 = vmatprep.subr.bf16.mxu0 %v2511_v49 }
 0x470   : > { %1759 = vmatpush1.bf16.msra.mxu0 %v2368_v46 }
 0x473   : > { %1773 = vmatmul.mubr.bf16.vlgmr.msra.gmra.mrb[4].mxu0 %v1674_v47 }
 0x502   : > { %v1662_v52 = vpop.f32.mrb[0].mxu1 }
 0x503   : > { %v1664_v57 = vpop.f32.mrb[1].mxu1 }
 0x504   : > { %v1665_v59 = vpop.f32.mrb[2].mxu1 }
 0x505   : > { %v1666_v60 = vpop.f32.mrb[3].mxu1 }
 0x51e   : > { %v1556_v48 = vpop.f32.mrb[0].mxu0 }
 0x51f   : > { %v1558_v51 = vpop.f32.mrb[1].mxu0  ;;  %v1663_v53 = vadd.f32 %v1662_v52, %v1556_v48 }
 0x520   : > { %v1559_v56 = vpop.f32.mrb[2].mxu0 }
 0x521   : > { %v1560_v58 = vpop.f32.mrb[3].mxu0 }
 0x546   : > { %v1774_v62 = vpop.f32.mrb[4].mxu0 }
 0x547   : > { %v1780_v63 = vadd.f32 %v1774_v62, %v1663_v53  ;;  %v1776_v0 = vpop.f32.mrb[5].mxu0 }
 0x548   : > { %v1777_v31 = vpop.f32.mrb[6].mxu0 }
 0x549   : > { %v1787_v49 = vadd.f32 %v2173_v61, %v1780_v63  ;;  %v1778_v50 = vpop.f32.mrb[7].mxu0 }
 0x54b   : > { %v1789_v54 = vadd.f32 %v1788_v1, %v1787_v49 }
 0x54d   : > { %1790 = vst [vmem:[%s2747_s15] sm:$0xff] %v1789_v54 }
 0x54e PF: > { %s23_s8 = sadd.s32 1, %s2501_s8   ;;  %s3143_s11 = sld [smem:[#allocation11_spill]] }
 0x54f   : > { %p20_p2 = scmp.ge.s32.totalorder %s23_s8, 10   ;;  %s3144_s17 = sld [smem:[#allocation12_spill]] }
 0x550   : > { %s3145_s24 = smov %s2477_s25  ;;  %s3146_s25 = smov %s2481_s26 }
 0x551   : > { %s3147_s26 = smov %s2606_s14  ;;  %s3148_s27 = smov %s2493_s29 }
 0x552   : > { %s3149_s28 = smov %s2497_s30  ;;  %22 = sbr.rel (!%p20_p2) target bundleno = 9 (0x9), region = 124 }
 0x554   : > { %s3150_s29 = smov %s3143_s11 }
 0x555   : > { %s3151_s30 = smov %s3144_s17 }
 0x559   :  { %1810 = vsyncpa [#allocation6], 1 }
 0x55a   :  { %1812 = vsyncpa [#allocation6 + $0x1], 1 }
 0x55b   :  { %1813 = vsyncpa [#allocation8], 1 }
 0x55c   :  { %1815 = vsyncpa [#allocation8 + $0x1], 1 }

// kernel: edsr_forward.7
= control target key start
LH: loop header
LB: loop body
LE: loop exit
PB: predicated region body
PF: predicated region fallthrough
CT: control target
= control target key end

     0   :  { %s1505_s12 = smov 0   ;;  %s1838_s0 = inlined_call_operand.vmem [shape: f32[32,256], index: 0, kind: input, shape index: {}]   ;;  %s1839_s1 = inlined_call_operand.vmem [shape: bf16[3,288,48], index: 1, kind: input, shape index: {}]   ;;  %s1840_s2 = inlined_call_operand.vmem [shape: f32[1,48], index: 2, kind: input, shape index: {}]   ;;  %s1841_s3 = inlined_call_operand.vmem [shape: f32[32,48], index: 3, kind: output, shape index: {}]  }
   0x1 LB: > { %s1145_s13 = sadd.s32 4294967295, %s1479_s12   ;;  %p1149_p0 = scmp.ge.s32.totalorder %s1479_s12, 1  ;;  %s1479_s12 = sphi %s1505_s12, %s13_s12  }
   0x2   : > { %p139_p1 = scmp.lt.s32.totalorder %s1479_s12, 3 }
   0x4   : > { %p140_p2 = pnand %p1149_p0, %p139_p1 }
   0x5   : > { %s1150_s14 = sshll.u32 (!%p140_p2), %s1145_s13, 1  ;;  %vm179_vm0 = vsmask.f32 (!%p140_p2), 256  ;;  %vm229_vm1 = vsmask.f32 (!%p140_p2), 4368  ;;  %vm178_vm2 = vcmask (!%p140_p2), 1040384  }
   0x6   : > { %143 = sbr.rel (%p140_p2) target bundleno = 432 (0x1b0), region = 32  ;;  %p165_p3 = scmp.lt.s32.totalorder (!%p140_p2), %s1150_s14, 3  ;;  %v1412_v0 = vld [vmem:[%s1839_s1 + $0xd0] sm:$0xff] (!%p140_p2)   ;;  %vm181_vm3 = vcmask (!%p140_p2), 1044484   ;;  %v1414_v2 = vld [vmem:[%s1839_s1 + $0xd8] sm:$0xff] (!%p140_p2)   ;;  %vm1530_vm4 = vmand (!%p140_p2), %vm178_vm2, %vm179_vm0  ;;  %vm188_vm6 = vcmask (!%p140_p2), 253952  }
   0x7   : > { %v1413_v1 = vld [vmem:[%s1839_s1 + $0x90] sm:$0xff] (!%p140_p2)   ;;  %1301 = vmatprep.subr.bf16.mxu0 (!%p140_p2), %v1412_v0  ;;  %v1415_v3 = vld [vmem:[%s1839_s1 + $0x98] sm:$0xff] (!%p140_p2)   ;;  %vm182_vm5 = vsmask.f32 (!%p140_p2), 4352  ;;  %vm1539_vm7 = vmor (!%p140_p2), %vm179_vm0, %vm229_vm1  ;;  %vm193_vm9 = vsmask.f32 (!%p140_p2), 7938 }
   0x8   : > { %1302 = vmatpush3.bf16.msra.mxu0 (!%p140_p2), %v1413_v1  ;;  %vm1544_vm8 = vmand (!%p140_p2), %vm181_vm3, %vm182_vm5  ;;  %v185_v7 = vld [vmem:[#allocation2] sm:$0x11] (!%p140_p2)  ;;  %v190_v8 = vld [vmem:[#allocation2 + $0x8] sm:$0x1] (!%p140_p2)  ;;  %vm205_vm10 = vcmask (!%p140_p2), 125952   ;;  %vm210_vm11 = vcmask (!%p140_p2), 257152  }
   0x9   : > { %1303 = vmatprep.subr.bf16.mxu0 (!%p140_p2), %v1414_v2  ;;  %vm184_vm12 = vmor (!%p140_p2), %vm1544_vm8, %vm1530_vm4  ;;  %vm195_vm13 = vsmask.f32 (!%p140_p2), 7954  ;;  %v198_v14 = vld [vmem:[#allocation2 + $0x18] sm:$0x11] (!%p140_p2)  ;;  %vm267_vm14 = vcmask (!%p140_p2), 1043584   ;;  %v1481_v15 = vmov (!%p140_p2), 0  }
   0xa   : > { %207 = vst.msk [vmem:[#allocation2 + $0xc] sm:$0xf] (!%p140_p2), %vm205_vm10, %v1481_v15  ;;  %v186_v17 = vsel (!%p140_p2), %vm184_vm12, 0, %v185_v7  ;;  %vm189_vm15 = vmand (!%p140_p2), %vm188_vm6, %vm179_vm0  ;;  %vm269_vm1 = vcmask (!%p140_p2), 1047556   ;;  %v1416_v22 = vld [vmem:[%s1839_s1 + $0xe0] sm:$0xff] (!%p140_p2)   ;;  %v1418_v30 = vld [vmem:[%s1839_s1 + $0xe8] sm:$0xff] (!%p140_p2)  }
   0xb   : > { %212 = vst.msk [vmem:[#allocation2 + $0x14] sm:$0xf] (!%p140_p2), %vm210_vm11, %v1481_v15  ;;  %187 = vst [vmem:[#allocation2] sm:$0x11] (!%p140_p2), %v186_v17  ;;  %v191_v20 = vsel (!%p140_p2), %vm189_vm15, 0, %v190_v8  ;;  %v1417_v25 = vld [vmem:[%s1839_s1 + $0xa0] sm:$0xff] (!%p140_p2)  }
   0xc   : > { %1304 = vmatpush3.bf16.msra.mxu0 (!%p140_p2), %v1415_v3  ;;  %vm1558_vm4 = vmand (!%p140_p2), %vm178_vm2, %vm193_vm9  ;;  %192 = vst [vmem:[#allocation2 + $0x8] sm:$0x1] (!%p140_p2), %v191_v20  ;;  %vm208_vm2 = vcmask (!%p140_p2), 122880   ;;  %v202_v27 = vld [vmem:[#allocation2 + $0x20] sm:$0x1] (!%p140_p2)  ;;  %vm213_vm15 = vcmask (!%p140_p2), 254080  }
   0xd   : > { %s1859_s14 = smov (!%p165_p3, %s1150_s14), 3  ;;  %vm196_vm5 = vmand %vm181_vm3, %vm195_vm13  ;;  %206 = vst.msk [vmem:[#allocation2] sm:$0xf] %vm205_vm10, %v1481_v15  ;;  %1305 = vmatprep.subr.bf16.mxu0 %v1416_v22  ;;  %v1482_v35 = vmov 0.0   ;;  %v1419_v39 = vld [vmem:[%s1839_s1 + $0xa8] sm:$0xff]   ;;  %s1483_s8 = smov 16  }
   0xe   : > { %s1298_s21 = sshll.u32 %s1859_s14, 4  ;;  %vm197_vm12 = vmor %vm196_vm5, %vm1558_vm4  ;;  %211 = vst.msk [vmem:[#allocation2 + $0x8] sm:$0xf] %vm210_vm11, %v1481_v15  ;;  %1376 = vmatprep.subr.bf16.mxu1 %v1482_v35  ;;  %vm285_vm11 = vcmask 1040512   ;;  %v1420_v40 = vld [vmem:[%s1839_s1 + $0xf0] sm:$0xff]   ;;  %v1422_v45 = vld [vmem:[%s1839_s1 + $0xf8] sm:$0xff]  }
   0xf   : > { %s169_s26 = scalar_lea.vmem %s1838_s0, %s1298_s21  ;;  %v199_v29 = vsel %vm197_vm12, 0, %v198_v14  ;;  %vm201_vm3 = vmand %vm188_vm6, %vm193_vm9  ;;  %v1421_v43 = vld [vmem:[%s1839_s1 + $0xb0] sm:$0xff]   ;;  %v1423_v46 = vld [vmem:[%s1839_s1 + $0xb8] sm:$0xff]   ;;  %s1154_s28 = sshll.u32 %s1859_s14, 3 }
  0x10   : > { %v215_v9 = vld [vmem:[%s169_s26] sm:$0xff]  ;;  %v216_v10 = vld [vmem:[%s169_s26 + $0x8] sm:$0xff]  ;;  %v217_v11 = vld [vmem:[%s169_s26 + $0x10] sm:$0xff]  ;;  %1306 = vmatpush3.bf16.msra.mxu0 %v1417_v25  ;;  %200 = vst [vmem:[#allocation2 + $0x18] sm:$0x11] %v199_v29  ;;  %v203_v34 = vsel %vm201_vm3, 0, %v202_v27  ;;  %s175_s6 = scalar_lea.vmem %s1841_s3, %s1154_s28 }
  0x11   : > { %v1299_v12 = vpack.c.bf16 %v216_v10, %v215_v9  ;;  %v218_v13 = vld [vmem:[%s169_s26 + $0x18] sm:$0xff]  ;;  %vm1581_vm4 = vmand %vm267_vm14, %vm193_vm9  ;;  %204 = vst [vmem:[#allocation2 + $0x20] sm:$0x1] %v203_v34  ;;  %1307 = vmatprep.subr.bf16.mxu0 %v1418_v30  ;;  %v1424_v47 = vld [vmem:[%s1839_s1 + $0x110] sm:$0xff]  }
  0x12   : > { %v1300_v16 = vpack.c.bf16 %v218_v13, %v217_v11  ;;  %vm1588_vm6 = vmand %vm269_vm1, %vm195_vm13  ;;  %209 = vst.msk [vmem:[#allocation2 + $0x18] sm:$0x1] %vm208_vm2, %v1481_v15  ;;  %vm1484_vm13 = vmmov 0   ;;  %v1425_v48 = vld [vmem:[%s1839_s1 + $0x100] sm:$0xff]   ;;  %1377 = vmatpush3.bf16.msra.mxu1 %v1424_v47  ;;  %v1427_v50 = vld [vmem:[%s1839_s1 + $0x118] sm:$0xff]  }
  0x13   : > { %v232_v18 = vshrl.u32 %v1299_v12, 16  ;;  %v235_v19 = vshll.u32 %v1299_v12, 16  ;;  %vm271_vm5 = vmor %vm1588_vm6, %vm1581_vm4  ;;  %214 = vst.msk [vmem:[#allocation2 + $0x20] sm:$0x1] %vm213_vm15, %v1481_v15  ;;  %1380 = vmatprep.mubr.msk.bf16.mxu1 %vm1484_vm13, %v1482_v35  ;;  %v1426_v49 = vld [vmem:[%s1839_s1 + $0xc0] sm:$0xff]   ;;  %1378 = vmatprep.subr.bf16.mxu1 %v1482_v35  ;;  %v1428_v51 = vld [vmem:[%s1839_s1 + $0x108] sm:$0xff]  }
  0x14   : > { %v240_v23 = vshrl.u32 %v1300_v16, 16  ;;  %v243_v24 = vshll.u32 %v1300_v16, 16  ;;  %1308 = vmatpush3.bf16.msra.mxu0 %v1419_v39  ;;  %vm1609_vm12 = vmand %vm285_vm11, %vm179_vm0  ;;  %v1429_v52 = vld [vmem:[%s1839_s1 + $0xc8] sm:$0xff]   ;;  %v1430_v53 = vld [vmem:[%s1839_s1 + $0x40] sm:$0xff]  }
  0x15   : > { %v234_v26 = vrot.slane %v232_v18, 7  ;;  %1309 = vmatprep.subr.bf16.mxu0 %v1420_v40  ;;  %vm287_vm15 = vmor %vm1544_vm8, %vm1609_vm12  ;;  %v1435_v54 = vld [vmem:[%s1839_s1 + $0x160] sm:$0xff]   ;;  %v277_v55 = vld [vmem:[#allocation2 + $0x8] sm:$0xf]  ;;  %vm434_vm8 = vsmask.f32 7424 }
  0x16   : > { %v242_v28 = vrot.slane %v240_v23, 7  ;;  %1379 = vmatpush3.bf16.msra.mxu1 %v1427_v50  ;;  %v272_v57 = vld [vmem:[#allocation2] sm:$0xff]  ;;  %v1438_v42 = vld [vmem:[%s1839_s1 + $0x48] sm:$0xff]  }
  0x17   : > { %v237_v31 = vor.u32 %v235_v19, %v234_v26  ;;  %v238_v32 = vrot.slane %v234_v26, 4  ;;  %1326 = vmatprep.subr.bf16.mxu1 %v1430_v53  ;;  %v1433_v33 = vld [vmem:[%s1839_s1] sm:$0xff]   ;;  %v1444_v53 = vld [vmem:[%s1839_s1 + $0x10] sm:$0xff]  }
  0x18   : > { %v247_v36 = vrot.slane %v242_v28, 4  ;;  %v245_v37 = vor.u32 %v243_v24, %v242_v28  ;;  %1310 = vmatpush3.bf16.msra.mxu0 %v1421_v43 }
  0x19   : > { %248 = vrot.lane.b32.xlu0 %v237_v31, %s1483_s8  ;;  %1311 = vmatprep.subr.bf16.mxu0 %v1422_v45  ;;  %v288_v61 = vld [vmem:[#allocation2 + $0x18] sm:$0x11] }
  0x1a   : > { %252 = vrot.lane.b32.xlu1 %v247_v36, %s1483_s8  ;;  %v246_v41 = vsel %vm1539_vm7, %v238_v32, %v245_v37  ;;  %vm1622_vm7 = vmand %vm208_vm2, %vm179_vm0  ;;  %vm257_vm0 = vcmask 130048   ;;  %v293_v59 = vld [vmem:[#allocation2 + $0x20] sm:$0x1] }
  0x1b   : > { %vm276_vm2 = vmand %vm205_vm10, %vm193_vm9 }
  0x1c   : > { %1312 = vmatpush3.bf16.msra.mxu0 %v1423_v46  ;;  %vm282_vm9 = vmor %vm269_vm1, %vm267_vm14  ;;  %vm871_vm14 = vcmask 1046528   ;;  %v1441_v46 = vld [vmem:[%s1839_s1 + $0x168] sm:$0xff]   ;;  %vm1086_vm1 = vcmask 392192  }
  0x1d   : > { %250 = vrot.lane.b32.xlu0 %v246_v41, %s1483_s8  ;;  %1313 = vmatprep.subr.bf16.mxu0 %v1425_v48  ;;  %v1437_v41 = vld [vmem:[%s1839_s1 + $0x120] sm:$0xff]   ;;  %v1440_v48 = vld [vmem:[%s1839_s1 + $0x8] sm:$0xff]  }
  0x20   : > { %1314 = vmatpush3.bf16.msra.mxu0 %v1426_v49  ;;  %v1443_v49 = vld [vmem:[%s1839_s1 + $0x50] sm:$0xff]  }
  0x21   : > { %1315 = vmatprep.subr.bf16.mxu0 %v1428_v51  ;;  %v1442_v51 = vld [vmem:[%s1839_s1 + $0x128] sm:$0xff]  }
  0x24   : > { %1316 = vmatpush3.bf16.msra.mxu0 %v1429_v52  ;;  %v1445_v52 = vld [vmem:[%s1839_s1 + $0x170] sm:$0xff]  }
  0x25   : > { %1351 = vmatprep.subr.bf16.mxu0 %v1435_v54  ;;  %v1447_v54 = vld [vmem:[%s1839_s1 + $0x58] sm:$0xff]  }
  0x8b   : > { %v249_v56 = vpop.permute.xlu0 %248 }
  0x8c   : > { %v254_v58 = vrot.slane %v249_v56, 4  ;;  %v253_v60 = vpop.permute.xlu1 %252 }
  0x8d   : > { %v256_v62 = vrot.slane %v253_v60, 4 }
  0x8e   : > { %v258_v63 = vsel %vm257_vm0, %v254_v58, %v249_v56  ;;  %v278_v0 = vsel %vm276_vm2, %v254_v58, %v277_v55  ;;  %v1446_v55 = vld [vmem:[%s1839_s1 + $0x130] sm:$0xff]   ;;  %v1449_v56 = vld [vmem:[%s1839_s1 + $0x178] sm:$0xff]   ;;  %v1451_v58 = vld [vmem:[%s1839_s1 + $0x60] sm:$0xff]  }
  0x8f   : > { %v273_v1 = vsel %vm271_vm5, %v258_v63, %v272_v57  ;;  %279 = vst [vmem:[#allocation2 + $0x8] sm:$0xf] %v278_v0  ;;  %v260_v2 = vsel %vm257_vm0, %v256_v62, %v253_v60  ;;  %v294_v3 = vsel %vm1622_vm7, %v256_v62, %v293_v59  ;;  %v251_v4 = vpop.permute.xlu0 %250  ;;  %v1448_v57 = vld [vmem:[%s1839_s1 + $0x18] sm:$0xff]   ;;  %v1453_v60 = vld [vmem:[%s1839_s1 + $0x180] sm:$0xff]   ;;  %v1455_v62 = vld [vmem:[%s1839_s1 + $0x68] sm:$0xff]  }
  0x90   : > { %274 = vst [vmem:[#allocation2] sm:$0xff] %v273_v1  ;;  %v289_v5 = vsel %vm287_vm15, %v260_v2, %v288_v61  ;;  %295 = vst [vmem:[#allocation2 + $0x20] sm:$0x1] %v294_v3  ;;  %v255_v7 = vrot.slane %v251_v4, 4  ;;  %v1450_v59 = vld [vmem:[%s1839_s1 + $0x138] sm:$0xff]   ;;  %v1452_v61 = vld [vmem:[%s1839_s1 + $0x20] sm:$0xff]  }
  0x91   : > { %290 = vst [vmem:[#allocation2 + $0x18] sm:$0x11] %v289_v5  ;;  %v1454_v63 = vld [vmem:[%s1839_s1 + $0x140] sm:$0xff]   ;;  %v1457_v0 = vld [vmem:[%s1839_s1 + $0x188] sm:$0xff]   ;;  %v1459_v2 = vld [vmem:[%s1839_s1 + $0x70] sm:$0xff]  }
  0x92   : > { %v259_v8 = vsel %vm257_vm0, %v255_v7, %v251_v4  ;;  %284 = vst.msk [vmem:[#allocation2 + $0x14] sm:$0xf] %vm205_vm10, %v255_v7  ;;  %vm581_vm10 = vcmask 261120   ;;  %v1458_v3 = vld [vmem:[%s1839_s1 + $0x148] sm:$0xff]   ;;  %v1461_v4 = vld [vmem:[%s1839_s1 + $0x190] sm:$0xff]   ;;  %v1463_v7 = vld [vmem:[%s1839_s1 + $0x78] sm:$0xff]  }
  0x93   : > { %283 = vst.msk [vmem:[#allocation2 + $0xc] sm:$0xff] %vm282_vm9, %v259_v8  ;;  %v1460_v5 = vld [vmem:[%s1839_s1 + $0x30] sm:$0xff]  }
  0x94   : > { %v1462_v8 = vld [vmem:[%s1839_s1 + $0x150] sm:$0xff]  }
  0x96   : > { %v408_v11 = vld [vmem:[#allocation2 + $0x8] sm:$0xf] }
  0x97   : > { %v1677_v9 = vld [vmem:[#allocation2 + $0x20] ss:$0 sps:$4 sm:$0x11]   ;;  %v1695_v24 = vld [vmem:[#allocation2] sm:$0xee] }
  0x98   : > { %v411_v10 = vld [vmem:[#allocation2 + $0x18] sm:$0x11]  ;;  %v467_v12 = vshll.u32 %v1677_v9, 16 }
  0x99   : > { %v1679_v6 = vld [vmem:[#allocation2 + $0x14] sm:$0xf]  ;;  %v1233_v13 = vcombine.high %v411_v10, %v411_v10  ;;  %v1682_v14 = vcombine.low %v411_v10, %v411_v10  ;;  %v1465_v10 = vld [vmem:[%s1839_s1 + $0x198] sm:$0xff]  }
  0x9a   : > { %v1685_v15 = vcombine.low %v408_v11, %v1679_v6  ;;  %v1687_v16 = vld [vmem:[#allocation2 + $0xc] sm:$0xff]  ;;  %v469_v22 = vrot.slane %v467_v12, 1  ;;  %v1464_v11 = vld [vmem:[%s1839_s1 + $0x38] sm:$0xff]  }
  0x9b   : > { %v1230_v17 = vcombine.high %v273_v1, %v1687_v16  ;;  %v455_v18 = vshll.u32 %v1233_v13, 16  ;;  %v1691_v19 = vcombine.low %v273_v1, %v1687_v16  ;;  %v443_v21 = vshll.u32 %v1682_v14, 16  ;;  %v1456_v1 = vld [vmem:[%s1839_s1 + $0x28] sm:$0xff]  }
  0x9c   : > { %v462_v20 = vshll.u32 %v1685_v15, 16  ;;  %v460_v25 = vshrl.u32 %v1685_v15, 16  ;;  %v1274_v28 = vcombine.high %v1695_v24, %v1687_v16  ;;  %v876_v44 = vrot.slane %v1233_v13, 1  ;;  %v1466_v13 = vld [vmem:[%s1839_s1 + $0x158] sm:$0xff]  }
  0x9d   : > { %v450_v23 = vshll.u32 %v1230_v17, 16  ;;  %v438_v27 = vshll.u32 %v1691_v19, 16  ;;  %v448_v29 = vshrl.u32 %v1230_v17, 16  ;;  %v457_v31 = vrot.slane %v455_v18, 1 }
  0x9e   : > { %v464_v26 = vrot.slane %v462_v20, 1  ;;  %v436_v34 = vshrl.u32 %v1691_v19, 16  ;;  %v445_v37 = vrot.slane %v443_v21, 1  ;;  %v875_v43 = vrot.slane %v1274_v28, 1  ;;  %v1469_v21 = vld [vmem:[%s1839_s1 + $0x88] sm:$0xff]  }
  0x9f   : > { %v452_v30 = vrot.slane %v450_v23, 1  ;;  %v440_v36 = vrot.slane %v438_v27, 1  ;;  %v1273_v12 = vcombine.low %v1695_v24, %v1687_v16  ;;  %v873_v20 = vrot.slane %v1682_v14, 1  ;;  %v1470_v14 = vld [vmem:[%s1839_s1 + $0x1a0] sm:$0xff]   ;;  %v1471_v23 = vld [vmem:[%s1839_s1 + $0x1a8] sm:$0xff]  }
  0xa0   : > { %v465_v32 = vor.u32 %v464_v26, %v460_v25  ;;  %v877_v50 = vsel %vm871_vm14, %v875_v43, %v876_v44  ;;  %v879_v25 = vrot.slane %v1677_v9, 1 }
  0xa1   : > { %v453_v38 = vor.u32 %v452_v30, %v448_v29  ;;  %v441_v40 = vor.u32 %v440_v36, %v436_v34  ;;  %v872_v18 = vrot.slane %v1273_v12, 1 }
  0xa2   : > { %v470_v39 = vsel %vm434_vm8, %v465_v32, %v469_v22 }
  0xa3   : > { %1381 = vmatmul.mubr.msk.bf16.vlgmr.msra.gmra.mrb[0].mxu1 %vm581_vm10, %v470_v39  ;;  %v458_v45 = vsel %vm434_vm8, %v453_v38, %v457_v31  ;;  %v446_v47 = vsel %vm434_vm8, %v441_v40, %v445_v37  ;;  %v874_v16 = vsel %vm871_vm14, %v872_v18, %v873_v20 }
  0xa4   : > { %1327 = vmatpush3.bf16.msra.mxu1 %v1433_v33  ;;  %617 = vmatprep.mubr.bf16.mxu0 %v458_v45 }
  0xa5   : > { %811 = vmatprep.mubr.bf16.mxu1 %v1230_v17  ;;  %618 = vmatmul.mubr.bf16.vlgmr.msra.gmra.mrb[0].mxu0 %v446_v47  ;;  %v1467_v17 = vld [vmem:[%s1839_s1 + $0x80] sm:$0xff]  }
  0xa6   : > { %1352 = vmatpush3.bf16.msra.mxu0 %v1437_v41  ;;  %1328 = vmatprep.subr.bf16.mxu1 %v1438_v42 }
  0xa7   : > { %1026 = vmatprep.mubr.bf16.mxu0 %v877_v50  ;;  %1353 = vmatprep.subr.bf16.mxu0 %v1441_v46 }
  0xa8   : > { %1329 = vmatpush3.bf16.msra.mxu1 %v1440_v48 }
  0xa9   : > { %1330 = vmatprep.subr.bf16.mxu1 %v1443_v49 }
  0xaa   : > { %1354 = vmatpush3.bf16.msra.mxu0 %v1442_v51 }
  0xab   : > { %1355 = vmatprep.subr.bf16.mxu0 %v1445_v52 }
  0xac   : > { %1331 = vmatpush3.bf16.msra.mxu1 %v1444_v53 }
  0xad   : > { %1332 = vmatprep.subr.bf16.mxu1 %v1447_v54 }
  0xae   : > { %1356 = vmatpush3.bf16.msra.mxu0 %v1446_v55 }
  0xaf   : > { %1357 = vmatprep.subr.bf16.mxu0 %v1449_v56 }
  0xb0   : > { %1333 = vmatpush3.bf16.msra.mxu1 %v1448_v57 }
  0xb1   : > { %1334 = vmatprep.subr.bf16.mxu1 %v1451_v58 }
  0xb2   : > { %1358 = vmatpush3.bf16.msra.mxu0 %v1450_v59  ;;  %v1295_v59 = vld [vmem:[%s1840_s2] ss:$0 sm:$0xff] }
  0xb3   : > { %1359 = vmatprep.subr.bf16.mxu0 %v1453_v60 }
  0xb4   : > { %1335 = vmatpush3.bf16.msra.mxu1 %v1452_v61 }
  0xb5   : > { %1336 = vmatprep.subr.bf16.mxu1 %v1455_v62 }
  0xb6   : > { %1360 = vmatpush3.bf16.msra.mxu0 %v1454_v63 }
  0xb7   : > { %1361 = vmatprep.subr.bf16.mxu0 %v1457_v0 }
  0xb8   : > { %1337 = vmatpush3.bf16.msra.mxu1 %v1456_v1 }
  0xb9   : > { %1338 = vmatprep.subr.bf16.mxu1 %v1459_v2 }
  0xba   : > { %1362 = vmatpush3.bf16.msra.mxu0 %v1458_v3 }
  0xbb   : > { %1363 = vmatprep.subr.bf16.mxu0 %v1461_v4 }
  0xbc   : > { %1339 = vmatpush3.bf16.msra.mxu1 %v1460_v5 }
  0xbd   : > { %1340 = vmatprep.subr.bf16.mxu1 %v1463_v7 }
  0xbe   : > { %1364 = vmatpush3.bf16.msra.mxu0 %v1462_v8 }
  0xbf   : > { %1365 = vmatprep.subr.bf16.mxu0 %v1465_v10 }
  0xc0   : > { %1341 = vmatpush3.bf16.msra.mxu1 %v1464_v11 }
  0xc1   : > { %1384 = vmatprep.subr.bf16.mxu1 %v1482_v35 }
  0xc2   : > { %1366 = vmatpush3.bf16.msra.mxu0 %v1466_v13 }
  0xc3   : > { %812 = vmatmul.mubr.bf16.vlgmr.msra.gmra.mrb[4].mxu1 %v1691_v19  ;;  %v862_v19 = vld [vmem:[#allocation2 + $0x8] sm:$0xe] }
  0xc4   : > { %1385 = vmatpush3.bf16.msra.mxu1 %v1467_v17  ;;  %1388 = vmatprep.mubr.msk.bf16.mxu1 %vm1484_vm13, %v1482_v35  ;;  %v1275_v22 = vcombine.low %v862_v19, %v1679_v6 }
  0xc5   : > { %1027 = vmatmul.mubr.bf16.vlgmr.msra.gmra.mrb[4].mxu0 %v874_v16  ;;  %1386 = vmatprep.subr.bf16.mxu1 %v1482_v35 }
  0xc6   : > { %v878_v24 = vrot.slane %v1275_v22, 1 }
  0xc8   : > { %1387 = vmatpush3.bf16.msra.mxu1 %v1469_v21  ;;  %v880_v26 = vsel %vm871_vm14, %v878_v24, %v879_v25 }
  0xc9   : > { %1392 = vmatprep.subr.bf16.mxu1 %v1482_v35 }
  0xcb   : > { %1389 = vmatmul.mubr.msk.bf16.vlgmr.msra.gmra.mrb[8].mxu1 %vm581_vm10, %v1685_v15 }
  0xcc   : > { %1393 = vmatpush3.bf16.msra.mxu1 %v1470_v14  ;;  %1396 = vmatprep.mubr.msk.bf16.mxu1 %vm1484_vm13, %v1482_v35 }
  0xcd   : > { %1394 = vmatprep.subr.bf16.mxu1 %v1482_v35 }
  0xd0   : > { %1395 = vmatpush3.bf16.msra.mxu1 %v1471_v23 }
  0xd3   : > { %1397 = vmatmul.mubr.msk.bf16.vlgmr.msra.gmra.mrb[12].mxu1 %vm581_vm10, %v880_v26 }
 0x176   : > { %v660_v6 = vpop.f32.mrb[0].mxu1 }
 0x177   : > { %v1382_v15 = vpop.f32.mrb[1].mxu1 }
 0x178   : > { %v1317_v27 = vpop.f32.mrb[0].mxu0  ;;  %v663_v28 = vpop.f32.mrb[2].mxu1 }
 0x179   : > { %v1318_v29 = vpop.f32.mrb[1].mxu0  ;;  %v1383_v30 = vpop.f32.mrb[3].mxu1 }
 0x17a   : > { %v1319_v31 = vadd.f32 %v1318_v29, %v1317_v27  ;;  %v1320_v32 = vpop.f32.mrb[2].mxu0 }
 0x17b   : > { %v1321_v33 = vpop.f32.mrb[3].mxu0 }
 0x17c   : > { %v661_v34 = vadd.f32 %v1319_v31, %v660_v6  ;;  %v1322_v36 = vadd.f32 %v1321_v33, %v1320_v32 }
 0x17e   : > { %v664_v35 = vadd.f32 %v1322_v36, %v663_v28 }
 0x196   : > { %v1342_v37 = vpop.f32.mrb[4].mxu1 }
 0x197   : > { %v1343_v38 = vpop.f32.mrb[5].mxu1 }
 0x198   : > { %v1344_v9 = vadd.f32 %v1343_v38, %v1342_v37  ;;  %v1345_v39 = vpop.f32.mrb[6].mxu1  ;;  %v1367_v40 = vpop.f32.mrb[4].mxu0 }
 0x199   : > { %v1346_v41 = vpop.f32.mrb[7].mxu1  ;;  %v1368_v42 = vpop.f32.mrb[5].mxu0 }
 0x19a   : > { %v1347_v43 = vadd.f32 %v1346_v41, %v1345_v39  ;;  %v1369_v44 = vadd.f32 %v1368_v42, %v1367_v40  ;;  %v1370_v45 = vpop.f32.mrb[6].mxu0  ;;  %v814_v46 = vadd.f32 %v1344_v9, %v661_v34 }
 0x19b   : > { %v1371_v47 = vpop.f32.mrb[7].mxu0 }
 0x19c   : > { %v1372_v48 = vadd.f32 %v1371_v47, %v1370_v45  ;;  %v817_v49 = vadd.f32 %v1347_v43, %v664_v35 }
 0x19e   : > { %v854_v50 = vpop.f32.mrb[8].mxu1 }
 0x19f   : > { %v855_v51 = vadd.f32 %v854_v50, %v814_v46  ;;  %v1390_v52 = vpop.f32.mrb[9].mxu1 }
 0x1a0   : > { %v857_v53 = vpop.f32.mrb[10].mxu1 }
 0x1a1   : > { %v858_v54 = vadd.f32 %v857_v53, %v817_v49  ;;  %v1391_v55 = vpop.f32.mrb[11].mxu1 }
 0x1a6   : > { %v1069_v56 = vpop.f32.mrb[12].mxu1 }
 0x1a7   : > { %v1070_v57 = vadd.f32 %v1369_v44, %v1069_v56  ;;  %v1398_v58 = vpop.f32.mrb[13].mxu1 }
 0x1a8   : > { %v1072_v60 = vpop.f32.mrb[14].mxu1 }
 0x1a9   : > { %v1076_v61 = vadd.f32 %v1070_v57, %v855_v51  ;;  %v1073_v62 = vadd.f32 %v1372_v48, %v1072_v60  ;;  %v1399_v63 = vpop.f32.mrb[15].mxu1 }
 0x1ab   : > { %v1084_v0 = vadd.f32 %v1295_v59, %v1076_v61  ;;  %v1077_v1 = vadd.f32 %v1073_v62, %v858_v54 }
 0x1ad   : > { %1087 = vst.msk [vmem:[%s175_s6] sm:$0xff] %vm1086_vm1, %v1084_v0  ;;  %v1085_v2 = vadd.f32 %v1295_v59, %v1077_v1 }
 0x1af   : > { %1088 = vst.msk [vmem:[%s175_s6 + $0x8] sm:$0xff] %vm1086_vm1, %v1085_v2 }
 0x1b0 PF: > { %s13_s12 = sadd.s32 1, %s1479_s12  }
 0x1b1   : > { %p10_p4 = scmp.ge.s32.totalorder %s13_s12, 4  }
 0x1b3   :  { %12 = sbr.rel (!%p10_p4) target bundleno = 1 (0x1), region = 64 }

</bundles_post_ra>
